<compile_context>
chip_gen: v7x
topology: tpu7x:2x2x1
jax: 0.10.0
libtpu: 0.0.40
codegen_flags: <defaults>
</compile_context>

<pallas_src>
import jax
import jax.numpy as jnp
from jax import lax
from jax.experimental import pallas as pl
from jax.experimental.pallas import tpu as pltpu

EPS = 1e-5
LANE = 128


def _bn_relu(h, gamma, beta):
    # Training-mode BatchNorm1d (batch stats, biased variance) + ReLU, in f32.
    mean = jnp.mean(h, axis=0, keepdims=True)
    var = jnp.mean(h * h, axis=0, keepdims=True) - mean * mean
    var = jnp.maximum(var, 0.0)                               # guard rsqrt(neg)
    h = (h - mean) * lax.rsqrt(var + EPS) * gamma + beta      # rsqrt -> EUP slot
    return jnp.maximum(h, 0.0)


def simplenn3_kernel(x_ref,
                     w1_ref, g1_ref, be1_ref,
                     w2_ref, g2_ref, be2_ref,
                     w3_ref, b3_ref,
                     out_ref):
    x = x_ref[0]                                              # (N, F) bf16

    # Layer 1: Linear (bias elided: cancelled by BN mean subtraction) + BN + ReLU
    h1 = jnp.dot(x, w1_ref[...], preferred_element_type=jnp.float32)
    h1 = _bn_relu(h1, g1_ref[...], be1_ref[...])

    # Layer 2: Linear (bias elided) + BN + ReLU
    h2 = jnp.dot(h1.astype(jnp.bfloat16), w2_ref[...],
                 preferred_element_type=jnp.float32)
    h2 = _bn_relu(h2, g2_ref[...], be2_ref[...])

    # Layer 3: Linear, out-features zero-padded to 128 lanes -> lane-dense store
    out = jnp.dot(h2.astype(jnp.bfloat16), w3_ref[...],
                  preferred_element_type=jnp.float32) + b3_ref[...]
    out_ref[0] = out.astype(out_ref.dtype)


def simplenn3_forward_batched(xb, params):
    """xb: (B, N, in_dim) f32 — B independent micro-batches (each its own BN
    batch).  Returns (B, N, n_class) f32.  Weights stay VMEM-resident across
    the B grid steps."""
    B, n, in_dim = xb.shape
    n_class = params["n_class"]
    h1 = params["w1"].shape[1]
    h2 = params["w2"].shape[1]
    n_out_pad = params["w3p"].shape[1]

    xb_bf16 = xb.astype(jnp.bfloat16)                         # halve x DMA bytes
    w1, g1, be1 = params["w1"], params["g1"], params["be1"]
    w2, g2, be2 = params["w2"], params["g2"], params["be2"]
    w3p, b3p = params["w3p"], params["b3p"]
    args = (xb_bf16, w1, g1, be1, w2, g2, be2, w3p, b3p)

    cost = pl.CostEstimate(
        flops=2 * B * n * (in_dim * h1 + h1 * h2 + h2 * n_out_pad),
        transcendentals=B * (h1 + h2),
        bytes_accessed=sum(int(a.size) * a.dtype.itemsize for a in args)
        + B * n * n_out_pad * 4,
    )

    # Constant weight index_maps -> weights DMA'd once, resident across grid.
    in_specs = [
        pl.BlockSpec((1, n, in_dim), lambda b: (b, 0, 0)),
        pl.BlockSpec(w1.shape, lambda b: (0, 0)),
        pl.BlockSpec(g1.shape, lambda b: (0, 0)),
        pl.BlockSpec(be1.shape, lambda b: (0, 0)),
        pl.BlockSpec(w2.shape, lambda b: (0, 0)),
        pl.BlockSpec(g2.shape, lambda b: (0, 0)),
        pl.BlockSpec(be2.shape, lambda b: (0, 0)),
        pl.BlockSpec(w3p.shape, lambda b: (0, 0)),
        pl.BlockSpec(b3p.shape, lambda b: (0, 0)),
    ]

    out = pl.pallas_call(
        simplenn3_kernel,
        out_shape=jax.ShapeDtypeStruct((B, n, n_out_pad), jnp.float32),
        grid=(B,),
        in_specs=in_specs,
        out_specs=pl.BlockSpec((1, n, n_out_pad), lambda b: (b, 0, 0)),
        compiler_params=pltpu.CompilerParams(
            dimension_semantics=("parallel",)),
        cost_estimate=cost,
    )(*args)

    return out[:, :, :n_class]


def simplenn3_forward(x, params):
    """x: (N, in_dim) f32 — one forward pass (one BN batch)."""
    return simplenn3_forward_batched(x[None], params)[0]


def init_params(key, in_dim, h1, h2, n_class):
    """PyTorch defaults: Linear U(-1/sqrt(fan_in), 1/sqrt(fan_in)); BN gamma=1,
    beta=0.  Weights stored transposed (in, out) and cast to bf16; final layer
    zero-padded along out-features to a multiple of 128 lanes."""
    def linear(k, fan_in, fan_out):
        kw, kb = jax.random.split(k)
        bound = 1.0 / jnp.sqrt(jnp.float32(fan_in))
        w = jax.random.uniform(kw, (fan_in, fan_out), jnp.float32, -bound, bound)
        b = jax.random.uniform(kb, (1, fan_out), jnp.float32, -bound, bound)
        return w, b

    k1, k2, k3 = jax.random.split(key, 3)
    w1, b1 = linear(k1, in_dim, h1)
    w2, b2 = linear(k2, h1, h2)
    w3, b3 = linear(k3, h2, n_class)

    n_out_pad = max(LANE, ((n_class + LANE - 1) // LANE) * LANE)
    w3p = jnp.zeros((h2, n_out_pad), jnp.float32).at[:, :n_class].set(w3)
    b3p = jnp.zeros((1, n_out_pad), jnp.float32).at[:, :n_class].set(b3)

    return {
        "w1": w1.astype(jnp.bfloat16), "b1": b1,
        "g1": jnp.ones((1, h1), jnp.float32), "be1": jnp.zeros((1, h1), jnp.float32),
        "w2": w2.astype(jnp.bfloat16), "b2": b2,
        "g2": jnp.ones((1, h2), jnp.float32), "be2": jnp.zeros((1, h2), jnp.float32),
        "w3p": w3p.astype(jnp.bfloat16), "b3p": b3p,
        "n_class": n_class,
    }


def reference_forward(x2d, p):
    """Pure-JAX reference for ONE micro-batch with the original module's
    semantics (biases included; BN over batch stats, two-pass variance) at
    matched dot precision (bf16 operands, f32 accumulation)."""
    def dot(a, w):
        return jnp.dot(a.astype(jnp.bfloat16), w, preferred_element_type=jnp.float32)

    def bn_relu(h, g, b):
        m = jnp.mean(h, axis=0, keepdims=True)
        v = jnp.mean((h - m) ** 2, axis=0, keepdims=True)
        return jnp.maximum((h - m) / jnp.sqrt(v + EPS) * g + b, 0.0)

    h = bn_relu(dot(x2d, p["w1"]) + p["b1"], p["g1"], p["be1"])
    h = bn_relu(dot(h, p["w2"]) + p["b2"], p["g2"], p["be2"])
    out = dot(h, p["w3p"]) + p["b3p"]
    return out[:, :p["n_class"]]


if __name__ == "__main__":
    # data_shape = (32, 32): n_output_bn = ((32//4 - 8)//8 + 1)**2 * 640 = 640
    #   -> in_dim = 1280, hidden1 = 640, hidden2 = 320
    W, H = 32, 32
    n_output_bn = ((W // 4 - 8) // 8 + 1) * ((H // 4 - 8) // 8 + 1) * 640
    in_dim = int(n_output_bn + 640)          # 1280
    hid1 = int((n_output_bn + 640) / 2)      # 640
    hid2 = int((n_output_bn + 640) / 4)      # 320
    n_class = 10
    n_micro = 16                             # rows per micro-batch (mult. of 16 for bf16)
    B = 2                                    # independent micro-batches in one call

    key = jax.random.PRNGKey(0)
    kx, kp = jax.random.split(key)
    xb = jax.random.normal(kx, (B, n_micro, in_dim), jnp.float32)
    params = init_params(kp, in_dim, hid1, hid2, n_class)

    # Batched path: weights DMA'd once, resident across the B grid steps.
    out_b = jax.block_until_ready(simplenn3_forward_batched(xb, params))
    ref_b = jnp.stack([reference_forward(xb[i], params) for i in range(B)])
    assert out_b.shape == (B, n_micro, n_class)
    assert jnp.allclose(out_b, ref_b, atol=1e-2, rtol=1e-2), (
        f"batched mismatch: max abs diff {float(jnp.max(jnp.abs(out_b - ref_b)))}")

    # Single-forward wrapper (B=1 path).
    out_s = jax.block_until_ready(simplenn3_forward(xb[0], params))
    assert out_s.shape == (n_micro, n_class)
    assert jnp.allclose(out_s, ref_b[0], atol=1e-2, rtol=1e-2), (
        f"single mismatch: max abs diff {float(jnp.max(jnp.abs(out_s - ref_b[0])))}")

    print("KERNEL_OK")
</pallas_src>

<mosaic_0001>
module attributes {stable_mosaic.version = 11 : i64} {
  func.func @simplenn3_kernel(%arg0: i32, %arg1: memref<1x16x1280xbf16, #tpu.memory_space<vmem>>, %arg2: memref<1280x640xbf16, #tpu.memory_space<vmem>>, %arg3: memref<1x640xf32, #tpu.memory_space<vmem>>, %arg4: memref<1x640xf32, #tpu.memory_space<vmem>>, %arg5: memref<640x320xbf16, #tpu.memory_space<vmem>>, %arg6: memref<1x320xf32, #tpu.memory_space<vmem>>, %arg7: memref<1x320xf32, #tpu.memory_space<vmem>>, %arg8: memref<320x128xbf16, #tpu.memory_space<vmem>>, %arg9: memref<1x128xf32, #tpu.memory_space<vmem>>, %arg10: memref<1x16x128xf32, #tpu.memory_space<vmem>>) attributes {dimension_semantics = [#tpu.dimension_semantics<parallel>], iteration_bounds = array<i64: 2>, scalar_prefetch = 0 : i64, scratch_operands = 0 : i64, tpu.core_type = #tpu.core_type<tc>, window_params = [{transform_indices = @transform_0, window_bounds = array<i64: 1, 16, 1280>}, {pipeline_mode = #tpu.pipeline_mode<synchronous>, transform_indices = @transform_1, window_bounds = array<i64: 1280, 640>}, {pipeline_mode = #tpu.pipeline_mode<synchronous>, transform_indices = @transform_2, window_bounds = array<i64: 1, 640>}, {pipeline_mode = #tpu.pipeline_mode<synchronous>, transform_indices = @transform_3, window_bounds = array<i64: 1, 640>}, {pipeline_mode = #tpu.pipeline_mode<synchronous>, transform_indices = @transform_4, window_bounds = array<i64: 640, 320>}, {pipeline_mode = #tpu.pipeline_mode<synchronous>, transform_indices = @transform_5, window_bounds = array<i64: 1, 320>}, {pipeline_mode = #tpu.pipeline_mode<synchronous>, transform_indices = @transform_6, window_bounds = array<i64: 1, 320>}, {pipeline_mode = #tpu.pipeline_mode<synchronous>, transform_indices = @transform_7, window_bounds = array<i64: 320, 128>}, {pipeline_mode = #tpu.pipeline_mode<synchronous>, transform_indices = @transform_8, window_bounds = array<i64: 1, 128>}, {transform_indices = @transform_9, window_bounds = array<i64: 1, 16, 128>}]} {
    %c0 = arith.constant 0 : index
    %c0_0 = arith.constant 0 : index
    %c0_1 = arith.constant 0 : index
    %0 = vector.load %arg1[%c0, %c0_0, %c0_1] : memref<1x16x1280xbf16, #tpu.memory_space<vmem>>, vector<1x16x1280xbf16>
    %1 = vector.shape_cast %0 : vector<1x16x1280xbf16> to vector<16x1280xbf16>
    %c0_2 = arith.constant 0 : index
    %c0_3 = arith.constant 0 : index
    %2 = vector.load %arg2[%c0_2, %c0_3] : memref<1280x640xbf16, #tpu.memory_space<vmem>>, vector<1280x640xbf16>
    %cst = arith.constant dense<0.000000e+00> : vector<16x640xf32>
    %3 = tpu.matmul %1, %2, %cst {dimension_numbers = #tpu.dot_dimension_numbers<[1], [0], [0], [1], [0, 0, 1, 1], [], []>} : vector<16x1280xbf16>, vector<1280x640xbf16>, vector<16x640xf32> -> vector<16x640xf32>
    %c0_4 = arith.constant 0 : index
    %c0_5 = arith.constant 0 : index
    %4 = vector.load %arg3[%c0_4, %c0_5] : memref<1x640xf32, #tpu.memory_space<vmem>>, vector<1x640xf32>
    %c0_6 = arith.constant 0 : index
    %c0_7 = arith.constant 0 : index
    %5 = vector.load %arg4[%c0_6, %c0_7] : memref<1x640xf32, #tpu.memory_space<vmem>>, vector<1x640xf32>
    %cst_8 = arith.constant dense<0.000000e+00> : vector<640xf32>
    %6 = vector.multi_reduction <add>, %3, %cst_8 [0] : vector<16x640xf32> to vector<640xf32>
    %7 = vector.shape_cast %6 : vector<640xf32> to vector<1x640xf32>
    %cst_9 = arith.constant 1.600000e+01 : f32
    %8 = vector.broadcast %cst_9 : f32 to vector<1x640xf32>
    %9 = arith.divf %7, %8 : vector<1x640xf32>
    %10 = arith.mulf %3, %3 : vector<16x640xf32>
    %cst_10 = arith.constant dense<0.000000e+00> : vector<640xf32>
    %11 = vector.multi_reduction <add>, %10, %cst_10 [0] : vector<16x640xf32> to vector<640xf32>
    %12 = vector.shape_cast %11 : vector<640xf32> to vector<1x640xf32>
    %cst_11 = arith.constant 1.600000e+01 : f32
    %13 = vector.broadcast %cst_11 : f32 to vector<1x640xf32>
    %14 = arith.divf %12, %13 : vector<1x640xf32>
    %15 = arith.mulf %9, %9 : vector<1x640xf32>
    %16 = arith.subf %14, %15 : vector<1x640xf32>
    %cst_12 = arith.constant 0.000000e+00 : f32
    %17 = vector.broadcast %cst_12 : f32 to vector<1x640xf32>
    %18 = arith.maximumf %16, %17 : vector<1x640xf32>
    %19 = vector.broadcast %9 : vector<1x640xf32> to vector<16x640xf32>
    %20 = arith.subf %3, %19 : vector<16x640xf32>
    %cst_13 = arith.constant 9.99999974E-6 : f32
    %21 = vector.broadcast %cst_13 : f32 to vector<1x640xf32>
    %22 = arith.addf %18, %21 : vector<1x640xf32>
    %23 = math.rsqrt %22 : vector<1x640xf32>
    %24 = vector.broadcast %23 : vector<1x640xf32> to vector<16x640xf32>
    %25 = arith.mulf %20, %24 : vector<16x640xf32>
    %26 = vector.broadcast %4 : vector<1x640xf32> to vector<16x640xf32>
    %27 = arith.mulf %25, %26 : vector<16x640xf32>
    %28 = vector.broadcast %5 : vector<1x640xf32> to vector<16x640xf32>
    %29 = arith.addf %27, %28 : vector<16x640xf32>
    %cst_14 = arith.constant 0.000000e+00 : f32
    %30 = vector.broadcast %cst_14 : f32 to vector<16x640xf32>
    %31 = arith.maximumf %29, %30 : vector<16x640xf32>
    %32 = arith.truncf %31 : vector<16x640xf32> to vector<16x640xbf16>
    %c0_15 = arith.constant 0 : index
    %c0_16 = arith.constant 0 : index
    %33 = vector.load %arg5[%c0_15, %c0_16] : memref<640x320xbf16, #tpu.memory_space<vmem>>, vector<640x320xbf16>
    %cst_17 = arith.constant dense<0.000000e+00> : vector<16x320xf32>
    %34 = tpu.matmul %32, %33, %cst_17 {dimension_numbers = #tpu.dot_dimension_numbers<[1], [0], [0], [1], [0, 0, 1, 1], [], []>} : vector<16x640xbf16>, vector<640x320xbf16>, vector<16x320xf32> -> vector<16x320xf32>
    %c0_18 = arith.constant 0 : index
    %c0_19 = arith.constant 0 : index
    %35 = vector.load %arg6[%c0_18, %c0_19] : memref<1x320xf32, #tpu.memory_space<vmem>>, vector<1x320xf32>
    %c0_20 = arith.constant 0 : index
    %c0_21 = arith.constant 0 : index
    %36 = vector.load %arg7[%c0_20, %c0_21] : memref<1x320xf32, #tpu.memory_space<vmem>>, vector<1x320xf32>
    %cst_22 = arith.constant dense<0.000000e+00> : vector<320xf32>
    %37 = vector.multi_reduction <add>, %34, %cst_22 [0] : vector<16x320xf32> to vector<320xf32>
    %38 = vector.shape_cast %37 : vector<320xf32> to vector<1x320xf32>
    %cst_23 = arith.constant 1.600000e+01 : f32
    %39 = vector.broadcast %cst_23 : f32 to vector<1x320xf32>
    %40 = arith.divf %38, %39 : vector<1x320xf32>
    %41 = arith.mulf %34, %34 : vector<16x320xf32>
    %cst_24 = arith.constant dense<0.000000e+00> : vector<320xf32>
    %42 = vector.multi_reduction <add>, %41, %cst_24 [0] : vector<16x320xf32> to vector<320xf32>
    %43 = vector.shape_cast %42 : vector<320xf32> to vector<1x320xf32>
    %cst_25 = arith.constant 1.600000e+01 : f32
    %44 = vector.broadcast %cst_25 : f32 to vector<1x320xf32>
    %45 = arith.divf %43, %44 : vector<1x320xf32>
    %46 = arith.mulf %40, %40 : vector<1x320xf32>
    %47 = arith.subf %45, %46 : vector<1x320xf32>
    %cst_26 = arith.constant 0.000000e+00 : f32
    %48 = vector.broadcast %cst_26 : f32 to vector<1x320xf32>
    %49 = arith.maximumf %47, %48 : vector<1x320xf32>
    %50 = vector.broadcast %40 : vector<1x320xf32> to vector<16x320xf32>
    %51 = arith.subf %34, %50 : vector<16x320xf32>
    %cst_27 = arith.constant 9.99999974E-6 : f32
    %52 = vector.broadcast %cst_27 : f32 to vector<1x320xf32>
    %53 = arith.addf %49, %52 : vector<1x320xf32>
    %54 = math.rsqrt %53 : vector<1x320xf32>
    %55 = vector.broadcast %54 : vector<1x320xf32> to vector<16x320xf32>
    %56 = arith.mulf %51, %55 : vector<16x320xf32>
    %57 = vector.broadcast %35 : vector<1x320xf32> to vector<16x320xf32>
    %58 = arith.mulf %56, %57 : vector<16x320xf32>
    %59 = vector.broadcast %36 : vector<1x320xf32> to vector<16x320xf32>
    %60 = arith.addf %58, %59 : vector<16x320xf32>
    %cst_28 = arith.constant 0.000000e+00 : f32
    %61 = vector.broadcast %cst_28 : f32 to vector<16x320xf32>
    %62 = arith.maximumf %60, %61 : vector<16x320xf32>
    %63 = arith.truncf %62 : vector<16x320xf32> to vector<16x320xbf16>
    %c0_29 = arith.constant 0 : index
    %c0_30 = arith.constant 0 : index
    %64 = vector.load %arg8[%c0_29, %c0_30] : memref<320x128xbf16, #tpu.memory_space<vmem>>, vector<320x128xbf16>
    %cst_31 = arith.constant dense<0.000000e+00> : vector<16x128xf32>
    %65 = tpu.matmul %63, %64, %cst_31 {dimension_numbers = #tpu.dot_dimension_numbers<[1], [0], [0], [1], [0, 0, 1, 1], [], []>} : vector<16x320xbf16>, vector<320x128xbf16>, vector<16x128xf32> -> vector<16x128xf32>
    %c0_32 = arith.constant 0 : index
    %c0_33 = arith.constant 0 : index
    %66 = vector.load %arg9[%c0_32, %c0_33] : memref<1x128xf32, #tpu.memory_space<vmem>>, vector<1x128xf32>
    %67 = vector.broadcast %66 : vector<1x128xf32> to vector<16x128xf32>
    %68 = arith.addf %65, %67 : vector<16x128xf32>
    %c0_34 = arith.constant 0 : index
    %c0_35 = arith.constant 0 : index
    %c0_36 = arith.constant 0 : index
    %69 = vector.load %arg10[%c0_34, %c0_35, %c0_36] : memref<1x16x128xf32, #tpu.memory_space<vmem>>, vector<1x16x128xf32>
    %70 = vector.shape_cast %69 : vector<1x16x128xf32> to vector<16x128xf32>
    %71 = vector.shape_cast %68 : vector<16x128xf32> to vector<1x16x128xf32>
    tpu.vector_store %arg10[%c0_34, %c0_35, %c0_36], %71 {strides = array<i32>} : memref<1x16x128xf32, #tpu.memory_space<vmem>>, vector<1x16x128xf32>,
    return
  }
  func.func @transform_0(%arg0: i32) -> (i32, i32, i32) {
    %c0_i32 = arith.constant 0 : i32
    %c0_i32_0 = arith.constant 0 : i32
    %c0_i32_1 = arith.constant 0 : i32
    return %arg0, %c0_i32, %c0_i32_0 : i32, i32, i32
  }
  func.func @transform_1(%arg0: i32) -> (i32, i32) {
    %c0_i32 = arith.constant 0 : i32
    %c0_i32_0 = arith.constant 0 : i32
    %c0_i32_1 = arith.constant 0 : i32
    return %c0_i32, %c0_i32_0 : i32, i32
  }
  func.func @transform_2(%arg0: i32) -> (i32, i32) {
    %c0_i32 = arith.constant 0 : i32
    %c0_i32_0 = arith.constant 0 : i32
    %c0_i32_1 = arith.constant 0 : i32
    return %c0_i32, %c0_i32_0 : i32, i32
  }
  func.func @transform_3(%arg0: i32) -> (i32, i32) {
    %c0_i32 = arith.constant 0 : i32
    %c0_i32_0 = arith.constant 0 : i32
    %c0_i32_1 = arith.constant 0 : i32
    return %c0_i32, %c0_i32_0 : i32, i32
  }
  func.func @transform_4(%arg0: i32) -> (i32, i32) {
    %c0_i32 = arith.constant 0 : i32
    %c0_i32_0 = arith.constant 0 : i32
    %c0_i32_1 = arith.constant 0 : i32
    return %c0_i32, %c0_i32_0 : i32, i32
  }
  func.func @transform_5(%arg0: i32) -> (i32, i32) {
    %c0_i32 = arith.constant 0 : i32
    %c0_i32_0 = arith.constant 0 : i32
    %c0_i32_1 = arith.constant 0 : i32
    return %c0_i32, %c0_i32_0 : i32, i32
  }
  func.func @transform_6(%arg0: i32) -> (i32, i32) {
    %c0_i32 = arith.constant 0 : i32
    %c0_i32_0 = arith.constant 0 : i32
    %c0_i32_1 = arith.constant 0 : i32
    return %c0_i32, %c0_i32_0 : i32, i32
  }
  func.func @transform_7(%arg0: i32) -> (i32, i32) {
    %c0_i32 = arith.constant 0 : i32
    %c0_i32_0 = arith.constant 0 : i32
    %c0_i32_1 = arith.constant 0 : i32
    return %c0_i32, %c0_i32_0 : i32, i32
  }
  func.func @transform_8(%arg0: i32) -> (i32, i32) {
    %c0_i32 = arith.constant 0 : i32
    %c0_i32_0 = arith.constant 0 : i32
    %c0_i32_1 = arith.constant 0 : i32
    return %c0_i32, %c0_i32_0 : i32, i32
  }
  func.func @transform_9(%arg0: i32) -> (i32, i32, i32) {
    %c0_i32 = arith.constant 0 : i32
    %c0_i32_0 = arith.constant 0 : i32
    %c0_i32_1 = arith.constant 0 : i32
    return %arg0, %c0_i32, %c0_i32_0 : i32, i32, i32
  }
}

</mosaic_0001>

<bundles_post_ra>
// kernel: tpu_custom_call.1
= control target key start
LH: loop header
LB: loop body
LE: loop exit
PB: predicated region body
PF: predicated region fallthrough
CT: control target
= control target key end

     0   :  { %s8579_s0 = inlined_call_operand.hbm [shape: bf16[2,16,1280], index: 0, kind: input, shape index: {}]   ;;  %s8580_s1 = inlined_call_operand.hbm [shape: bf16[1280,640], index: 1, kind: input, shape index: {}]   ;;  %s8581_s2 = inlined_call_operand.hbm [shape: f32[1,640], index: 2, kind: input, shape index: {}]   ;;  %s8582_s3 = inlined_call_operand.hbm [shape: f32[1,640], index: 3, kind: input, shape index: {}]   ;;  %s8583_s4 = inlined_call_operand.vmem [shape: bf16[640,320], index: 4, kind: input, shape index: {}]   ;;  %s8584_s5 = inlined_call_operand.hbm [shape: f32[1,320], index: 5, kind: input, shape index: {}]   ;;  %s8585_s6 = inlined_call_operand.hbm [shape: f32[1,320], index: 6, kind: input, shape index: {}]   ;;  %s8586_s7 = inlined_call_operand.hbm [shape: bf16[320,128], index: 7, kind: input, shape index: {}]   ;;  %s8587_s8 = inlined_call_operand.hbm [shape: f32[1,128], index: 8, kind: input, shape index: {}]   ;;  %s8588_s9 = inlined_call_operand.hbm [shape: f32[2,16,128], index: 9, kind: output, shape index: {}]  }
   0x1   :  { %8593 = sst [smem:[#allocation23_spill]] %s8580_s1 }
   0x2   :  { %8594 = sst [smem:[#allocation24_spill]] %s8581_s2 }
   0x3   :  { %8595 = sst [smem:[#allocation25_spill]] %s8588_s9 }
   0x4   :  { %14 = vsyncpa [#allocation3], 0 }
   0x5   :  { %16 = vsyncpa [#allocation3 + $0x1], 0 }
   0x6   :  { %17 = vsyncpa [#allocation6], 0 }
   0x7   :  { %18 = vsyncpa [#allocation9], 0 }
   0x8   :  { %19 = vsyncpa [#allocation12], 0 }
   0x9   :  { %20 = vsyncpa [#allocation15], 0 }
   0xa   :  { %21 = vsyncpa [#allocation4], 0 }
   0xb   :  { %23 = vsyncpa [#allocation4 + $0x1], 0  ;;  %s7656_s30 = smov 0   ;;  %s7658_s10 = smov 0  }
   0xc   :  { %s7660_s11 = smov 0   ;;  %s7662_s12 = smov 0  }
   0xd LB: > { %s7586_s13 = smov [#allocation5]   ;;  %s7677_s15 = sadd.s32 4294967295, %s7584_s12   ;;  %s7584_s12 = sphi %s7662_s12, %s8622_s12   ;;  %s7580_s11 = sphi %s7660_s11, %s8621_s11   ;;  %s7576_s10 = sphi %s7658_s10, %s8620_s10   ;;  %s7572_s30 = sphi %s7656_s30, %s8619_s30  }
   0xe   : > { %s266_s14 = sshll.u32 %s7586_s13, 4  ;;  %p5526_p0 = scmp.ge.s32.totalorder %s7584_s12, 1  ;;  %s7682_s14 = int_to_ptr.vmem [resolvable:$true] %s266_s14 }
   0xf   : > { %p8590_p1 = scmp.eq.s32.totalorder %s7677_s15, 0  ;;  %p254_p2 = scmp.lt.s32.totalorder %s7584_s12, 3 }
  0x10   : > { %s7587_s17 = smov [#allocation8]   ;;  %s7588_s20 = smov [#allocation11]  }
  0x11   : > { %p7684_p3 = pnand %p5526_p0, %p254_p2  ;;  %s291_s18 = sshll.u32 %s7587_s17, 4  ;;  %s7697_s18 = int_to_ptr.vmem [resolvable:$true] %s291_s18 }
  0x12   : > { %s316_s21 = sshll.u32 %s7588_s20, 4  ;;  %s8598_s1 = sld [smem:[#allocation23_spill]]  ;;  %s7699_s21 = int_to_ptr.vmem [resolvable:$true] %s316_s21 }
  0x13   : > { %s8596_s16 = scalar_select %p7684_p3, 1, 0 }
  0x14   : > { %p6400_p5 = pneg %p7684_p3 }
  0x16   : > { %p7693_p6 = pnand %p6400_p5, %p8590_p1 }
  0x18   : > { %s7276_s24 = scalar_lea.hbm %s8598_s1, 51200  ;;  %p7709_p8 = pneg %p7693_p6 }
  0x19   : > { %p7277_p7 = scmp.ne.s32.totalorder %s8598_s1, %s7276_s24  ;;  %p7283_p11 = scmp.lt.u32.totalorder %s7276_s24, %s8598_s1 }
  0x1b   : > { %p7279_p9 = pnand %p7709_p8, %p7277_p7 }
  0x1d   : > { %p7280_p10 = pneg %p7279_p9 }
  0x1f   : > { %p7285_p12 = pnand %p7283_p11, %p7280_p10 }
  0x21   : > { %7288 = shalt.err (!%p7285_p12)
}
  0x22   : > { %s7289_s13 = scalar_lea.vmem %s7682_s14, 51200  ;;  %p7297_p5 = scmp.lt.s32.totalorder %s7682_s14, %s7682_s14 }
  0x23   : > { %p7290_p13 = scmp.ne.s32.totalorder %s7682_s14, %s7289_s13  ;;  %p7298_p4 = scmp.lt.s32.totalorder %s7289_s13, %s7289_s13 }
  0x25   : > { %p7292_p0 = pnand %p7290_p13, %p7709_p8  ;;  %p7299_p7 = por %p7298_p4, %p7297_p5 }
  0x27   : > { %p7293_p2 = pneg %p7292_p0 }
  0x29   : > { %p7300_p9 = pnand %p7299_p7, %p7293_p2 }
  0x2b   : > { %7303 = shalt.err (!%p7300_p9)
}
  0x2c   : > { %s7589_s17 = smov 320   ;;  %s7590_s20 = smov 20  }
  0x2d   : > { %6403 = dma.hbm_to_vmem [thread:$0]  (!%p7693_p6), %s8598_s1, 51200, %s7682_s14, [#allocation6], %s7589_s17, %s7589_s17, %s7590_s20  }
  0x2e   : > { %s7304_s26 = scalar_lea.hbm %s8582_s3, 80 }
  0x2f   : > { %p7305_p4 = scmp.ne.s32.totalorder %s8582_s3, %s7304_s26  ;;  %p7311_p12 = scmp.lt.u32.totalorder %s7304_s26, %s8582_s3 }
  0x31   : > { %p7307_p10 = pnand %p7305_p4, %p7709_p8 }
  0x33   : > { %p7308_p11 = pneg %p7307_p10 }
  0x35   : > { %p7313_p13 = pnand %p7311_p12, %p7308_p11 }
  0x37   : > { %7316 = shalt.err (!%p7313_p13)
}
  0x38   : > { %s7317_s14 = scalar_lea.vmem %s7697_s18, 80  ;;  %s7324_s17 = scalar_lea.vmem %s7697_s18, 96 }
  0x39   : > { %p7318_p0 = scmp.ne.s32.totalorder %s7697_s18, %s7317_s14  ;;  %p7325_p7 = scmp.lt.s32.totalorder %s7697_s18, %s7697_s18 }
  0x3a   : > { %p7326_p9 = scmp.lt.s32.totalorder %s7324_s17, %s7317_s14 }
  0x3b   : > { %p7320_p2 = pnand %p7318_p0, %p7709_p8 }
  0x3c   : > { %p7327_p4 = por %p7326_p9, %p7325_p7 }
  0x3d   : > { %p7321_p5 = pneg %p7320_p2 }
  0x3f   : > { %p7328_p10 = pnand %p7327_p4, %p7321_p5 }
  0x41   : > { %7331 = shalt.err (!%p7328_p10)
}
  0x42   : > { %6409 = dma.hbm_to_vmem [thread:$0]  (!%p7693_p6), %s8582_s3, 80, %s7697_s18, [#allocation9]  }
  0x43   : > { %s7332_s24 = scalar_lea.hbm %s8585_s6, 48 }
  0x44   : > { %p7333_p11 = scmp.ne.s32.totalorder %s8585_s6, %s7332_s24  ;;  %p7339_p0 = scmp.lt.u32.totalorder %s7332_s24, %s8585_s6 }
  0x46   : > { %p7335_p12 = pnand %p7333_p11, %p7709_p8 }
  0x48   : > { %p7336_p13 = pneg %p7335_p12 }
  0x4a   : > { %p7341_p2 = pnand %p7339_p0, %p7336_p13 }
  0x4c   : > { %7344 = shalt.err (!%p7341_p2)
}
  0x4d   : > { %s7345_s18 = scalar_lea.vmem %s7699_s21, 48  ;;  %s7352_s13 = scalar_lea.vmem %s7699_s21, 64 }
  0x4e   : > { %p7346_p5 = scmp.ne.s32.totalorder %s7699_s21, %s7345_s18  ;;  %p7353_p4 = scmp.lt.s32.totalorder %s7699_s21, %s7699_s21 }
  0x4f   : > { %p7354_p10 = scmp.lt.s32.totalorder %s7352_s13, %s7345_s18 }
  0x50   : > { %p7348_p7 = pnand %p7346_p5, %p7709_p8 }
  0x51   : > { %p7355_p11 = por %p7354_p10, %p7353_p4 }
  0x52   : > { %p7349_p9 = pneg %p7348_p7 }
  0x54   : > { %p7356_p12 = pnand %p7355_p11, %p7349_p9 }
  0x56   : > { %7359 = shalt.err (!%p7356_p12)
}
  0x57   : > { %6415 = dma.hbm_to_vmem [thread:$0]  (!%p7693_p6), %s8585_s6, 48, %s7699_s21, [#allocation12]  }
  0x58   : > { %s7591_s9 = smov [#allocation7]   ;;  %s7592_s22 = smov [#allocation10]  }
  0x59   : > { %s280_s20 = sshll.u32 %s7591_s9, 4  ;;  %s305_s23 = sshll.u32 %s7592_s22, 4  ;;  %s281_s20 = int_to_ptr.vmem [resolvable:$true] %s280_s20  ;;  %s306_s23 = int_to_ptr.vmem [resolvable:$true] %s305_s23 }
  0x5a   : > { %s8600_s2 = sld [smem:[#allocation24_spill]] }
  0x60   : > { %s7360_s26 = scalar_lea.hbm %s8600_s2, 80 }
  0x61   : > { %p7361_p13 = scmp.ne.s32.totalorder %s8600_s2, %s7360_s26  ;;  %p7367_p5 = scmp.lt.u32.totalorder %s7360_s26, %s8600_s2 }
  0x63   : > { %p7363_p0 = pnand %p7361_p13, %p7709_p8 }
  0x65   : > { %p7364_p2 = pneg %p7363_p0 }
  0x67   : > { %p7369_p7 = pnand %p7367_p5, %p7364_p2 }
  0x69   : > { %7372 = shalt.err (!%p7369_p7)
}
  0x6a   : > { %s7373_s21 = scalar_lea.vmem %s281_s20, 80  ;;  %s7380_s14 = scalar_lea.vmem %s281_s20, 96 }
  0x6b   : > { %p7374_p9 = scmp.ne.s32.totalorder %s281_s20, %s7373_s21  ;;  %p7381_p11 = scmp.lt.s32.totalorder %s281_s20, %s281_s20 }
  0x6c   : > { %p7382_p12 = scmp.lt.s32.totalorder %s7380_s14, %s7373_s21 }
  0x6d   : > { %p7376_p4 = pnand %p7374_p9, %p7709_p8 }
  0x6e   : > { %p7383_p1 = por %p7382_p12, %p7381_p11 }
  0x6f   : > { %p7377_p10 = pneg %p7376_p4 }
  0x71   : > { %p7384_p3 = pnand %p7383_p1, %p7377_p10 }
  0x73   : > { %7387 = shalt.err (!%p7384_p3)
}
  0x74   : > { %6406 = dma.hbm_to_vmem [thread:$0]  (!%p7693_p6), %s8600_s2, 80, %s281_s20, [#allocation6]  }
  0x75   : > { %s7388_s25 = scalar_lea.hbm %s8584_s5, 48 }
  0x76   : > { %p7389_p13 = scmp.ne.s32.totalorder %s8584_s5, %s7388_s25  ;;  %p7395_p3 = scmp.lt.u32.totalorder %s7388_s25, %s8584_s5 }
  0x78   : > { %p7391_p0 = pnand %p7389_p13, %p7709_p8 }
  0x7a   : > { %p7392_p1 = pneg %p7391_p0 }
  0x7c   : > { %p7397_p2 = pnand %p7395_p3, %p7392_p1 }
  0x7e   : > { %7400 = shalt.err (!%p7397_p2)
}
  0x7f   : > { %s7401_s13 = scalar_lea.vmem %s306_s23, 48  ;;  %s7408_s20 = scalar_lea.vmem %s306_s23, 64 }
  0x80   : > { %p7402_p5 = scmp.ne.s32.totalorder %s306_s23, %s7401_s13  ;;  %p7409_p4 = scmp.lt.s32.totalorder %s306_s23, %s306_s23 }
  0x81   : > { %p7410_p10 = scmp.lt.s32.totalorder %s7408_s20, %s7401_s13 }
  0x82   : > { %p7404_p7 = pnand %p7402_p5, %p7709_p8 }
  0x83   : > { %p7411_p11 = por %p7410_p10, %p7409_p4 }
  0x84   : > { %p7405_p9 = pneg %p7404_p7 }
  0x86   : > { %p7412_p12 = pnand %p7411_p11, %p7405_p9 }
  0x88   : > { %7415 = shalt.err (!%p7412_p12)
}
  0x89   : > { %6412 = dma.hbm_to_vmem [thread:$0]  (!%p7693_p6), %s8584_s5, 48, %s306_s23, [#allocation9]  }
  0x8a   : > { %s7593_s17 = smov [#allocation13]   ;;  %s7416_s25 = scalar_lea.hbm %s8586_s7, 2560 }
  0x8b   : > { %s326_s9 = sshll.u32 %s7593_s17, 4  ;;  %p7417_p13 = scmp.ne.s32.totalorder %s8586_s7, %s7416_s25  ;;  %s327_s9 = int_to_ptr.vmem [resolvable:$true] %s326_s9 }
  0x8c   : > { %p7423_p3 = scmp.lt.u32.totalorder %s7416_s25, %s8586_s7 }
  0x8d   : > { %p7419_p0 = pnand %p7417_p13, %p7709_p8 }
  0x8f   : > { %p7420_p1 = pneg %p7419_p0 }
  0x91   : > { %p7425_p2 = pnand %p7423_p3, %p7420_p1 }
  0x93   : > { %7428 = shalt.err (!%p7425_p2)
}
  0x94   : > { %s7429_s23 = scalar_lea.vmem %s327_s9, 2560  ;;  %p7437_p4 = scmp.lt.s32.totalorder %s327_s9, %s327_s9 }
  0x95   : > { %p7430_p5 = scmp.ne.s32.totalorder %s327_s9, %s7429_s23  ;;  %p7438_p10 = scmp.lt.s32.totalorder %s7429_s23, %s7429_s23 }
  0x97   : > { %p7432_p7 = pnand %p7430_p5, %p7709_p8  ;;  %p7439_p11 = por %p7438_p10, %p7437_p4 }
  0x99   : > { %p7433_p9 = pneg %p7432_p7 }
  0x9b   : > { %p7440_p12 = pnand %p7439_p11, %p7433_p9 }
  0x9d   : > { %7443 = shalt.err (!%p7440_p12)
}
  0x9e   : > { %s7594_s13 = smov 64   ;;  %s7595_s20 = smov 4  }
  0x9f   : > { %6418 = dma.hbm_to_vmem [thread:$0]  (!%p7693_p6), %s8586_s7, 2560, %s327_s9, [#allocation12], %s7594_s13, %s7594_s13, %s7595_s20  }
  0xa0   : > { %s7596_s17 = smov [#allocation14]   ;;  %s7444_s26 = scalar_lea.hbm %s8587_s8, 16 }
  0xa1   : > { %s340_s22 = sshll.u32 %s7596_s17, 4  ;;  %p7445_p13 = scmp.ne.s32.totalorder %s8587_s8, %s7444_s26  ;;  %s341_s22 = int_to_ptr.vmem [resolvable:$true] %s340_s22 }
  0xa2   : > { %p7451_p3 = scmp.lt.u32.totalorder %s7444_s26, %s8587_s8 }
  0xa3   : > { %p7447_p0 = pnand %p7445_p13, %p7709_p8 }
  0xa5   : > { %p7448_p1 = pneg %p7447_p0 }
  0xa7   : > { %p7453_p2 = pnand %p7451_p3, %p7448_p1 }
  0xa9   : > { %7456 = shalt.err (!%p7453_p2)
}
  0xaa   : > { %s7457_s9 = scalar_lea.vmem %s341_s22, 16  ;;  %s7464_s13 = scalar_lea.vmem %s341_s22, 32 }
  0xab   : > { %p7458_p5 = scmp.ne.s32.totalorder %s341_s22, %s7457_s9  ;;  %p7465_p4 = scmp.lt.s32.totalorder %s341_s22, %s341_s22 }
  0xac   : > { %p7466_p10 = scmp.lt.s32.totalorder %s7464_s13, %s7457_s9 }
  0xad   : > { %p7460_p7 = pnand %p7458_p5, %p7709_p8 }
  0xae   : > { %p7467_p11 = por %p7466_p10, %p7465_p4 }
  0xaf   : > { %p7461_p9 = pneg %p7460_p7 }
  0xb1   : > { %p7468_p12 = pnand %p7467_p11, %p7461_p9 }
  0xb3   : > { %7471 = shalt.err (!%p7468_p12)
}
  0xb4   : > { %6421 = dma.hbm_to_vmem [thread:$0]  (!%p7693_p6), %s8587_s8, 16, %s341_s22, [#allocation15]  }
  0xb5   : > { %s5525_s27 = sadd.s32 4294967294, %s7584_s12   ;;  %s7852_s19 = sadd.s32 1, %s7584_s12  }
  0xb6   : > { %s36_s14 = sadd.s32 1, %s7580_s11  ;;  %s33_s17 = ssub.s32 %s7584_s12, %s7852_s19 }
  0xb7   : > { %p43_p8 = scmp.ne.s32.totalorder %s7580_s11, %s7576_s10  ;;  %p34_p13 = scmp.eq.s32.totalorder %s33_s17, 0 }
  0xb8   : > { %p44_p0 = scmp.eq.s32.totalorder %s7584_s12, 0  ;;  %p49_p1 = scmp.ne.s32.totalorder %s7576_s10, %s7572_s30 }
  0xb9   : > { %p241_p3 = scmp.eq.s32.totalorder %s7677_s15, 1  ;;  %p8601_p5 = scmp.eq.s32.totalorder %s7677_s15, 0 }
  0xba   : > { %s7864_s24 = scalar_select %p34_p13, %s7580_s11, %s36_s14  }
  0xbb   : > { %p45_p2 = por %p44_p0, %p43_p8  ;;  %p7868_p7 = por %p8601_p5, %p49_p1 }
  0xbc   : > { %p7872_p6 = por %p241_p3, %p43_p8  ;;  %p247_p9 = scmp.eq.s32.totalorder %s5525_s27, 1 }
  0xbd   : > { %p6437_p4 = scmp.lt.s32.totalorder %s7584_s12, 2  ;;  %s351_s26 = sand.u32 1, %s7580_s11  }
  0xbe   : > { %s8603_s22 = scalar_select %p7872_p6, 1, 0 }
  0xbf   : > { %p7878_p10 = por %p247_p9, %p49_p1  ;;  %s6365_s29 = smul.u32 80, %s351_s26 }
  0xc0   : > { %p7882_p11 = pnand %p6437_p4, %p45_p2  ;;  %s6366_s23 = smul.u32 1280, %s7584_s12 }
  0xc1   : > { %s8604_s28 = scalar_select %p7878_p10, 1, 0 }
  0xc2   : > { %s7890_s20 = scalar_lea.hbm %s8579_s0, %s6366_s23  ;;  %s355_s21 = scalar_lea.vmem [#allocation2], %s6365_s29 }
  0xc3   : > { %s362_s27 = sshll.u32 %s355_s21, 4  ;;  %s7894_s14 = scalar_lea.sflag [#allocation3], %s351_s26  ;;  %s7892_s27 = int_to_ptr.vmem [resolvable:$true] %s362_s27 }
  0xc4   : > { %s7472_s17 = scalar_lea.hbm %s7890_s20, 1280  ;;  %p7474_p8 = pneg %p7882_p11 }
  0xc5   : > { %p7473_p12 = scmp.ne.s32.totalorder %s7890_s20, %s7472_s17  ;;  %s7477_s13 = scalar_lea.hbm %s8579_s0, 2560 }
  0xc6   : > { %p7478_p1 = scmp.lt.u32.totalorder %s7890_s20, %s8579_s0  ;;  %p7479_p3 = scmp.lt.u32.totalorder %s7477_s13, %s7472_s17 }
  0xc7   : > { %p7475_p13 = pnand %p7474_p8, %p7473_p12  ;;  %p7481_p5 = scmp.lt.u32.totalorder %s7472_s17, %s7890_s20 }
  0xc8   : > { %p7480_p2 = por %p7479_p3, %p7478_p1 }
  0xc9   : > { %p7476_p0 = pneg %p7475_p13 }
  0xca   : > { %p7482_p9 = por %p7481_p5, %p7480_p2 }
  0xcc   : > { %p7483_p4 = pnand %p7482_p9, %p7476_p0 }
  0xce   : > { %7486 = shalt.err (!%p7483_p4)
}
  0xcf   : > { %s7487_s26 = scalar_lea.vmem %s7892_s27, 1280  ;;  %s7597_s29 = smov [#allocation2]  }
  0xd0   : > { %p7488_p12 = scmp.ne.s32.totalorder %s7892_s27, %s7487_s26  ;;  %s7492_s21 = sshll.u32 %s7597_s29, 4  ;;  %s7493_s21 = int_to_ptr.vmem [resolvable:$false] %s7492_s21 }
  0xd1   : > { %s7494_s1 = scalar_lea.vmem %s7493_s21, 2560  ;;  %p7495_p6 = scmp.lt.s32.totalorder %s7892_s27, %s7493_s21 }
  0xd2   : > { %p7490_p13 = pnand %p7488_p12, %p7474_p8  ;;  %p7496_p1 = scmp.lt.s32.totalorder %s7494_s1, %s7487_s26 }
  0xd4   : > { %p7491_p10 = pneg %p7490_p13  ;;  %p7497_p3 = por %p7496_p1, %p7495_p6 }
  0xd6   : > { %p7498_p2 = pnand %p7497_p3, %p7491_p10 }
  0xd8   : > { %7501 = shalt.err (!%p7498_p2)
}
  0xd9   : > { %s7598_s2 = smov 640   ;;  %s7599_s17 = smov 40  }
  0xda   : > { %6425 = dma.hbm_to_vmem [thread:$0]  (!%p7882_p11), %s7890_s20, 1280, %s7892_s27, %s7894_s14, %s7598_s2, %s7598_s2, %s7599_s17  }
  0xdb   : > { %p8606_p8 = scmp.ne.s32.totalorder %s8596_s16, 0 }
  0xdc   : > { %s7925_s23 = sand.u32 (!%p8606_p8), 1, %s7576_s10  }
  0xdd   : > { %374 = sbr.rel (%p8606_p8) target bundleno = 1431 (0x597), region = 56  ;;  %s377_s13 = scalar_lea.sflag (!%p8606_p8), [#allocation3], %s7925_s23 }
  0xde   : > { %s6367_s9 = smul.u32 (!%p8606_p8), 80, %s7925_s23 }
  0xe0   : > { %s7929_s26 = scalar_lea.vmem (!%p8606_p8), [#allocation2], %s6367_s9 }
  0xe4   : > { %7547 = dma.done.wait (%p7868_p7), %s377_s13, 1280  }
  0xe5   : > { %7549 = vsyncadd (%p7868_p7), %s377_s13, 4294966016  ;;  %p8607_p6 = scmp.eq.s32.totalorder %s7677_s15, 0 }
  0xe7   : > { %7551 = dma.done.wait (%p8607_p6), [#allocation6], 51280   ;;  %p8608_p10 = pmov %p8607_p6 }
  0xe8   : > { %p8609_p11 = pmov %p8607_p6 }
  0xe9   : > { %7553 = vsyncadd (%p8608_p10), [#allocation6], 4294916016 }
  0xea   : > { %7555 = dma.done.wait (%p8609_p11), [#allocation9], 128   ;;  %p8610_p0 = pmov %p8607_p6 }
  0xec   : > { %7557 = vsyncadd (%p8610_p0), [#allocation9], 4294967168  ;;  %p8611_p5 = pmov %p8610_p0 }
  0xed   : > { %p8612_p9 = pmov %p8610_p0 }
  0xee   : > { %7559 = dma.done.wait (%p8611_p5), [#allocation12], 2608  }
  0xef   : > { %7561 = vsyncadd (%p8612_p9), [#allocation12], 4294964688  ;;  %p8613_p7 = pmov %p8610_p0 }
  0xf0   : > { %p8614_p4 = pmov %p8610_p0 }
  0xf1   : > { %7563 = dma.done.wait (%p8613_p7), [#allocation15], 16  }
  0xf2   : > { %7565 = vsyncadd (%p8614_p4), [#allocation15], 4294967280  ;;  %v6496_v0 = vld [vmem:[#allocation5 + $0x4] ss:$20 sps:$4 sm:$0xff]   ;;  %v6498_v1 = vld [vmem:[#allocation5 + $0xc] ss:$20 sps:$4 sm:$0xff]  }
  0xf3   : > { %3064 = vmatprep.subr.bf16.mxu0 %v6496_v0  ;;  %v6500_v2 = vld [vmem:[#allocation5] ss:$20 sps:$4 sm:$0xff]   ;;  %v6501_v3 = vld [vmem:[#allocation5 + $0x8] ss:$20 sps:$4 sm:$0xff]   ;;  %3279 = vmatprep.subr.bf16.mxu1 %v6498_v1  ;;  %v6507_v7 = vld [vmem:[#allocation5 + $0x30] ss:$20 sps:$4 sm:$0xff]  }
  0xf4   : > { %v6502_v4 = vld [vmem:[#allocation5 + $0x2c] ss:$20 sps:$4 sm:$0xff]   ;;  %3065 = vmatpush1.bf16.msra.mxu0 %v6500_v2  ;;  %3280 = vmatpush1.bf16.msra.mxu1 %v6501_v3  ;;  %v6504_v5 = vld [vmem:[#allocation5 + $0x34] ss:$20 sps:$4 sm:$0xff]   ;;  %v6510_v9 = vld [vmem:[#allocation5 + $0x5c] ss:$20 sps:$4 sm:$0xff]  }
  0xf5   : > { %v6506_v6 = vld [vmem:[#allocation5 + $0x28] ss:$20 sps:$4 sm:$0xff]   ;;  %3066 = vmatprep.subr.bf16.mxu0 %v6502_v4  ;;  %3281 = vmatprep.subr.bf16.mxu1 %v6504_v5  ;;  %v6512_v10 = vld [vmem:[#allocation5 + $0x50] ss:$20 sps:$4 sm:$0xff]   ;;  %v6513_v11 = vld [vmem:[#allocation5 + $0x58] ss:$20 sps:$4 sm:$0xff]  }
  0xf6   : > { %v6508_v8 = vld [vmem:[#allocation5 + $0x54] ss:$20 sps:$4 sm:$0xff]   ;;  %v6514_v12 = vld [vmem:[#allocation5 + $0x7c] ss:$20 sps:$4 sm:$0xff]   ;;  %v6516_v13 = vld [vmem:[#allocation5 + $0x84] ss:$20 sps:$4 sm:$0xff]  }
  0xf7   : > { %v6518_v14 = vld [vmem:[#allocation5 + $0x78] ss:$20 sps:$4 sm:$0xff]   ;;  %v6519_v15 = vld [vmem:[#allocation5 + $0x80] ss:$20 sps:$4 sm:$0xff]   ;;  %v6525_v19 = vld [vmem:[#allocation5 + $0xa8] ss:$20 sps:$4 sm:$0xff]  }
  0xf8   : > { %3067 = vmatpush1.bf16.msra.mxu0 %v6506_v6  ;;  %3282 = vmatpush1.bf16.msra.mxu1 %v6507_v7  ;;  %v6520_v16 = vld [vmem:[#allocation5 + $0xa4] ss:$20 sps:$4 sm:$0xff]   ;;  %v6522_v17 = vld [vmem:[#allocation5 + $0xac] ss:$20 sps:$4 sm:$0xff]   ;;  %v6528_v21 = vld [vmem:[#allocation5 + $0xd4] ss:$20 sps:$4 sm:$0xff]  }
  0xf9   : > { %3068 = vmatprep.subr.bf16.mxu0 %v6508_v8  ;;  %3283 = vmatprep.subr.bf16.mxu1 %v6510_v9  ;;  %v6524_v18 = vld [vmem:[#allocation5 + $0xa0] ss:$20 sps:$4 sm:$0xff]   ;;  %v6530_v22 = vld [vmem:[#allocation5 + $0xc8] ss:$20 sps:$4 sm:$0xff]   ;;  %v6531_v23 = vld [vmem:[#allocation5 + $0xd0] ss:$20 sps:$4 sm:$0xff]  }
  0xfa   : > { %v6526_v20 = vld [vmem:[#allocation5 + $0xcc] ss:$20 sps:$4 sm:$0xff]   ;;  %v6532_v24 = vld [vmem:[#allocation5 + $0xf4] ss:$20 sps:$4 sm:$0xff]   ;;  %v6534_v25 = vld [vmem:[#allocation5 + $0xfc] ss:$20 sps:$4 sm:$0xff]  }
  0xfb   : > { %v6536_v26 = vld [vmem:[#allocation5 + $0xf0] ss:$20 sps:$4 sm:$0xff]   ;;  %v6537_v27 = vld [vmem:[#allocation5 + $0xf8] ss:$20 sps:$4 sm:$0xff]   ;;  %v6543_v31 = vld [vmem:[#allocation5 + $0x120] ss:$20 sps:$4 sm:$0xff]  }
  0xfc   : > { %3069 = vmatpush1.bf16.msra.mxu0 %v6512_v10  ;;  %3284 = vmatpush1.bf16.msra.mxu1 %v6513_v11  ;;  %v6538_v28 = vld [vmem:[#allocation5 + $0x11c] ss:$20 sps:$4 sm:$0xff]   ;;  %v6540_v29 = vld [vmem:[#allocation5 + $0x124] ss:$20 sps:$4 sm:$0xff]   ;;  %v6546_v33 = vld [vmem:[#allocation5 + $0x14c] ss:$20 sps:$4 sm:$0xff]  }
  0xfd   : > { %3070 = vmatprep.subr.bf16.mxu0 %v6514_v12  ;;  %3285 = vmatprep.subr.bf16.mxu1 %v6516_v13  ;;  %v6542_v30 = vld [vmem:[#allocation5 + $0x118] ss:$20 sps:$4 sm:$0xff]   ;;  %v6548_v34 = vld [vmem:[#allocation5 + $0x140] ss:$20 sps:$4 sm:$0xff]   ;;  %v6549_v35 = vld [vmem:[#allocation5 + $0x148] ss:$20 sps:$4 sm:$0xff]  }
  0xfe   : > { %v6544_v32 = vld [vmem:[#allocation5 + $0x144] ss:$20 sps:$4 sm:$0xff]   ;;  %v6550_v36 = vld [vmem:[#allocation5 + $0x16c] ss:$20 sps:$4 sm:$0xff]   ;;  %v6552_v37 = vld [vmem:[#allocation5 + $0x174] ss:$20 sps:$4 sm:$0xff]  }
  0xff   : > { %v6554_v38 = vld [vmem:[#allocation5 + $0x168] ss:$20 sps:$4 sm:$0xff]   ;;  %v6555_v39 = vld [vmem:[#allocation5 + $0x170] ss:$20 sps:$4 sm:$0xff]   ;;  %v6561_v43 = vld [vmem:[#allocation5 + $0x198] ss:$20 sps:$4 sm:$0xff]  }
 0x100   : > { %3071 = vmatpush1.bf16.msra.mxu0 %v6518_v14  ;;  %3286 = vmatpush1.bf16.msra.mxu1 %v6519_v15  ;;  %v6556_v40 = vld [vmem:[#allocation5 + $0x194] ss:$20 sps:$4 sm:$0xff]   ;;  %v6558_v41 = vld [vmem:[#allocation5 + $0x19c] ss:$20 sps:$4 sm:$0xff]   ;;  %v6564_v45 = vld [vmem:[#allocation5 + $0x1c4] ss:$20 sps:$4 sm:$0xff]  }
 0x101   : > { %3072 = vmatprep.subr.bf16.mxu0 %v6520_v16  ;;  %3287 = vmatprep.subr.bf16.mxu1 %v6522_v17  ;;  %v6560_v42 = vld [vmem:[#allocation5 + $0x190] ss:$20 sps:$4 sm:$0xff]   ;;  %v6566_v46 = vld [vmem:[#allocation5 + $0x1b8] ss:$20 sps:$4 sm:$0xff]   ;;  %v6567_v48 = vld [vmem:[#allocation5 + $0x1c0] ss:$20 sps:$4 sm:$0xff]  }
 0x102   : > { %v6562_v44 = vld [vmem:[#allocation5 + $0x1bc] ss:$20 sps:$4 sm:$0xff]   ;;  %v6568_v49 = vld [vmem:[#allocation5 + $0x1e4] ss:$20 sps:$4 sm:$0xff]   ;;  %v6570_v50 = vld [vmem:[#allocation5 + $0x1ec] ss:$20 sps:$4 sm:$0xff]  }
 0x103   : > { %v6592_v47 = vld [vmem:[%s7929_s26 + $0x4] ss:$40 sps:$4 sm:$0xff]   ;;  %v6600_v5 = vld [vmem:[%s7929_s26] ss:$40 sps:$4 sm:$0xff]   ;;  %vm7601_vm0 = vmmov 0   ;;  %vm4992_vm1 = vcmask 523264  }
 0x104   : > { %3073 = vmatpush1.bf16.msra.mxu0 %v6524_v18  ;;  %3288 = vmatpush1.bf16.msra.mxu1 %v6525_v19  ;;  %v6572_v51 = vld [vmem:[#allocation5 + $0x1e0] ss:$20 sps:$4 sm:$0xff]   ;;  %v6573_v52 = vld [vmem:[#allocation5 + $0x1e8] ss:$20 sps:$4 sm:$0xff]   ;;  %v6579_v56 = vld [vmem:[#allocation5 + $0x210] ss:$20 sps:$4 sm:$0xff]  }
 0x105   : > { %3074 = vmatprep.subr.bf16.mxu0 %v6526_v20  ;;  %3289 = vmatprep.subr.bf16.mxu1 %v6528_v21  ;;  %v6574_v53 = vld [vmem:[#allocation5 + $0x20c] ss:$20 sps:$4 sm:$0xff]   ;;  %v6576_v54 = vld [vmem:[#allocation5 + $0x214] ss:$20 sps:$4 sm:$0xff]   ;;  %v6582_v58 = vld [vmem:[#allocation5 + $0x23c] ss:$20 sps:$4 sm:$0xff]  }
 0x106   : > { %3096 = vmatprep.mubr.bf16.mxu0 %v6592_v47  ;;  %3311 = vmatprep.mubr.bf16.mxu1 %v6592_v47  ;;  %v6578_v55 = vld [vmem:[#allocation5 + $0x208] ss:$20 sps:$4 sm:$0xff]   ;;  %v6584_v59 = vld [vmem:[#allocation5 + $0x230] ss:$20 sps:$4 sm:$0xff]   ;;  %v6585_v60 = vld [vmem:[#allocation5 + $0x238] ss:$20 sps:$4 sm:$0xff]  }
 0x107   : > { %v6580_v57 = vld [vmem:[#allocation5 + $0x234] ss:$20 sps:$4 sm:$0xff]   ;;  %v6586_v61 = vld [vmem:[#allocation5 + $0x25c] ss:$20 sps:$4 sm:$0xff]   ;;  %v6588_v62 = vld [vmem:[#allocation5 + $0x264] ss:$20 sps:$4 sm:$0xff]  }
 0x108   : > { %3075 = vmatpush1.bf16.msra.mxu0 %v6530_v22  ;;  %3290 = vmatpush1.bf16.msra.mxu1 %v6531_v23  ;;  %v6590_v63 = vld [vmem:[#allocation5 + $0x258] ss:$20 sps:$4 sm:$0xff]   ;;  %v6591_v0 = vld [vmem:[#allocation5 + $0x260] ss:$20 sps:$4 sm:$0xff]   ;;  %v6597_v4 = vld [vmem:[#allocation5 + $0x288] ss:$20 sps:$4 sm:$0xff]  }
 0x109   : > { %3076 = vmatprep.subr.bf16.mxu0 %v6532_v24  ;;  %3291 = vmatprep.subr.bf16.mxu1 %v6534_v25  ;;  %v6596_v1 = vld [vmem:[#allocation5 + $0x284] ss:$20 sps:$4 sm:$0xff]   ;;  %v6599_v2 = vld [vmem:[#allocation5 + $0x28c] ss:$20 sps:$4 sm:$0xff]   ;;  %v6606_v7 = vld [vmem:[#allocation5 + $0x2b4] ss:$20 sps:$4 sm:$0xff]  }
 0x10a   : > { %v6594_v3 = vld [vmem:[#allocation5 + $0x280] ss:$20 sps:$4 sm:$0xff]   ;;  %v6601_v8 = vld [vmem:[#allocation5 + $0x2a8] ss:$20 sps:$4 sm:$0xff]   ;;  %v6604_v9 = vld [vmem:[#allocation5 + $0x2b0] ss:$20 sps:$4 sm:$0xff]  }
 0x10b   : > { %v6603_v6 = vld [vmem:[#allocation5 + $0x2ac] ss:$20 sps:$4 sm:$0xff]   ;;  %v6609_v10 = vld [vmem:[#allocation5 + $0x2d4] ss:$20 sps:$4 sm:$0xff]   ;;  %v6612_v11 = vld [vmem:[#allocation5 + $0x2dc] ss:$20 sps:$4 sm:$0xff]  }
 0x10c   : > { %3077 = vmatpush1.bf16.msra.mxu0 %v6536_v26  ;;  %3292 = vmatpush1.bf16.msra.mxu1 %v6537_v27  ;;  %v6607_v12 = vld [vmem:[#allocation5 + $0x2d0] ss:$20 sps:$4 sm:$0xff]   ;;  %v6610_v13 = vld [vmem:[#allocation5 + $0x2d8] ss:$20 sps:$4 sm:$0xff]   ;;  %v6616_v17 = vld [vmem:[#allocation5 + $0x300] ss:$20 sps:$4 sm:$0xff]  }
 0x10d   : > { %3078 = vmatprep.subr.bf16.mxu0 %v6538_v28  ;;  %3293 = vmatprep.subr.bf16.mxu1 %v6540_v29  ;;  %v6615_v14 = vld [vmem:[#allocation5 + $0x2fc] ss:$20 sps:$4 sm:$0xff]   ;;  %v6618_v15 = vld [vmem:[#allocation5 + $0x304] ss:$20 sps:$4 sm:$0xff]   ;;  %v6624_v19 = vld [vmem:[#allocation5 + $0x32c] ss:$20 sps:$4 sm:$0xff]  }
 0x10e   : > { %v6613_v16 = vld [vmem:[#allocation5 + $0x2f8] ss:$20 sps:$4 sm:$0xff]   ;;  %v6619_v20 = vld [vmem:[#allocation5 + $0x320] ss:$20 sps:$4 sm:$0xff]   ;;  %v6622_v21 = vld [vmem:[#allocation5 + $0x328] ss:$20 sps:$4 sm:$0xff]  }
 0x10f   : > { %v6621_v18 = vld [vmem:[#allocation5 + $0x324] ss:$20 sps:$4 sm:$0xff]   ;;  %v6627_v22 = vld [vmem:[#allocation5 + $0x34c] ss:$20 sps:$4 sm:$0xff]   ;;  %v6630_v23 = vld [vmem:[#allocation5 + $0x354] ss:$20 sps:$4 sm:$0xff]  }
 0x110   : > { %3079 = vmatpush1.bf16.msra.mxu0 %v6542_v30  ;;  %3294 = vmatpush1.bf16.msra.mxu1 %v6543_v31  ;;  %v6625_v24 = vld [vmem:[#allocation5 + $0x348] ss:$20 sps:$4 sm:$0xff]   ;;  %v6628_v25 = vld [vmem:[#allocation5 + $0x350] ss:$20 sps:$4 sm:$0xff]   ;;  %v6634_v29 = vld [vmem:[#allocation5 + $0x378] ss:$20 sps:$4 sm:$0xff]  }
 0x111   : > { %3080 = vmatprep.subr.bf16.mxu0 %v6544_v32  ;;  %3295 = vmatprep.subr.bf16.mxu1 %v6546_v33  ;;  %v6633_v26 = vld [vmem:[#allocation5 + $0x374] ss:$20 sps:$4 sm:$0xff]   ;;  %v6636_v27 = vld [vmem:[#allocation5 + $0x37c] ss:$20 sps:$4 sm:$0xff]   ;;  %v6642_v32 = vld [vmem:[#allocation5 + $0x3a4] ss:$20 sps:$4 sm:$0xff]  }
 0x112   : > { %v6631_v28 = vld [vmem:[#allocation5 + $0x370] ss:$20 sps:$4 sm:$0xff]   ;;  %v6637_v33 = vld [vmem:[#allocation5 + $0x398] ss:$20 sps:$4 sm:$0xff]   ;;  %s5544_s18 = sshll.u32 %s7925_s23, 4  ;;  %s6102_s14 = sshll.u32 %s7677_s15, 8 }
 0x113   : > { %v6693_v30 = vld [vmem:[%s7929_s26 + $0xc] ss:$40 sps:$4 sm:$0xff]   ;;  %s442_s20 = scalar_lea.vmem [#allocation16], %s5544_s18  ;;  %s8615_s1 = sld [smem:[#allocation25_spill]] }
 0x114   : > { %3081 = vmatpush1.bf16.msra.mxu0 %v6548_v34  ;;  %3296 = vmatpush1.bf16.msra.mxu1 %v6549_v35  ;;  %v6639_v31 = vld [vmem:[#allocation5 + $0x39c] ss:$20 sps:$4 sm:$0xff]   ;;  %v6640_v34 = vld [vmem:[#allocation5 + $0x3a0] ss:$20 sps:$4 sm:$0xff]   ;;  %v6645_v35 = vld [vmem:[#allocation5 + $0x3c4] ss:$20 sps:$4 sm:$0xff]  }
 0x115   : > { %3082 = vmatprep.subr.bf16.mxu0 %v6550_v36  ;;  %3297 = vmatprep.subr.bf16.mxu1 %v6552_v37  ;;  %v6648_v36 = vld [vmem:[#allocation5 + $0x3cc] ss:$20 sps:$4 sm:$0xff]   ;;  %v6663_v47 = vld [vmem:[#allocation5 + $0x43c] ss:$20 sps:$4 sm:$0xff]   ;;  %s5385_s27 = sshll.u32 %s442_s20, 4  ;;  %s5372_s15 = scalar_lea.sflag [#allocation4], %s7925_s23  ;;  %s8530_s27 = int_to_ptr.vmem [resolvable:$true] %s5385_s27 }
 0x116   : > { %v6643_v37 = vld [vmem:[#allocation5 + $0x3c0] ss:$20 sps:$4 sm:$0xff]   ;;  %s7502_s17 = scalar_lea.vmem %s8530_s27, 256  ;;  %p8616_p13 = scmp.ne.s32.totalorder %s8603_s22, 0 }
 0x117   : > { %p7503_p12 = scmp.ne.s32.totalorder %s8530_s27, %s7502_s17  ;;  %s7603_s9 = smov [#allocation16]  }
 0x118   : > { %3083 = vmatpush1.bf16.msra.mxu0 %v6554_v38  ;;  %3298 = vmatpush1.bf16.msra.mxu1 %v6555_v39  ;;  %v6646_v38 = vld [vmem:[#allocation5 + $0x3c8] ss:$20 sps:$4 sm:$0xff]   ;;  %v6651_v39 = vld [vmem:[#allocation5 + $0x3ec] ss:$20 sps:$4 sm:$0xff]   ;;  %s7506_s13 = sshll.u32 %s7603_s9, 4  ;;  %s7507_s13 = int_to_ptr.vmem [resolvable:$false] %s7506_s13 }
 0x119   : > { %3084 = vmatprep.subr.bf16.mxu0 %v6556_v40  ;;  %3299 = vmatprep.subr.bf16.mxu1 %v6558_v41  ;;  %v6654_v40 = vld [vmem:[#allocation5 + $0x3f4] ss:$20 sps:$4 sm:$0xff]   ;;  %s8535_s2 = scalar_lea.hbm %s8615_s1, %s6102_s14  ;;  %p7504_p1 = pnand %p7503_p12, %p8616_p13 }
 0x11a   : > { %v6649_v41 = vld [vmem:[#allocation5 + $0x3e8] ss:$20 sps:$4 sm:$0xff]   ;;  %p7509_p2 = scmp.lt.s32.totalorder %s8530_s27, %s7507_s13 }
 0x11b   : > { %p7505_p3 = pneg %p7504_p1 }
 0x11c   : > { %3085 = vmatpush1.bf16.msra.mxu0 %v6560_v42  ;;  %3300 = vmatpush1.bf16.msra.mxu1 %v6561_v43  ;;  %v6652_v42 = vld [vmem:[#allocation5 + $0x3f0] ss:$20 sps:$4 sm:$0xff]   ;;  %v6657_v43 = vld [vmem:[#allocation5 + $0x414] ss:$20 sps:$4 sm:$0xff]  }
 0x11d   : > { %3086 = vmatprep.subr.bf16.mxu0 %v6562_v44  ;;  %3301 = vmatprep.subr.bf16.mxu1 %v6564_v45  ;;  %v6660_v44 = vld [vmem:[#allocation5 + $0x41c] ss:$20 sps:$4 sm:$0xff]  }
 0x11e   : > { %v6655_v45 = vld [vmem:[#allocation5 + $0x410] ss:$20 sps:$4 sm:$0xff]  }
 0x120   : > { %3087 = vmatpush1.bf16.msra.mxu0 %v6566_v46  ;;  %3302 = vmatpush1.bf16.msra.mxu1 %v6567_v48  ;;  %v6658_v46 = vld [vmem:[#allocation5 + $0x418] ss:$20 sps:$4 sm:$0xff]  }
 0x121   : > { %3088 = vmatprep.subr.bf16.mxu0 %v6568_v49  ;;  %3303 = vmatprep.subr.bf16.mxu1 %v6570_v50  ;;  %v6666_v48 = vld [vmem:[#allocation5 + $0x444] ss:$20 sps:$4 sm:$0xff]   ;;  %v6664_v50 = vld [vmem:[#allocation5 + $0x440] ss:$20 sps:$4 sm:$0xff]  }
 0x122   : > { %v6661_v49 = vld [vmem:[#allocation5 + $0x438] ss:$20 sps:$4 sm:$0xff]  }
 0x124   : > { %3089 = vmatpush1.bf16.msra.mxu0 %v6572_v51  ;;  %3304 = vmatpush1.bf16.msra.mxu1 %v6573_v52  ;;  %v6669_v51 = vld [vmem:[#allocation5 + $0x464] ss:$20 sps:$4 sm:$0xff]   ;;  %v6672_v52 = vld [vmem:[#allocation5 + $0x46c] ss:$20 sps:$4 sm:$0xff]  }
 0x125   : > { %3090 = vmatprep.subr.bf16.mxu0 %v6574_v53  ;;  %3305 = vmatprep.subr.bf16.mxu1 %v6576_v54  ;;  %v6667_v53 = vld [vmem:[#allocation5 + $0x460] ss:$20 sps:$4 sm:$0xff]   ;;  %v6670_v54 = vld [vmem:[#allocation5 + $0x468] ss:$20 sps:$4 sm:$0xff]  }
 0x128   : > { %3091 = vmatpush1.bf16.msra.mxu0 %v6578_v55  ;;  %3306 = vmatpush1.bf16.msra.mxu1 %v6579_v56  ;;  %v6675_v55 = vld [vmem:[#allocation5 + $0x48c] ss:$20 sps:$4 sm:$0xff]   ;;  %v6678_v56 = vld [vmem:[#allocation5 + $0x494] ss:$20 sps:$4 sm:$0xff]  }
 0x129   : > { %3092 = vmatprep.subr.bf16.mxu0 %v6580_v57  ;;  %3307 = vmatprep.subr.bf16.mxu1 %v6582_v58  ;;  %v6673_v57 = vld [vmem:[#allocation5 + $0x488] ss:$20 sps:$4 sm:$0xff]   ;;  %v6676_v58 = vld [vmem:[#allocation5 + $0x490] ss:$20 sps:$4 sm:$0xff]  }
 0x12c   : > { %3093 = vmatpush1.bf16.msra.mxu0 %v6584_v59  ;;  %3308 = vmatpush1.bf16.msra.mxu1 %v6585_v60  ;;  %v6681_v59 = vld [vmem:[#allocation5 + $0x4b4] ss:$20 sps:$4 sm:$0xff]   ;;  %v6684_v60 = vld [vmem:[#allocation5 + $0x4bc] ss:$20 sps:$4 sm:$0xff]  }
 0x12d   : > { %3094 = vmatprep.subr.bf16.mxu0 %v6586_v61  ;;  %3309 = vmatprep.subr.bf16.mxu1 %v6588_v62  ;;  %v6679_v61 = vld [vmem:[#allocation5 + $0x4b0] ss:$20 sps:$4 sm:$0xff]   ;;  %v6682_v62 = vld [vmem:[#allocation5 + $0x4b8] ss:$20 sps:$4 sm:$0xff]  }
 0x130   : > { %3095 = vmatpush1.bf16.msra.mxu0 %v6590_v63  ;;  %3310 = vmatpush1.bf16.msra.mxu1 %v6591_v0  ;;  %v6687_v63 = vld [vmem:[#allocation5 + $0x4dc] ss:$20 sps:$4 sm:$0xff]   ;;  %v6690_v0 = vld [vmem:[#allocation5 + $0x4e4] ss:$20 sps:$4 sm:$0xff]  }
 0x131   : > { %3107 = vmatprep.subr.bf16.mxu0 %v6596_v1  ;;  %3322 = vmatprep.subr.bf16.mxu1 %v6599_v2  ;;  %v6685_v1 = vld [vmem:[#allocation5 + $0x4d8] ss:$20 sps:$4 sm:$0xff]   ;;  %v6688_v2 = vld [vmem:[#allocation5 + $0x4e0] ss:$20 sps:$4 sm:$0xff]  }
 0x133   : > { %3097 = vmatmul.mubr.bf16.vlgmr.msra.gmra.mrb[0].mxu0 %v6600_v5  ;;  %3312 = vmatmul.mubr.bf16.vlgmr.msra.gmra.mrb[0].mxu1 %v6600_v5  ;;  %v6691_v5 = vld [vmem:[%s7929_s26 + $0x8] ss:$40 sps:$4 sm:$0xff]  }
 0x134   : > { %3108 = vmatpush1.bf16.msra.mxu0 %v6594_v3  ;;  %3323 = vmatpush1.bf16.msra.mxu1 %v6597_v4  ;;  %v6696_v3 = vld [vmem:[#allocation5 + $0x504] ss:$20 sps:$4 sm:$0xff]   ;;  %v6699_v4 = vld [vmem:[#allocation5 + $0x50c] ss:$20 sps:$4 sm:$0xff]  }
 0x135   : > { %3109 = vmatprep.subr.bf16.mxu0 %v6603_v6  ;;  %3324 = vmatprep.subr.bf16.mxu1 %v6606_v7  ;;  %v6694_v6 = vld [vmem:[#allocation5 + $0x500] ss:$20 sps:$4 sm:$0xff]   ;;  %v6697_v7 = vld [vmem:[#allocation5 + $0x508] ss:$20 sps:$4 sm:$0xff]  }
 0x136   : > { %3139 = vmatprep.mubr.bf16.mxu0 %v6693_v30  ;;  %3354 = vmatprep.mubr.bf16.mxu1 %v6693_v30  ;;  %v6735_v30 = vld [vmem:[#allocation5 + $0x5fc] ss:$20 sps:$4 sm:$0xff]  }
 0x138   : > { %3110 = vmatpush1.bf16.msra.mxu0 %v6601_v8  ;;  %3325 = vmatpush1.bf16.msra.mxu1 %v6604_v9  ;;  %v6702_v8 = vld [vmem:[#allocation5 + $0x52c] ss:$20 sps:$4 sm:$0xff]   ;;  %v6705_v9 = vld [vmem:[#allocation5 + $0x534] ss:$20 sps:$4 sm:$0xff]  }
 0x139   : > { %3111 = vmatprep.subr.bf16.mxu0 %v6609_v10  ;;  %3326 = vmatprep.subr.bf16.mxu1 %v6612_v11  ;;  %v6700_v10 = vld [vmem:[#allocation5 + $0x528] ss:$20 sps:$4 sm:$0xff]   ;;  %v6703_v11 = vld [vmem:[#allocation5 + $0x530] ss:$20 sps:$4 sm:$0xff]  }
 0x13c   : > { %3112 = vmatpush1.bf16.msra.mxu0 %v6607_v12  ;;  %3327 = vmatpush1.bf16.msra.mxu1 %v6610_v13  ;;  %v6792_v12 = vld [vmem:[%s7929_s26 + $0x14] ss:$40 sps:$4 sm:$0xff]  }
 0x13d   : > { %3113 = vmatprep.subr.bf16.mxu0 %v6615_v14  ;;  %3328 = vmatprep.subr.bf16.mxu1 %v6618_v15  ;;  %v6708_v13 = vld [vmem:[#allocation5 + $0x554] ss:$20 sps:$4 sm:$0xff]   ;;  %v6711_v14 = vld [vmem:[#allocation5 + $0x55c] ss:$20 sps:$4 sm:$0xff]  }
 0x13e   : > { %v6706_v15 = vld [vmem:[#allocation5 + $0x550] ss:$20 sps:$4 sm:$0xff]  }
 0x140   : > { %3114 = vmatpush1.bf16.msra.mxu0 %v6613_v16  ;;  %3329 = vmatpush1.bf16.msra.mxu1 %v6616_v17  ;;  %v6709_v16 = vld [vmem:[#allocation5 + $0x558] ss:$20 sps:$4 sm:$0xff]   ;;  %v6714_v17 = vld [vmem:[#allocation5 + $0x57c] ss:$20 sps:$4 sm:$0xff]  }
 0x141   : > { %3115 = vmatprep.subr.bf16.mxu0 %v6621_v18  ;;  %3330 = vmatprep.subr.bf16.mxu1 %v6624_v19  ;;  %v6717_v18 = vld [vmem:[#allocation5 + $0x584] ss:$20 sps:$4 sm:$0xff]  }
 0x142   : > { %v6712_v19 = vld [vmem:[#allocation5 + $0x578] ss:$20 sps:$4 sm:$0xff]  }
 0x144   : > { %3116 = vmatpush1.bf16.msra.mxu0 %v6619_v20  ;;  %3331 = vmatpush1.bf16.msra.mxu1 %v6622_v21  ;;  %v6715_v20 = vld [vmem:[#allocation5 + $0x580] ss:$20 sps:$4 sm:$0xff]   ;;  %v6720_v21 = vld [vmem:[#allocation5 + $0x5a4] ss:$20 sps:$4 sm:$0xff]  }
 0x145   : > { %3117 = vmatprep.subr.bf16.mxu0 %v6627_v22  ;;  %3332 = vmatprep.subr.bf16.mxu1 %v6630_v23  ;;  %v6723_v22 = vld [vmem:[#allocation5 + $0x5ac] ss:$20 sps:$4 sm:$0xff]  }
 0x146   : > { %v6718_v23 = vld [vmem:[#allocation5 + $0x5a0] ss:$20 sps:$4 sm:$0xff]  }
 0x148   : > { %3118 = vmatpush1.bf16.msra.mxu0 %v6625_v24  ;;  %3333 = vmatpush1.bf16.msra.mxu1 %v6628_v25  ;;  %v6721_v24 = vld [vmem:[#allocation5 + $0x5a8] ss:$20 sps:$4 sm:$0xff]   ;;  %v6726_v25 = vld [vmem:[#allocation5 + $0x5cc] ss:$20 sps:$4 sm:$0xff]  }
 0x149   : > { %3119 = vmatprep.subr.bf16.mxu0 %v6633_v26  ;;  %3334 = vmatprep.subr.bf16.mxu1 %v6636_v27  ;;  %v6729_v26 = vld [vmem:[#allocation5 + $0x5d4] ss:$20 sps:$4 sm:$0xff]  }
 0x14a   : > { %v6724_v27 = vld [vmem:[#allocation5 + $0x5c8] ss:$20 sps:$4 sm:$0xff]  }
 0x14c   : > { %3120 = vmatpush1.bf16.msra.mxu0 %v6631_v28  ;;  %3335 = vmatpush1.bf16.msra.mxu1 %v6634_v29  ;;  %v6727_v28 = vld [vmem:[#allocation5 + $0x5d0] ss:$20 sps:$4 sm:$0xff]   ;;  %v6732_v29 = vld [vmem:[#allocation5 + $0x5f4] ss:$20 sps:$4 sm:$0xff]  }
 0x14d   : > { %3121 = vmatprep.subr.bf16.mxu0 %v6639_v31  ;;  %3336 = vmatprep.subr.bf16.mxu1 %v6642_v32  ;;  %v6730_v31 = vld [vmem:[#allocation5 + $0x5f0] ss:$20 sps:$4 sm:$0xff]   ;;  %v6733_v32 = vld [vmem:[#allocation5 + $0x5f8] ss:$20 sps:$4 sm:$0xff]  }
 0x150   : > { %3122 = vmatpush1.bf16.msra.mxu0 %v6637_v33  ;;  %3337 = vmatpush1.bf16.msra.mxu1 %v6640_v34  ;;  %v6738_v33 = vld [vmem:[#allocation5 + $0x61c] ss:$20 sps:$4 sm:$0xff]   ;;  %v6741_v34 = vld [vmem:[#allocation5 + $0x624] ss:$20 sps:$4 sm:$0xff]  }
 0x151   : > { %3123 = vmatprep.subr.bf16.mxu0 %v6645_v35  ;;  %3338 = vmatprep.subr.bf16.mxu1 %v6648_v36  ;;  %v6736_v35 = vld [vmem:[#allocation5 + $0x618] ss:$20 sps:$4 sm:$0xff]   ;;  %v6739_v36 = vld [vmem:[#allocation5 + $0x620] ss:$20 sps:$4 sm:$0xff]  }
 0x154   : > { %3124 = vmatpush1.bf16.msra.mxu0 %v6643_v37  ;;  %3339 = vmatpush1.bf16.msra.mxu1 %v6646_v38  ;;  %v6744_v37 = vld [vmem:[#allocation5 + $0x644] ss:$20 sps:$4 sm:$0xff]   ;;  %v6747_v38 = vld [vmem:[#allocation5 + $0x64c] ss:$20 sps:$4 sm:$0xff]  }
 0x155   : > { %3125 = vmatprep.subr.bf16.mxu0 %v6651_v39  ;;  %3340 = vmatprep.subr.bf16.mxu1 %v6654_v40  ;;  %v6742_v39 = vld [vmem:[#allocation5 + $0x640] ss:$20 sps:$4 sm:$0xff]   ;;  %v6745_v40 = vld [vmem:[#allocation5 + $0x648] ss:$20 sps:$4 sm:$0xff]  }
 0x158   : > { %3126 = vmatpush1.bf16.msra.mxu0 %v6649_v41  ;;  %3341 = vmatpush1.bf16.msra.mxu1 %v6652_v42  ;;  %v6750_v41 = vld [vmem:[#allocation5 + $0x66c] ss:$20 sps:$4 sm:$0xff]   ;;  %v6753_v42 = vld [vmem:[#allocation5 + $0x674] ss:$20 sps:$4 sm:$0xff]  }
 0x159   : > { %3127 = vmatprep.subr.bf16.mxu0 %v6657_v43  ;;  %3342 = vmatprep.subr.bf16.mxu1 %v6660_v44  ;;  %v6748_v43 = vld [vmem:[#allocation5 + $0x668] ss:$20 sps:$4 sm:$0xff]   ;;  %v6751_v44 = vld [vmem:[#allocation5 + $0x670] ss:$20 sps:$4 sm:$0xff]  }
 0x15c   : > { %3128 = vmatpush1.bf16.msra.mxu0 %v6655_v45  ;;  %3343 = vmatpush1.bf16.msra.mxu1 %v6658_v46  ;;  %v6756_v45 = vld [vmem:[#allocation5 + $0x694] ss:$20 sps:$4 sm:$0xff]   ;;  %v6759_v46 = vld [vmem:[#allocation5 + $0x69c] ss:$20 sps:$4 sm:$0xff]  }
 0x15d   : > { %3129 = vmatprep.subr.bf16.mxu0 %v6663_v47  ;;  %3344 = vmatprep.subr.bf16.mxu1 %v6666_v48  ;;  %v6754_v47 = vld [vmem:[#allocation5 + $0x690] ss:$20 sps:$4 sm:$0xff]   ;;  %v6757_v48 = vld [vmem:[#allocation5 + $0x698] ss:$20 sps:$4 sm:$0xff]  }
 0x160   : > { %3130 = vmatpush1.bf16.msra.mxu0 %v6661_v49  ;;  %3345 = vmatpush1.bf16.msra.mxu1 %v6664_v50  ;;  %v6762_v49 = vld [vmem:[#allocation5 + $0x6bc] ss:$20 sps:$4 sm:$0xff]   ;;  %v6765_v50 = vld [vmem:[#allocation5 + $0x6c4] ss:$20 sps:$4 sm:$0xff]  }
 0x161   : > { %3131 = vmatprep.subr.bf16.mxu0 %v6669_v51  ;;  %3346 = vmatprep.subr.bf16.mxu1 %v6672_v52  ;;  %v6760_v51 = vld [vmem:[#allocation5 + $0x6b8] ss:$20 sps:$4 sm:$0xff]   ;;  %v6763_v52 = vld [vmem:[#allocation5 + $0x6c0] ss:$20 sps:$4 sm:$0xff]  }
 0x164   : > { %3132 = vmatpush1.bf16.msra.mxu0 %v6667_v53  ;;  %3347 = vmatpush1.bf16.msra.mxu1 %v6670_v54  ;;  %v6768_v53 = vld [vmem:[#allocation5 + $0x6e4] ss:$20 sps:$4 sm:$0xff]   ;;  %v6771_v54 = vld [vmem:[#allocation5 + $0x6ec] ss:$20 sps:$4 sm:$0xff]  }
 0x165   : > { %3133 = vmatprep.subr.bf16.mxu0 %v6675_v55  ;;  %3348 = vmatprep.subr.bf16.mxu1 %v6678_v56  ;;  %v6766_v55 = vld [vmem:[#allocation5 + $0x6e0] ss:$20 sps:$4 sm:$0xff]   ;;  %v6769_v56 = vld [vmem:[#allocation5 + $0x6e8] ss:$20 sps:$4 sm:$0xff]  }
 0x168   : > { %3134 = vmatpush1.bf16.msra.mxu0 %v6673_v57  ;;  %3349 = vmatpush1.bf16.msra.mxu1 %v6676_v58  ;;  %v6774_v57 = vld [vmem:[#allocation5 + $0x70c] ss:$20 sps:$4 sm:$0xff]   ;;  %v6777_v58 = vld [vmem:[#allocation5 + $0x714] ss:$20 sps:$4 sm:$0xff]  }
 0x169   : > { %3135 = vmatprep.subr.bf16.mxu0 %v6681_v59  ;;  %3350 = vmatprep.subr.bf16.mxu1 %v6684_v60  ;;  %v6772_v59 = vld [vmem:[#allocation5 + $0x708] ss:$20 sps:$4 sm:$0xff]   ;;  %v6775_v60 = vld [vmem:[#allocation5 + $0x710] ss:$20 sps:$4 sm:$0xff]  }
 0x16c   : > { %3136 = vmatpush1.bf16.msra.mxu0 %v6679_v61  ;;  %3351 = vmatpush1.bf16.msra.mxu1 %v6682_v62  ;;  %v6780_v61 = vld [vmem:[#allocation5 + $0x734] ss:$20 sps:$4 sm:$0xff]   ;;  %v6783_v62 = vld [vmem:[#allocation5 + $0x73c] ss:$20 sps:$4 sm:$0xff]  }
 0x16d   : > { %3137 = vmatprep.subr.bf16.mxu0 %v6687_v63  ;;  %3352 = vmatprep.subr.bf16.mxu1 %v6690_v0  ;;  %v6778_v63 = vld [vmem:[#allocation5 + $0x730] ss:$20 sps:$4 sm:$0xff]   ;;  %v6781_v0 = vld [vmem:[#allocation5 + $0x738] ss:$20 sps:$4 sm:$0xff]  }
 0x170   : > { %3138 = vmatpush1.bf16.msra.mxu0 %v6685_v1  ;;  %3353 = vmatpush1.bf16.msra.mxu1 %v6688_v2  ;;  %v6786_v1 = vld [vmem:[#allocation5 + $0x75c] ss:$20 sps:$4 sm:$0xff]   ;;  %v6789_v2 = vld [vmem:[#allocation5 + $0x764] ss:$20 sps:$4 sm:$0xff]  }
 0x171   : > { %3150 = vmatprep.subr.bf16.mxu0 %v6696_v3  ;;  %3365 = vmatprep.subr.bf16.mxu1 %v6699_v4  ;;  %v6784_v3 = vld [vmem:[#allocation5 + $0x758] ss:$20 sps:$4 sm:$0xff]   ;;  %v6787_v4 = vld [vmem:[#allocation5 + $0x760] ss:$20 sps:$4 sm:$0xff]  }
 0x173   : > { %3140 = vmatmul.mubr.bf16.vlgmr.msra.gmra.mrb[0].mxu0 %v6691_v5  ;;  %3355 = vmatmul.mubr.bf16.vlgmr.msra.gmra.mrb[0].mxu1 %v6691_v5  ;;  %v6795_v5 = vld [vmem:[#allocation5 + $0x784] ss:$20 sps:$4 sm:$0xff]  }
 0x174   : > { %3151 = vmatpush1.bf16.msra.mxu0 %v6694_v6  ;;  %3366 = vmatpush1.bf16.msra.mxu1 %v6697_v7  ;;  %v6798_v6 = vld [vmem:[#allocation5 + $0x78c] ss:$20 sps:$4 sm:$0xff]  }
 0x175   : > { %3152 = vmatprep.subr.bf16.mxu0 %v6702_v8  ;;  %3367 = vmatprep.subr.bf16.mxu1 %v6705_v9  ;;  %v6790_v7 = vld [vmem:[%s7929_s26 + $0x10] ss:$40 sps:$4 sm:$0xff]  }
 0x176   : > { %3182 = vmatprep.mubr.bf16.mxu0 %v6792_v12  ;;  %3397 = vmatprep.mubr.bf16.mxu1 %v6792_v12  ;;  %v6793_v8 = vld [vmem:[#allocation5 + $0x780] ss:$20 sps:$4 sm:$0xff]   ;;  %v6796_v9 = vld [vmem:[#allocation5 + $0x788] ss:$20 sps:$4 sm:$0xff]  }
 0x177   : > { %v6891_v12 = vld [vmem:[%s7929_s26 + $0x1c] ss:$40 sps:$4 sm:$0xff]  }
 0x178   : > { %3153 = vmatpush1.bf16.msra.mxu0 %v6700_v10  ;;  %3368 = vmatpush1.bf16.msra.mxu1 %v6703_v11  ;;  %v6801_v10 = vld [vmem:[#allocation5 + $0x7ac] ss:$20 sps:$4 sm:$0xff]   ;;  %v6804_v11 = vld [vmem:[#allocation5 + $0x7b4] ss:$20 sps:$4 sm:$0xff]  }
 0x179   : > { %3154 = vmatprep.subr.bf16.mxu0 %v6708_v13  ;;  %3369 = vmatprep.subr.bf16.mxu1 %v6711_v14  ;;  %v6799_v13 = vld [vmem:[#allocation5 + $0x7a8] ss:$20 sps:$4 sm:$0xff]   ;;  %v6802_v14 = vld [vmem:[#allocation5 + $0x7b0] ss:$20 sps:$4 sm:$0xff]  }
 0x17c   : > { %3155 = vmatpush1.bf16.msra.mxu0 %v6706_v15  ;;  %3370 = vmatpush1.bf16.msra.mxu1 %v6709_v16  ;;  %v6807_v15 = vld [vmem:[#allocation5 + $0x7d4] ss:$20 sps:$4 sm:$0xff]   ;;  %v6810_v16 = vld [vmem:[#allocation5 + $0x7dc] ss:$20 sps:$4 sm:$0xff]  }
 0x17d   : > { %3156 = vmatprep.subr.bf16.mxu0 %v6714_v17  ;;  %3371 = vmatprep.subr.bf16.mxu1 %v6717_v18  ;;  %v6805_v17 = vld [vmem:[#allocation5 + $0x7d0] ss:$20 sps:$4 sm:$0xff]   ;;  %v6808_v18 = vld [vmem:[#allocation5 + $0x7d8] ss:$20 sps:$4 sm:$0xff]  }
 0x180   : > { %3157 = vmatpush1.bf16.msra.mxu0 %v6712_v19  ;;  %3372 = vmatpush1.bf16.msra.mxu1 %v6715_v20  ;;  %v6813_v19 = vld [vmem:[#allocation5 + $0x7fc] ss:$20 sps:$4 sm:$0xff]   ;;  %v6816_v20 = vld [vmem:[#allocation5 + $0x804] ss:$20 sps:$4 sm:$0xff]  }
 0x181   : > { %3158 = vmatprep.subr.bf16.mxu0 %v6720_v21  ;;  %3373 = vmatprep.subr.bf16.mxu1 %v6723_v22  ;;  %v6811_v21 = vld [vmem:[#allocation5 + $0x7f8] ss:$20 sps:$4 sm:$0xff]   ;;  %v6814_v22 = vld [vmem:[#allocation5 + $0x800] ss:$20 sps:$4 sm:$0xff]  }
 0x184   : > { %3159 = vmatpush1.bf16.msra.mxu0 %v6718_v23  ;;  %3374 = vmatpush1.bf16.msra.mxu1 %v6721_v24  ;;  %v6819_v23 = vld [vmem:[#allocation5 + $0x824] ss:$20 sps:$4 sm:$0xff]   ;;  %v6822_v24 = vld [vmem:[#allocation5 + $0x82c] ss:$20 sps:$4 sm:$0xff]  }
 0x185   : > { %3160 = vmatprep.subr.bf16.mxu0 %v6726_v25  ;;  %3375 = vmatprep.subr.bf16.mxu1 %v6729_v26  ;;  %v6817_v25 = vld [vmem:[#allocation5 + $0x820] ss:$20 sps:$4 sm:$0xff]   ;;  %v6820_v26 = vld [vmem:[#allocation5 + $0x828] ss:$20 sps:$4 sm:$0xff]  }
 0x188   : > { %3161 = vmatpush1.bf16.msra.mxu0 %v6724_v27  ;;  %3376 = vmatpush1.bf16.msra.mxu1 %v6727_v28  ;;  %v6825_v27 = vld [vmem:[#allocation5 + $0x84c] ss:$20 sps:$4 sm:$0xff]   ;;  %v6828_v28 = vld [vmem:[#allocation5 + $0x854] ss:$20 sps:$4 sm:$0xff]  }
 0x189   : > { %3162 = vmatprep.subr.bf16.mxu0 %v6732_v29  ;;  %3377 = vmatprep.subr.bf16.mxu1 %v6735_v30  ;;  %v6823_v29 = vld [vmem:[#allocation5 + $0x848] ss:$20 sps:$4 sm:$0xff]   ;;  %v6826_v30 = vld [vmem:[#allocation5 + $0x850] ss:$20 sps:$4 sm:$0xff]  }
 0x18c   : > { %3163 = vmatpush1.bf16.msra.mxu0 %v6730_v31  ;;  %3378 = vmatpush1.bf16.msra.mxu1 %v6733_v32  ;;  %v6831_v31 = vld [vmem:[#allocation5 + $0x874] ss:$20 sps:$4 sm:$0xff]   ;;  %v6834_v32 = vld [vmem:[#allocation5 + $0x87c] ss:$20 sps:$4 sm:$0xff]  }
 0x18d   : > { %3164 = vmatprep.subr.bf16.mxu0 %v6738_v33  ;;  %3379 = vmatprep.subr.bf16.mxu1 %v6741_v34  ;;  %v6829_v33 = vld [vmem:[#allocation5 + $0x870] ss:$20 sps:$4 sm:$0xff]   ;;  %v6832_v34 = vld [vmem:[#allocation5 + $0x878] ss:$20 sps:$4 sm:$0xff]  }
 0x190   : > { %3165 = vmatpush1.bf16.msra.mxu0 %v6736_v35  ;;  %3380 = vmatpush1.bf16.msra.mxu1 %v6739_v36  ;;  %v6837_v35 = vld [vmem:[#allocation5 + $0x89c] ss:$20 sps:$4 sm:$0xff]   ;;  %v6840_v36 = vld [vmem:[#allocation5 + $0x8a4] ss:$20 sps:$4 sm:$0xff]  }
 0x191   : > { %3166 = vmatprep.subr.bf16.mxu0 %v6744_v37  ;;  %3381 = vmatprep.subr.bf16.mxu1 %v6747_v38  ;;  %v6835_v37 = vld [vmem:[#allocation5 + $0x898] ss:$20 sps:$4 sm:$0xff]   ;;  %v6838_v38 = vld [vmem:[#allocation5 + $0x8a0] ss:$20 sps:$4 sm:$0xff]  }
 0x194   : > { %3167 = vmatpush1.bf16.msra.mxu0 %v6742_v39  ;;  %3382 = vmatpush1.bf16.msra.mxu1 %v6745_v40  ;;  %v6843_v39 = vld [vmem:[#allocation5 + $0x8c4] ss:$20 sps:$4 sm:$0xff]   ;;  %v6846_v40 = vld [vmem:[#allocation5 + $0x8cc] ss:$20 sps:$4 sm:$0xff]  }
 0x195   : > { %3168 = vmatprep.subr.bf16.mxu0 %v6750_v41  ;;  %3383 = vmatprep.subr.bf16.mxu1 %v6753_v42  ;;  %v6841_v41 = vld [vmem:[#allocation5 + $0x8c0] ss:$20 sps:$4 sm:$0xff]   ;;  %v6844_v42 = vld [vmem:[#allocation5 + $0x8c8] ss:$20 sps:$4 sm:$0xff]  }
 0x198   : > { %3169 = vmatpush1.bf16.msra.mxu0 %v6748_v43  ;;  %3384 = vmatpush1.bf16.msra.mxu1 %v6751_v44  ;;  %v6849_v43 = vld [vmem:[#allocation5 + $0x8ec] ss:$20 sps:$4 sm:$0xff]   ;;  %v6852_v44 = vld [vmem:[#allocation5 + $0x8f4] ss:$20 sps:$4 sm:$0xff]  }
 0x199   : > { %3170 = vmatprep.subr.bf16.mxu0 %v6756_v45  ;;  %3385 = vmatprep.subr.bf16.mxu1 %v6759_v46  ;;  %v6847_v45 = vld [vmem:[#allocation5 + $0x8e8] ss:$20 sps:$4 sm:$0xff]   ;;  %v6850_v46 = vld [vmem:[#allocation5 + $0x8f0] ss:$20 sps:$4 sm:$0xff]  }
 0x19c   : > { %3171 = vmatpush1.bf16.msra.mxu0 %v6754_v47  ;;  %3386 = vmatpush1.bf16.msra.mxu1 %v6757_v48  ;;  %v6855_v47 = vld [vmem:[#allocation5 + $0x914] ss:$20 sps:$4 sm:$0xff]   ;;  %v6858_v48 = vld [vmem:[#allocation5 + $0x91c] ss:$20 sps:$4 sm:$0xff]  }
 0x19d   : > { %3172 = vmatprep.subr.bf16.mxu0 %v6762_v49  ;;  %3387 = vmatprep.subr.bf16.mxu1 %v6765_v50  ;;  %v6853_v49 = vld [vmem:[#allocation5 + $0x910] ss:$20 sps:$4 sm:$0xff]   ;;  %v6856_v50 = vld [vmem:[#allocation5 + $0x918] ss:$20 sps:$4 sm:$0xff]  }
 0x1a0   : > { %3173 = vmatpush1.bf16.msra.mxu0 %v6760_v51  ;;  %3388 = vmatpush1.bf16.msra.mxu1 %v6763_v52  ;;  %v6861_v51 = vld [vmem:[#allocation5 + $0x93c] ss:$20 sps:$4 sm:$0xff]   ;;  %v6864_v52 = vld [vmem:[#allocation5 + $0x944] ss:$20 sps:$4 sm:$0xff]  }
 0x1a1   : > { %3174 = vmatprep.subr.bf16.mxu0 %v6768_v53  ;;  %3389 = vmatprep.subr.bf16.mxu1 %v6771_v54  ;;  %v6859_v53 = vld [vmem:[#allocation5 + $0x938] ss:$20 sps:$4 sm:$0xff]   ;;  %v6862_v54 = vld [vmem:[#allocation5 + $0x940] ss:$20 sps:$4 sm:$0xff]  }
 0x1a4   : > { %3175 = vmatpush1.bf16.msra.mxu0 %v6766_v55  ;;  %3390 = vmatpush1.bf16.msra.mxu1 %v6769_v56  ;;  %v6867_v55 = vld [vmem:[#allocation5 + $0x964] ss:$20 sps:$4 sm:$0xff]   ;;  %v6870_v56 = vld [vmem:[#allocation5 + $0x96c] ss:$20 sps:$4 sm:$0xff]  }
 0x1a5   : > { %3176 = vmatprep.subr.bf16.mxu0 %v6774_v57  ;;  %3391 = vmatprep.subr.bf16.mxu1 %v6777_v58  ;;  %v6865_v57 = vld [vmem:[#allocation5 + $0x960] ss:$20 sps:$4 sm:$0xff]   ;;  %v6868_v58 = vld [vmem:[#allocation5 + $0x968] ss:$20 sps:$4 sm:$0xff]  }
 0x1a8   : > { %3177 = vmatpush1.bf16.msra.mxu0 %v6772_v59  ;;  %3392 = vmatpush1.bf16.msra.mxu1 %v6775_v60  ;;  %v6873_v59 = vld [vmem:[#allocation5 + $0x98c] ss:$20 sps:$4 sm:$0xff]   ;;  %v6876_v60 = vld [vmem:[#allocation5 + $0x994] ss:$20 sps:$4 sm:$0xff]  }
 0x1a9   : > { %3178 = vmatprep.subr.bf16.mxu0 %v6780_v61  ;;  %3393 = vmatprep.subr.bf16.mxu1 %v6783_v62  ;;  %v6871_v61 = vld [vmem:[#allocation5 + $0x988] ss:$20 sps:$4 sm:$0xff]   ;;  %v6874_v62 = vld [vmem:[#allocation5 + $0x990] ss:$20 sps:$4 sm:$0xff]  }
 0x1ac   : > { %3179 = vmatpush1.bf16.msra.mxu0 %v6778_v63  ;;  %3394 = vmatpush1.bf16.msra.mxu1 %v6781_v0  ;;  %v6879_v63 = vld [vmem:[#allocation5 + $0x9b4] ss:$20 sps:$4 sm:$0xff]   ;;  %v6882_v0 = vld [vmem:[#allocation5 + $0x9bc] ss:$20 sps:$4 sm:$0xff]  }
 0x1ad   : > { %3180 = vmatprep.subr.bf16.mxu0 %v6786_v1  ;;  %3395 = vmatprep.subr.bf16.mxu1 %v6789_v2  ;;  %v6877_v1 = vld [vmem:[#allocation5 + $0x9b0] ss:$20 sps:$4 sm:$0xff]   ;;  %v6880_v2 = vld [vmem:[#allocation5 + $0x9b8] ss:$20 sps:$4 sm:$0xff]  }
 0x1b0   : > { %3181 = vmatpush1.bf16.msra.mxu0 %v6784_v3  ;;  %3396 = vmatpush1.bf16.msra.mxu1 %v6787_v4  ;;  %v6885_v3 = vld [vmem:[#allocation5 + $0x9dc] ss:$20 sps:$4 sm:$0xff]   ;;  %v6888_v4 = vld [vmem:[#allocation5 + $0x9e4] ss:$20 sps:$4 sm:$0xff]  }
 0x1b1   : > { %3193 = vmatprep.subr.bf16.mxu0 %v6795_v5  ;;  %3408 = vmatprep.subr.bf16.mxu1 %v6798_v6  ;;  %v6883_v5 = vld [vmem:[#allocation5 + $0x9d8] ss:$20 sps:$4 sm:$0xff]   ;;  %v6886_v6 = vld [vmem:[#allocation5 + $0x9e0] ss:$20 sps:$4 sm:$0xff]  }
 0x1b3   : > { %3183 = vmatmul.mubr.bf16.vlgmr.msra.gmra.mrb[0].mxu0 %v6790_v7  ;;  %3398 = vmatmul.mubr.bf16.vlgmr.msra.gmra.mrb[0].mxu1 %v6790_v7  ;;  %v6894_v7 = vld [vmem:[#allocation5 + $0xa04] ss:$20 sps:$4 sm:$0xff]  }
 0x1b4   : > { %3194 = vmatpush1.bf16.msra.mxu0 %v6793_v8  ;;  %3409 = vmatpush1.bf16.msra.mxu1 %v6796_v9  ;;  %v6889_v8 = vld [vmem:[%s7929_s26 + $0x18] ss:$40 sps:$4 sm:$0xff]  }
 0x1b5   : > { %3195 = vmatprep.subr.bf16.mxu0 %v6801_v10  ;;  %3410 = vmatprep.subr.bf16.mxu1 %v6804_v11  ;;  %v6897_v9 = vld [vmem:[#allocation5 + $0xa0c] ss:$20 sps:$4 sm:$0xff]   ;;  %v6895_v11 = vld [vmem:[#allocation5 + $0xa08] ss:$20 sps:$4 sm:$0xff]  }
 0x1b6   : > { %3225 = vmatprep.mubr.bf16.mxu0 %v6891_v12  ;;  %3440 = vmatprep.mubr.bf16.mxu1 %v6891_v12  ;;  %v6892_v10 = vld [vmem:[#allocation5 + $0xa00] ss:$20 sps:$4 sm:$0xff]  }
 0x1b7   : > { %v6900_v12 = vld [vmem:[#allocation5 + $0xa2c] ss:$20 sps:$4 sm:$0xff]  }
 0x1b8   : > { %3196 = vmatpush1.bf16.msra.mxu0 %v6799_v13  ;;  %3411 = vmatpush1.bf16.msra.mxu1 %v6802_v14  ;;  %v6903_v13 = vld [vmem:[#allocation5 + $0xa34] ss:$20 sps:$4 sm:$0xff]  }
 0x1b9   : > { %3197 = vmatprep.subr.bf16.mxu0 %v6807_v15  ;;  %3412 = vmatprep.subr.bf16.mxu1 %v6810_v16  ;;  %v6898_v14 = vld [vmem:[#allocation5 + $0xa28] ss:$20 sps:$4 sm:$0xff]   ;;  %v6901_v16 = vld [vmem:[#allocation5 + $0xa30] ss:$20 sps:$4 sm:$0xff]  }
 0x1ba   : > { %v6990_v15 = vld [vmem:[%s7929_s26 + $0x24] ss:$40 sps:$4 sm:$0xff]  }
 0x1bc   : > { %3198 = vmatpush1.bf16.msra.mxu0 %v6805_v17  ;;  %3413 = vmatpush1.bf16.msra.mxu1 %v6808_v18  ;;  %v6906_v17 = vld [vmem:[#allocation5 + $0xa54] ss:$20 sps:$4 sm:$0xff]   ;;  %v6909_v18 = vld [vmem:[#allocation5 + $0xa5c] ss:$20 sps:$4 sm:$0xff]  }
 0x1bd   : > { %3199 = vmatprep.subr.bf16.mxu0 %v6813_v19  ;;  %3414 = vmatprep.subr.bf16.mxu1 %v6816_v20  ;;  %v6904_v19 = vld [vmem:[#allocation5 + $0xa50] ss:$20 sps:$4 sm:$0xff]   ;;  %v6907_v20 = vld [vmem:[#allocation5 + $0xa58] ss:$20 sps:$4 sm:$0xff]  }
 0x1c0   : > { %3200 = vmatpush1.bf16.msra.mxu0 %v6811_v21  ;;  %3415 = vmatpush1.bf16.msra.mxu1 %v6814_v22  ;;  %v6912_v21 = vld [vmem:[#allocation5 + $0xa7c] ss:$20 sps:$4 sm:$0xff]   ;;  %v6915_v22 = vld [vmem:[#allocation5 + $0xa84] ss:$20 sps:$4 sm:$0xff]  }
 0x1c1   : > { %3201 = vmatprep.subr.bf16.mxu0 %v6819_v23  ;;  %3416 = vmatprep.subr.bf16.mxu1 %v6822_v24  ;;  %v6910_v23 = vld [vmem:[#allocation5 + $0xa78] ss:$20 sps:$4 sm:$0xff]   ;;  %v6913_v24 = vld [vmem:[#allocation5 + $0xa80] ss:$20 sps:$4 sm:$0xff]  }
 0x1c4   : > { %3202 = vmatpush1.bf16.msra.mxu0 %v6817_v25  ;;  %3417 = vmatpush1.bf16.msra.mxu1 %v6820_v26  ;;  %v6918_v25 = vld [vmem:[#allocation5 + $0xaa4] ss:$20 sps:$4 sm:$0xff]   ;;  %v6921_v26 = vld [vmem:[#allocation5 + $0xaac] ss:$20 sps:$4 sm:$0xff]  }
 0x1c5   : > { %3203 = vmatprep.subr.bf16.mxu0 %v6825_v27  ;;  %3418 = vmatprep.subr.bf16.mxu1 %v6828_v28  ;;  %v6916_v27 = vld [vmem:[#allocation5 + $0xaa0] ss:$20 sps:$4 sm:$0xff]   ;;  %v6919_v28 = vld [vmem:[#allocation5 + $0xaa8] ss:$20 sps:$4 sm:$0xff]  }
 0x1c8   : > { %3204 = vmatpush1.bf16.msra.mxu0 %v6823_v29  ;;  %3419 = vmatpush1.bf16.msra.mxu1 %v6826_v30  ;;  %v6924_v29 = vld [vmem:[#allocation5 + $0xacc] ss:$20 sps:$4 sm:$0xff]   ;;  %v6927_v30 = vld [vmem:[#allocation5 + $0xad4] ss:$20 sps:$4 sm:$0xff]  }
 0x1c9   : > { %3205 = vmatprep.subr.bf16.mxu0 %v6831_v31  ;;  %3420 = vmatprep.subr.bf16.mxu1 %v6834_v32  ;;  %v6922_v31 = vld [vmem:[#allocation5 + $0xac8] ss:$20 sps:$4 sm:$0xff]   ;;  %v6925_v32 = vld [vmem:[#allocation5 + $0xad0] ss:$20 sps:$4 sm:$0xff]  }
 0x1cc   : > { %3206 = vmatpush1.bf16.msra.mxu0 %v6829_v33  ;;  %3421 = vmatpush1.bf16.msra.mxu1 %v6832_v34  ;;  %v6930_v33 = vld [vmem:[#allocation5 + $0xaf4] ss:$20 sps:$4 sm:$0xff]   ;;  %v6933_v34 = vld [vmem:[#allocation5 + $0xafc] ss:$20 sps:$4 sm:$0xff]  }
 0x1cd   : > { %3207 = vmatprep.subr.bf16.mxu0 %v6837_v35  ;;  %3422 = vmatprep.subr.bf16.mxu1 %v6840_v36  ;;  %v6928_v35 = vld [vmem:[#allocation5 + $0xaf0] ss:$20 sps:$4 sm:$0xff]   ;;  %v6931_v36 = vld [vmem:[#allocation5 + $0xaf8] ss:$20 sps:$4 sm:$0xff]  }
 0x1d0   : > { %3208 = vmatpush1.bf16.msra.mxu0 %v6835_v37  ;;  %3423 = vmatpush1.bf16.msra.mxu1 %v6838_v38  ;;  %v6936_v37 = vld [vmem:[#allocation5 + $0xb1c] ss:$20 sps:$4 sm:$0xff]   ;;  %v6939_v38 = vld [vmem:[#allocation5 + $0xb24] ss:$20 sps:$4 sm:$0xff]  }
 0x1d1   : > { %3209 = vmatprep.subr.bf16.mxu0 %v6843_v39  ;;  %3424 = vmatprep.subr.bf16.mxu1 %v6846_v40  ;;  %v6934_v39 = vld [vmem:[#allocation5 + $0xb18] ss:$20 sps:$4 sm:$0xff]   ;;  %v6937_v40 = vld [vmem:[#allocation5 + $0xb20] ss:$20 sps:$4 sm:$0xff]  }
 0x1d4   : > { %3210 = vmatpush1.bf16.msra.mxu0 %v6841_v41  ;;  %3425 = vmatpush1.bf16.msra.mxu1 %v6844_v42  ;;  %v6942_v41 = vld [vmem:[#allocation5 + $0xb44] ss:$20 sps:$4 sm:$0xff]   ;;  %v6945_v42 = vld [vmem:[#allocation5 + $0xb4c] ss:$20 sps:$4 sm:$0xff]  }
 0x1d5   : > { %3211 = vmatprep.subr.bf16.mxu0 %v6849_v43  ;;  %3426 = vmatprep.subr.bf16.mxu1 %v6852_v44  ;;  %v6940_v43 = vld [vmem:[#allocation5 + $0xb40] ss:$20 sps:$4 sm:$0xff]   ;;  %v6943_v44 = vld [vmem:[#allocation5 + $0xb48] ss:$20 sps:$4 sm:$0xff]  }
 0x1d8   : > { %3212 = vmatpush1.bf16.msra.mxu0 %v6847_v45  ;;  %3427 = vmatpush1.bf16.msra.mxu1 %v6850_v46  ;;  %v6948_v45 = vld [vmem:[#allocation5 + $0xb6c] ss:$20 sps:$4 sm:$0xff]   ;;  %v6951_v46 = vld [vmem:[#allocation5 + $0xb74] ss:$20 sps:$4 sm:$0xff]  }
 0x1d9   : > { %3213 = vmatprep.subr.bf16.mxu0 %v6855_v47  ;;  %3428 = vmatprep.subr.bf16.mxu1 %v6858_v48  ;;  %v6946_v47 = vld [vmem:[#allocation5 + $0xb68] ss:$20 sps:$4 sm:$0xff]   ;;  %v6949_v48 = vld [vmem:[#allocation5 + $0xb70] ss:$20 sps:$4 sm:$0xff]  }
 0x1dc   : > { %3214 = vmatpush1.bf16.msra.mxu0 %v6853_v49  ;;  %3429 = vmatpush1.bf16.msra.mxu1 %v6856_v50  ;;  %v6954_v49 = vld [vmem:[#allocation5 + $0xb94] ss:$20 sps:$4 sm:$0xff]   ;;  %v6957_v50 = vld [vmem:[#allocation5 + $0xb9c] ss:$20 sps:$4 sm:$0xff]  }
 0x1dd   : > { %3215 = vmatprep.subr.bf16.mxu0 %v6861_v51  ;;  %3430 = vmatprep.subr.bf16.mxu1 %v6864_v52  ;;  %v6952_v51 = vld [vmem:[#allocation5 + $0xb90] ss:$20 sps:$4 sm:$0xff]   ;;  %v6955_v52 = vld [vmem:[#allocation5 + $0xb98] ss:$20 sps:$4 sm:$0xff]  }
 0x1e0   : > { %3216 = vmatpush1.bf16.msra.mxu0 %v6859_v53  ;;  %3431 = vmatpush1.bf16.msra.mxu1 %v6862_v54  ;;  %v6960_v53 = vld [vmem:[#allocation5 + $0xbbc] ss:$20 sps:$4 sm:$0xff]   ;;  %v6963_v54 = vld [vmem:[#allocation5 + $0xbc4] ss:$20 sps:$4 sm:$0xff]  }
 0x1e1   : > { %3217 = vmatprep.subr.bf16.mxu0 %v6867_v55  ;;  %3432 = vmatprep.subr.bf16.mxu1 %v6870_v56  ;;  %v6958_v55 = vld [vmem:[#allocation5 + $0xbb8] ss:$20 sps:$4 sm:$0xff]   ;;  %v6961_v56 = vld [vmem:[#allocation5 + $0xbc0] ss:$20 sps:$4 sm:$0xff]  }
 0x1e4   : > { %3218 = vmatpush1.bf16.msra.mxu0 %v6865_v57  ;;  %3433 = vmatpush1.bf16.msra.mxu1 %v6868_v58  ;;  %v6966_v57 = vld [vmem:[#allocation5 + $0xbe4] ss:$20 sps:$4 sm:$0xff]   ;;  %v6969_v58 = vld [vmem:[#allocation5 + $0xbec] ss:$20 sps:$4 sm:$0xff]  }
 0x1e5   : > { %3219 = vmatprep.subr.bf16.mxu0 %v6873_v59  ;;  %3434 = vmatprep.subr.bf16.mxu1 %v6876_v60  ;;  %v6964_v59 = vld [vmem:[#allocation5 + $0xbe0] ss:$20 sps:$4 sm:$0xff]   ;;  %v6967_v60 = vld [vmem:[#allocation5 + $0xbe8] ss:$20 sps:$4 sm:$0xff]  }
 0x1e8   : > { %3220 = vmatpush1.bf16.msra.mxu0 %v6871_v61  ;;  %3435 = vmatpush1.bf16.msra.mxu1 %v6874_v62  ;;  %v6972_v61 = vld [vmem:[#allocation5 + $0xc0c] ss:$20 sps:$4 sm:$0xff]   ;;  %v6975_v62 = vld [vmem:[#allocation5 + $0xc14] ss:$20 sps:$4 sm:$0xff]  }
 0x1e9   : > { %3221 = vmatprep.subr.bf16.mxu0 %v6879_v63  ;;  %3436 = vmatprep.subr.bf16.mxu1 %v6882_v0  ;;  %v6970_v63 = vld [vmem:[#allocation5 + $0xc08] ss:$20 sps:$4 sm:$0xff]   ;;  %v6973_v0 = vld [vmem:[#allocation5 + $0xc10] ss:$20 sps:$4 sm:$0xff]  }
 0x1ec   : > { %3222 = vmatpush1.bf16.msra.mxu0 %v6877_v1  ;;  %3437 = vmatpush1.bf16.msra.mxu1 %v6880_v2  ;;  %v6978_v1 = vld [vmem:[#allocation5 + $0xc34] ss:$20 sps:$4 sm:$0xff]   ;;  %v6981_v2 = vld [vmem:[#allocation5 + $0xc3c] ss:$20 sps:$4 sm:$0xff]  }
 0x1ed   : > { %3223 = vmatprep.subr.bf16.mxu0 %v6885_v3  ;;  %3438 = vmatprep.subr.bf16.mxu1 %v6888_v4  ;;  %v6976_v3 = vld [vmem:[#allocation5 + $0xc30] ss:$20 sps:$4 sm:$0xff]   ;;  %v6979_v4 = vld [vmem:[#allocation5 + $0xc38] ss:$20 sps:$4 sm:$0xff]  }
 0x1f0   : > { %3224 = vmatpush1.bf16.msra.mxu0 %v6883_v5  ;;  %3439 = vmatpush1.bf16.msra.mxu1 %v6886_v6  ;;  %v6984_v5 = vld [vmem:[#allocation5 + $0xc5c] ss:$20 sps:$4 sm:$0xff]   ;;  %v6987_v6 = vld [vmem:[#allocation5 + $0xc64] ss:$20 sps:$4 sm:$0xff]  }
 0x1f1   : > { %3236 = vmatprep.subr.bf16.mxu0 %v6894_v7  ;;  %3451 = vmatprep.subr.bf16.mxu1 %v6897_v9  ;;  %v6982_v7 = vld [vmem:[#allocation5 + $0xc58] ss:$20 sps:$4 sm:$0xff]   ;;  %v6991_v9 = vld [vmem:[#allocation5 + $0x150] ss:$20 sps:$4 sm:$0xff]  }
 0x1f3   : > { %3226 = vmatmul.mubr.bf16.vlgmr.msra.gmra.mrb[0].mxu0 %v6889_v8  ;;  %3441 = vmatmul.mubr.bf16.vlgmr.msra.gmra.mrb[0].mxu1 %v6889_v8  ;;  %v6985_v8 = vld [vmem:[#allocation5 + $0xc60] ss:$20 sps:$4 sm:$0xff]  }
 0x1f4   : > { %3237 = vmatpush1.bf16.msra.mxu0 %v6892_v10  ;;  %3452 = vmatpush1.bf16.msra.mxu1 %v6895_v11  ;;  %v6992_v10 = vld [vmem:[#allocation5 + $0x3d0] ss:$20 sps:$4 sm:$0xff]  }
 0x1f5   : > { %3238 = vmatprep.subr.bf16.mxu0 %v6900_v12  ;;  %3453 = vmatprep.subr.bf16.mxu1 %v6903_v13  ;;  %v7961_v11 = vld [vmem:[%s7929_s26 + $0x20] ss:$40 sps:$4 sm:$0xff]  }
 0x1f6   : > { %3268 = vmatprep.mubr.bf16.mxu0 %v6990_v15  ;;  %3483 = vmatprep.mubr.bf16.mxu1 %v6990_v15  ;;  %v6993_v12 = vld [vmem:[#allocation5 + $0x10] ss:$20 sps:$4 sm:$0xff]   ;;  %v6996_v15 = vld [vmem:[#allocation5 + $0x3f8] ss:$20 sps:$4 sm:$0xff]  }
 0x1f7   : > { %v6994_v13 = vld [vmem:[#allocation5 + $0x290] ss:$20 sps:$4 sm:$0xff]  }
 0x1f8   : > { %3239 = vmatpush1.bf16.msra.mxu0 %v6898_v14  ;;  %3454 = vmatpush1.bf16.msra.mxu1 %v6901_v16  ;;  %v6995_v14 = vld [vmem:[#allocation5 + $0x178] ss:$20 sps:$4 sm:$0xff]  }
 0x1f9   : > { %3240 = vmatprep.subr.bf16.mxu0 %v6906_v17  ;;  %3455 = vmatprep.subr.bf16.mxu1 %v6909_v18  ;;  %v6997_v16 = vld [vmem:[#allocation5 + $0x38] ss:$20 sps:$4 sm:$0xff]   ;;  %v6999_v18 = vld [vmem:[#allocation5 + $0x1a0] ss:$20 sps:$4 sm:$0xff]  }
 0x1fa   : > { %v6998_v17 = vld [vmem:[#allocation5 + $0x2b8] ss:$20 sps:$4 sm:$0xff]  }
 0x1fc   : > { %3241 = vmatpush1.bf16.msra.mxu0 %v6904_v19  ;;  %3456 = vmatpush1.bf16.msra.mxu1 %v6907_v20  ;;  %v7000_v19 = vld [vmem:[#allocation5 + $0x420] ss:$20 sps:$4 sm:$0xff]  }
 0x1fd   : > { %3242 = vmatprep.subr.bf16.mxu0 %v6912_v21  ;;  %3457 = vmatprep.subr.bf16.mxu1 %v6915_v22  ;;  %v7001_v20 = vld [vmem:[#allocation5 + $0x60] ss:$20 sps:$4 sm:$0xff]  }
 0x1fe   : > { %v7002_v21 = vld [vmem:[#allocation5 + $0x2e0] ss:$20 sps:$4 sm:$0xff]  }
 0x1ff   : > { %v7267_v22 = vld [vmem:[%s7929_s26 + $0x4] ss:$40 sps:$4 sm:$0xff]  }
 0x200   : > { %3243 = vmatpush1.bf16.msra.mxu0 %v6910_v23  ;;  %3458 = vmatpush1.bf16.msra.mxu1 %v6913_v24  ;;  %v7268_v23 = vld [vmem:[%s7929_s26 + $0xc] ss:$40 sps:$4 sm:$0xff]  }
 0x201   : > { %3244 = vmatprep.subr.bf16.mxu0 %v6918_v25  ;;  %3459 = vmatprep.subr.bf16.mxu1 %v6921_v26  ;;  %v7003_v24 = vld [vmem:[#allocation5 + $0x1c8] ss:$20 sps:$4 sm:$0xff]  }
 0x202   : > { %v7004_v25 = vld [vmem:[#allocation5 + $0x448] ss:$20 sps:$4 sm:$0xff]  }
 0x203   : > { %v7005_v26 = vld [vmem:[#allocation5 + $0x88] ss:$20 sps:$4 sm:$0xff]  }
 0x204   : > { %3245 = vmatpush1.bf16.msra.mxu0 %v6916_v27  ;;  %3460 = vmatpush1.bf16.msra.mxu1 %v6919_v28  ;;  %v7006_v27 = vld [vmem:[#allocation5 + $0x308] ss:$20 sps:$4 sm:$0xff]   ;;  %v7007_v28 = vld [vmem:[#allocation5 + $0x1f0] ss:$20 sps:$4 sm:$0xff]  }
 0x205   : > { %3246 = vmatprep.subr.bf16.mxu0 %v6924_v29  ;;  %3461 = vmatprep.subr.bf16.mxu1 %v6927_v30  ;;  %v7008_v29 = vld [vmem:[#allocation5 + $0x470] ss:$20 sps:$4 sm:$0xff]  }
 0x206   : > { %v7009_v30 = vld [vmem:[#allocation5 + $0xb0] ss:$20 sps:$4 sm:$0xff]  }
 0x208   : > { %3247 = vmatpush1.bf16.msra.mxu0 %v6922_v31  ;;  %3462 = vmatpush1.bf16.msra.mxu1 %v6925_v32  ;;  %v7010_v31 = vld [vmem:[#allocation5 + $0x330] ss:$20 sps:$4 sm:$0xff]   ;;  %v7011_v32 = vld [vmem:[#allocation5 + $0x218] ss:$20 sps:$4 sm:$0xff]  }
 0x209   : > { %3248 = vmatprep.subr.bf16.mxu0 %v6930_v33  ;;  %3463 = vmatprep.subr.bf16.mxu1 %v6933_v34  ;;  %v7012_v33 = vld [vmem:[#allocation5 + $0x498] ss:$20 sps:$4 sm:$0xff]  }
 0x20a   : > { %v7013_v34 = vld [vmem:[#allocation5 + $0xd8] ss:$20 sps:$4 sm:$0xff]  }
 0x20c   : > { %3249 = vmatpush1.bf16.msra.mxu0 %v6928_v35  ;;  %3464 = vmatpush1.bf16.msra.mxu1 %v6931_v36  ;;  %v7014_v35 = vld [vmem:[#allocation5 + $0x358] ss:$20 sps:$4 sm:$0xff]   ;;  %v7015_v36 = vld [vmem:[#allocation5 + $0x240] ss:$20 sps:$4 sm:$0xff]  }
 0x20d   : > { %3250 = vmatprep.subr.bf16.mxu0 %v6936_v37  ;;  %3465 = vmatprep.subr.bf16.mxu1 %v6939_v38  ;;  %v7016_v37 = vld [vmem:[#allocation5 + $0x4c0] ss:$20 sps:$4 sm:$0xff]  }
 0x20e   : > { %v7017_v38 = vld [vmem:[#allocation5 + $0x100] ss:$20 sps:$4 sm:$0xff]  }
 0x210   : > { %3251 = vmatpush1.bf16.msra.mxu0 %v6934_v39  ;;  %3466 = vmatpush1.bf16.msra.mxu1 %v6937_v40  ;;  %v7018_v39 = vld [vmem:[#allocation5 + $0x380] ss:$20 sps:$4 sm:$0xff]   ;;  %v7019_v40 = vld [vmem:[#allocation5 + $0x268] ss:$20 sps:$4 sm:$0xff]  }
 0x211   : > { %3252 = vmatprep.subr.bf16.mxu0 %v6942_v41  ;;  %3467 = vmatprep.subr.bf16.mxu1 %v6945_v42  ;;  %v7020_v41 = vld [vmem:[#allocation5 + $0x4e8] ss:$20 sps:$4 sm:$0xff]  }
 0x212   : > { %v7021_v42 = vld [vmem:[#allocation5 + $0x128] ss:$20 sps:$4 sm:$0xff]  }
 0x214   : > { %3253 = vmatpush1.bf16.msra.mxu0 %v6940_v43  ;;  %3468 = vmatpush1.bf16.msra.mxu1 %v6943_v44  ;;  %v7022_v43 = vld [vmem:[#allocation5 + $0x3a8] ss:$20 sps:$4 sm:$0xff]   ;;  %v7023_v44 = vld [vmem:[#allocation5 + $0x650] ss:$20 sps:$4 sm:$0xff]  }
 0x215   : > { %3254 = vmatprep.subr.bf16.mxu0 %v6948_v45  ;;  %3469 = vmatprep.subr.bf16.mxu1 %v6951_v46  ;;  %v7025_v45 = vld [vmem:[#allocation5 + $0x8d0] ss:$20 sps:$4 sm:$0xff]  }
 0x216   : > { %v7024_v46 = vld [vmem:[#allocation5 + $0x510] ss:$20 sps:$4 sm:$0xff]  }
 0x218   : > { %3255 = vmatpush1.bf16.msra.mxu0 %v6946_v47  ;;  %3470 = vmatpush1.bf16.msra.mxu1 %v6949_v48  ;;  %v7026_v47 = vld [vmem:[#allocation5 + $0x790] ss:$20 sps:$4 sm:$0xff]   ;;  %v7027_v48 = vld [vmem:[#allocation5 + $0x678] ss:$20 sps:$4 sm:$0xff]  }
 0x219   : > { %3256 = vmatprep.subr.bf16.mxu0 %v6954_v49  ;;  %3471 = vmatprep.subr.bf16.mxu1 %v6957_v50  ;;  %v7029_v49 = vld [vmem:[#allocation5 + $0x8f8] ss:$20 sps:$4 sm:$0xff]  }
 0x21a   : > { %v7028_v50 = vld [vmem:[#allocation5 + $0x538] ss:$20 sps:$4 sm:$0xff]  }
 0x21c   : > { %3257 = vmatpush1.bf16.msra.mxu0 %v6952_v51  ;;  %3472 = vmatpush1.bf16.msra.mxu1 %v6955_v52  ;;  %v7030_v51 = vld [vmem:[#allocation5 + $0x7b8] ss:$20 sps:$4 sm:$0xff]  }
 0x21d   : > { %3258 = vmatprep.subr.bf16.mxu0 %v6960_v53  ;;  %3473 = vmatprep.subr.bf16.mxu1 %v6963_v54  ;;  %v7269_v52 = vld [vmem:[%s7929_s26] ss:$40 sps:$4 sm:$0xff]  }
 0x21e   : > { %v7270_v53 = vld [vmem:[%s7929_s26 + $0x8] ss:$40 sps:$4 sm:$0xff]  }
 0x21f   : > { %v7031_v54 = vld [vmem:[#allocation5 + $0x6a0] ss:$20 sps:$4 sm:$0xff]  }
 0x220   : > { %3259 = vmatpush1.bf16.msra.mxu0 %v6958_v55  ;;  %3474 = vmatpush1.bf16.msra.mxu1 %v6961_v56  ;;  %v7033_v55 = vld [vmem:[#allocation5 + $0x920] ss:$20 sps:$4 sm:$0xff]  }
 0x221   : > { %3260 = vmatprep.subr.bf16.mxu0 %v6966_v57  ;;  %3475 = vmatprep.subr.bf16.mxu1 %v6969_v58  ;;  %v7032_v56 = vld [vmem:[#allocation5 + $0x560] ss:$20 sps:$4 sm:$0xff]  }
 0x222   : > { %v7034_v57 = vld [vmem:[#allocation5 + $0x7e0] ss:$20 sps:$4 sm:$0xff]  }
 0x223   : > { %v7271_v58 = vld [vmem:[%s7929_s26 + $0x14] ss:$40 sps:$4 sm:$0xff]  }
 0x224   : > { %3261 = vmatpush1.bf16.msra.mxu0 %v6964_v59  ;;  %3476 = vmatpush1.bf16.msra.mxu1 %v6967_v60  ;;  %v7272_v59 = vld [vmem:[%s7929_s26 + $0x1c] ss:$40 sps:$4 sm:$0xff]  }
 0x225   : > { %3262 = vmatprep.subr.bf16.mxu0 %v6972_v61  ;;  %3477 = vmatprep.subr.bf16.mxu1 %v6975_v62  ;;  %v7035_v60 = vld [vmem:[#allocation5 + $0x6c8] ss:$20 sps:$4 sm:$0xff]  }
 0x226   : > { %v7037_v61 = vld [vmem:[#allocation5 + $0x948] ss:$20 sps:$4 sm:$0xff]  }
 0x227   : > { %v7036_v62 = vld [vmem:[#allocation5 + $0x588] ss:$20 sps:$4 sm:$0xff]  }
 0x228   : > { %3263 = vmatpush1.bf16.msra.mxu0 %v6970_v63  ;;  %3478 = vmatpush1.bf16.msra.mxu1 %v6973_v0  ;;  %v7038_v63 = vld [vmem:[#allocation5 + $0x808] ss:$20 sps:$4 sm:$0xff]   ;;  %v7039_v0 = vld [vmem:[#allocation5 + $0x6f0] ss:$20 sps:$4 sm:$0xff]  }
 0x229   : > { %3264 = vmatprep.subr.bf16.mxu0 %v6978_v1  ;;  %3479 = vmatprep.subr.bf16.mxu1 %v6981_v2  ;;  %v7041_v1 = vld [vmem:[#allocation5 + $0x970] ss:$20 sps:$4 sm:$0xff]  }
 0x22a   : > { %v7040_v2 = vld [vmem:[#allocation5 + $0x5b0] ss:$20 sps:$4 sm:$0xff]  }
 0x22c   : > { %3265 = vmatpush1.bf16.msra.mxu0 %v6976_v3  ;;  %3480 = vmatpush1.bf16.msra.mxu1 %v6979_v4  ;;  %v7042_v3 = vld [vmem:[#allocation5 + $0x830] ss:$20 sps:$4 sm:$0xff]   ;;  %v7043_v4 = vld [vmem:[#allocation5 + $0x718] ss:$20 sps:$4 sm:$0xff]  }
 0x22d   : > { %3266 = vmatprep.subr.bf16.mxu0 %v6984_v5  ;;  %3481 = vmatprep.subr.bf16.mxu1 %v6987_v6  ;;  %v7045_v5 = vld [vmem:[#allocation5 + $0x998] ss:$20 sps:$4 sm:$0xff]  }
 0x22e   : > { %v7044_v6 = vld [vmem:[#allocation5 + $0x5d8] ss:$20 sps:$4 sm:$0xff]  }
 0x230   : > { %3267 = vmatpush1.bf16.msra.mxu0 %v6982_v7  ;;  %3482 = vmatpush1.bf16.msra.mxu1 %v6985_v8  ;;  %v7046_v7 = vld [vmem:[#allocation5 + $0x858] ss:$20 sps:$4 sm:$0xff]   ;;  %v7047_v8 = vld [vmem:[#allocation5 + $0x740] ss:$20 sps:$4 sm:$0xff]  }
 0x231   : > { %6103 = vmatprep.subr.bf16.mxu0 %v6991_v9  ;;  %6125 = vmatprep.subr.bf16.mxu1 %v6992_v10  ;;  %v7049_v9 = vld [vmem:[#allocation5 + $0x9c0] ss:$20 sps:$4 sm:$0xff]  }
 0x232   : > { %v7048_v10 = vld [vmem:[#allocation5 + $0x600] ss:$20 sps:$4 sm:$0xff]  }
 0x233   : > { %3269 = vmatmul.mubr.bf16.vlgmr.msra.gmra.mrb[0].mxu0 %v7961_v11  ;;  %3484 = vmatmul.mubr.bf16.vlgmr.msra.gmra.mrb[0].mxu1 %v7961_v11 }
 0x234   : > { %6104 = vmatpush3.bf16.msra.mxu0 %v6993_v12  ;;  %6126 = vmatpush3.bf16.msra.mxu1 %v6994_v13  ;;  %v7050_v12 = vld [vmem:[#allocation5 + $0x880] ss:$20 sps:$4 sm:$0xff]   ;;  %v7051_v13 = vld [vmem:[#allocation5 + $0x768] ss:$20 sps:$4 sm:$0xff]  }
 0x235   : > { %6105 = vmatprep.subr.bf16.mxu0 %v6995_v14  ;;  %6127 = vmatprep.subr.bf16.mxu1 %v6996_v15  ;;  %v7053_v14 = vld [vmem:[#allocation5 + $0x9e8] ss:$20 sps:$4 sm:$0xff]  }
 0x236   : > { %3526 = vmatprep.mubr.bf16.mxu0 %v7267_v22  ;;  %3567 = vmatprep.mubr.bf16.mxu1 %v7268_v23  ;;  %v7052_v15 = vld [vmem:[#allocation5 + $0x628] ss:$20 sps:$4 sm:$0xff]  }
 0x237   : > { %v7076_v22 = vld [vmem:[%s8583_s4 + $0x1c] ss:$12 sps:$4 sm:$0xff]  }
 0x238   : > { %6106 = vmatpush3.bf16.msra.mxu0 %v6997_v16  ;;  %6128 = vmatpush3.bf16.msra.mxu1 %v6998_v17  ;;  %v7054_v16 = vld [vmem:[#allocation5 + $0x8a8] ss:$20 sps:$4 sm:$0xff]   ;;  %v7055_v17 = vld [vmem:[#allocation5 + $0xb50] ss:$20 sps:$4 sm:$0xff]  }
 0x239   : > { %6107 = vmatprep.subr.bf16.mxu0 %v6999_v18  ;;  %6129 = vmatprep.subr.bf16.mxu1 %v7000_v19  ;;  %v7073_v18 = vld [vmem:[%s8583_s4 + $0x4] ss:$12 sps:$4 sm:$0xff]  }
 0x23a   : > { %v7056_v19 = vld [vmem:[#allocation5 + $0xa10] ss:$20 sps:$4 sm:$0xff]  }
 0x23b   : > { %v7273_v23 = vld [vmem:[%s7929_s26 + $0x10] ss:$40 sps:$4 sm:$0xff]  }
 0x23c   : > { %6108 = vmatpush3.bf16.msra.mxu0 %v7001_v20  ;;  %6130 = vmatpush3.bf16.msra.mxu1 %v7002_v21  ;;  %v7057_v20 = vld [vmem:[#allocation5 + $0xb78] ss:$20 sps:$4 sm:$0xff]  }
 0x23d   : > { %6109 = vmatprep.subr.bf16.mxu0 %v7003_v24  ;;  %6131 = vmatprep.subr.bf16.mxu1 %v7004_v25  ;;  %v7071_v21 = vld [vmem:[%s8583_s4] ss:$12 sps:$4 sm:$0xff]  }
 0x23e   : > { %v7274_v24 = vld [vmem:[%s7929_s26 + $0x18] ss:$40 sps:$4 sm:$0xff]  }
 0x23f   : > { %v7058_v25 = vld [vmem:[#allocation5 + $0xa38] ss:$20 sps:$4 sm:$0xff]  }
 0x240   : > { %6110 = vmatpush3.bf16.msra.mxu0 %v7005_v26  ;;  %6132 = vmatpush3.bf16.msra.mxu1 %v7006_v27  ;;  %v7275_v26 = vld [vmem:[%s7929_s26 + $0x24] ss:$40 sps:$4 sm:$0xff]   ;;  %s7508_s26 = scalar_lea.vmem %s7507_s13, 512 }
 0x241   : > { %6111 = vmatprep.subr.bf16.mxu0 %v7007_v28  ;;  %6133 = vmatprep.subr.bf16.mxu1 %v7008_v29  ;;  %v7059_v27 = vld [vmem:[#allocation5 + $0xba0] ss:$20 sps:$4 sm:$0xff]   ;;  %v7074_v28 = vld [vmem:[%s8583_s4 + $0x18] ss:$12 sps:$4 sm:$0xff]   ;;  %p7510_p8 = scmp.lt.s32.totalorder %s7508_s26, %s7502_s17 }
 0x242   : > { %v7079_v29 = vld [vmem:[%s8583_s4 + $0x34] ss:$12 sps:$4 sm:$0xff]  }
 0x243   : > { %p7511_p6 = por %p7510_p8, %p7509_p2 }
 0x244   : > { %6112 = vmatpush3.bf16.msra.mxu0 %v7009_v30  ;;  %6134 = vmatpush3.bf16.msra.mxu1 %v7010_v31  ;;  %v7060_v30 = vld [vmem:[#allocation5 + $0xa60] ss:$20 sps:$4 sm:$0xff]   ;;  %v7061_v31 = vld [vmem:[#allocation5 + $0xbc8] ss:$20 sps:$4 sm:$0xff]  }
 0x245   : > { %6113 = vmatprep.subr.bf16.mxu0 %v7011_v32  ;;  %6135 = vmatprep.subr.bf16.mxu1 %v7012_v33  ;;  %v7077_v32 = vld [vmem:[%s8583_s4 + $0x30] ss:$12 sps:$4 sm:$0xff]   ;;  %v7082_v33 = vld [vmem:[%s8583_s4 + $0x4c] ss:$12 sps:$4 sm:$0xff]   ;;  %p7512_p10 = pnand %p7511_p6, %p7505_p3 }
 0x248   : > { %6114 = vmatpush3.bf16.msra.mxu0 %v7013_v34  ;;  %6136 = vmatpush3.bf16.msra.mxu1 %v7014_v35  ;;  %v7062_v34 = vld [vmem:[#allocation5 + $0xa88] ss:$20 sps:$4 sm:$0xff]   ;;  %v7063_v35 = vld [vmem:[#allocation5 + $0xbf0] ss:$20 sps:$4 sm:$0xff]  }
 0x249   : > { %6115 = vmatprep.subr.bf16.mxu0 %v7015_v36  ;;  %6137 = vmatprep.subr.bf16.mxu1 %v7016_v37  ;;  %v7080_v36 = vld [vmem:[%s8583_s4 + $0x48] ss:$12 sps:$4 sm:$0xff]   ;;  %v7064_v37 = vld [vmem:[#allocation5 + $0xab0] ss:$20 sps:$4 sm:$0xff]  }
 0x24c   : > { %6116 = vmatpush3.bf16.msra.mxu0 %v7017_v38  ;;  %6138 = vmatpush3.bf16.msra.mxu1 %v7018_v39  ;;  %v7065_v38 = vld [vmem:[#allocation5 + $0xc18] ss:$20 sps:$4 sm:$0xff]  }
 0x24d   : > { %6117 = vmatprep.subr.bf16.mxu0 %v7019_v40  ;;  %6139 = vmatprep.subr.bf16.mxu1 %v7020_v41  ;;  %v7066_v39 = vld [vmem:[#allocation5 + $0xad8] ss:$20 sps:$4 sm:$0xff]   ;;  %v7067_v40 = vld [vmem:[#allocation5 + $0xc40] ss:$20 sps:$4 sm:$0xff]   ;;  %v7085_v41 = vld [vmem:[%s8583_s4 + $0x64] ss:$12 sps:$4 sm:$0xff]  }
 0x250   : > { %6118 = vmatpush3.bf16.msra.mxu0 %v7021_v42  ;;  %6140 = vmatpush3.bf16.msra.mxu1 %v7022_v43  ;;  %v7083_v42 = vld [vmem:[%s8583_s4 + $0x60] ss:$12 sps:$4 sm:$0xff]  }
 0x251   : > { %6147 = vmatprep.subr.bf16.mxu0 %v7023_v44  ;;  %6169 = vmatprep.subr.bf16.mxu1 %v7025_v45  ;;  %v7068_v43 = vld [vmem:[#allocation5 + $0xb00] ss:$20 sps:$4 sm:$0xff]   ;;  %v7069_v44 = vld [vmem:[#allocation5 + $0xc68] ss:$20 sps:$4 sm:$0xff]  }
 0x252   : > { %v7088_v45 = vld [vmem:[%s8583_s4 + $0x7c] ss:$12 sps:$4 sm:$0xff]  }
 0x253   : > { %3527 = vmatmul.mubr.bf16.vlgmr.msra.gmra.mrb[4].mxu0 %v7269_v52  ;;  %3568 = vmatmul.mubr.bf16.vlgmr.msra.gmra.mrb[4].mxu1 %v7270_v53  ;;  %v7097_v52 = vld [vmem:[%s8583_s4 + $0xc4] ss:$12 sps:$4 sm:$0xff]   ;;  %v7098_v53 = vld [vmem:[%s8583_s4 + $0xc8] ss:$12 sps:$4 sm:$0xff]  }
 0x254   : > { %6148 = vmatpush3.bf16.msra.mxu0 %v7024_v46  ;;  %6170 = vmatpush3.bf16.msra.mxu1 %v7026_v47  ;;  %v7070_v46 = vld [vmem:[#allocation5 + $0xb28] ss:$20 sps:$4 sm:$0xff]   ;;  %v7086_v47 = vld [vmem:[%s8583_s4 + $0x78] ss:$12 sps:$4 sm:$0xff]  }
 0x255   : > { %6149 = vmatprep.subr.bf16.mxu0 %v7027_v48  ;;  %6171 = vmatprep.subr.bf16.mxu1 %v7029_v49  ;;  %v7091_v48 = vld [vmem:[%s8583_s4 + $0x94] ss:$12 sps:$4 sm:$0xff]   ;;  %v7089_v49 = vld [vmem:[%s8583_s4 + $0x90] ss:$12 sps:$4 sm:$0xff]  }
 0x256   : > { %3608 = vmatprep.mubr.bf16.mxu0 %v7271_v58  ;;  %3649 = vmatprep.mubr.bf16.mxu1 %v7272_v59  ;;  %v7104_v58 = vld [vmem:[%s8583_s4 + $0x20] ss:$12 sps:$4 sm:$0xff]  }
 0x257   : > { %v7107_v59 = vld [vmem:[%s8583_s4 + $0xf4] ss:$12 sps:$4 sm:$0xff]  }
 0x258   : > { %6150 = vmatpush3.bf16.msra.mxu0 %v7028_v50  ;;  %6172 = vmatpush3.bf16.msra.mxu1 %v7030_v51  ;;  %v7094_v50 = vld [vmem:[%s8583_s4 + $0xac] ss:$12 sps:$4 sm:$0xff]   ;;  %v7092_v51 = vld [vmem:[%s8583_s4 + $0xa8] ss:$12 sps:$4 sm:$0xff]  }
 0x259   : > { %6151 = vmatprep.subr.bf16.mxu0 %v7031_v54  ;;  %6173 = vmatprep.subr.bf16.mxu1 %v7033_v55  ;;  %v7099_v54 = vld [vmem:[%s8583_s4 + $0x8] ss:$12 sps:$4 sm:$0xff]  }
 0x25a   : > { %v7102_v55 = vld [vmem:[%s8583_s4 + $0xdc] ss:$12 sps:$4 sm:$0xff]  }
 0x25c   : > { %6152 = vmatpush3.bf16.msra.mxu0 %v7032_v56  ;;  %6174 = vmatpush3.bf16.msra.mxu1 %v7034_v57  ;;  %v7103_v56 = vld [vmem:[%s8583_s4 + $0xe0] ss:$12 sps:$4 sm:$0xff]   ;;  %v7100_v57 = vld [vmem:[%s8583_s4 + $0xd8] ss:$12 sps:$4 sm:$0xff]  }
 0x25d   : > { %6153 = vmatprep.subr.bf16.mxu0 %v7035_v60  ;;  %6175 = vmatprep.subr.bf16.mxu1 %v7037_v61  ;;  %v7108_v60 = vld [vmem:[%s8583_s4 + $0xf8] ss:$12 sps:$4 sm:$0xff]   ;;  %v7105_v61 = vld [vmem:[%s8583_s4 + $0xf0] ss:$12 sps:$4 sm:$0xff]  }
 0x260   : > { %6154 = vmatpush3.bf16.msra.mxu0 %v7036_v62  ;;  %6176 = vmatpush3.bf16.msra.mxu1 %v7038_v63  ;;  %v7109_v62 = vld [vmem:[%s8583_s4 + $0x38] ss:$12 sps:$4 sm:$0xff]  }
 0x261   : > { %6155 = vmatprep.subr.bf16.mxu0 %v7039_v0  ;;  %6177 = vmatprep.subr.bf16.mxu1 %v7041_v1  ;;  %v7112_v63 = vld [vmem:[%s8583_s4 + $0x10c] ss:$12 sps:$4 sm:$0xff]   ;;  %v7113_v0 = vld [vmem:[%s8583_s4 + $0x110] ss:$12 sps:$4 sm:$0xff]   ;;  %v7110_v1 = vld [vmem:[%s8583_s4 + $0x108] ss:$12 sps:$4 sm:$0xff]  }
 0x264   : > { %6156 = vmatpush3.bf16.msra.mxu0 %v7040_v2  ;;  %6178 = vmatpush3.bf16.msra.mxu1 %v7042_v3  ;;  %v7114_v2 = vld [vmem:[%s8583_s4 + $0x50] ss:$12 sps:$4 sm:$0xff]  }
 0x265   : > { %6157 = vmatprep.subr.bf16.mxu0 %v7043_v4  ;;  %6179 = vmatprep.subr.bf16.mxu1 %v7045_v5  ;;  %v7117_v3 = vld [vmem:[%s8583_s4 + $0x124] ss:$12 sps:$4 sm:$0xff]   ;;  %v7118_v4 = vld [vmem:[%s8583_s4 + $0x128] ss:$12 sps:$4 sm:$0xff]   ;;  %v7115_v5 = vld [vmem:[%s8583_s4 + $0x120] ss:$12 sps:$4 sm:$0xff]  }
 0x268   : > { %6158 = vmatpush3.bf16.msra.mxu0 %v7044_v6  ;;  %6180 = vmatpush3.bf16.msra.mxu1 %v7046_v7  ;;  %v7119_v6 = vld [vmem:[%s8583_s4 + $0x68] ss:$12 sps:$4 sm:$0xff]  }
 0x269   : > { %6159 = vmatprep.subr.bf16.mxu0 %v7047_v8  ;;  %6181 = vmatprep.subr.bf16.mxu1 %v7049_v9  ;;  %v7122_v7 = vld [vmem:[%s8583_s4 + $0x13c] ss:$12 sps:$4 sm:$0xff]   ;;  %v7123_v8 = vld [vmem:[%s8583_s4 + $0x140] ss:$12 sps:$4 sm:$0xff]   ;;  %v7120_v9 = vld [vmem:[%s8583_s4 + $0x138] ss:$12 sps:$4 sm:$0xff]  }
 0x26c   : > { %6160 = vmatpush3.bf16.msra.mxu0 %v7048_v10  ;;  %6182 = vmatpush3.bf16.msra.mxu1 %v7050_v12  ;;  %v7124_v10 = vld [vmem:[%s8583_s4 + $0x80] ss:$12 sps:$4 sm:$0xff]  }
 0x26d   : > { %6161 = vmatprep.subr.bf16.mxu0 %v7051_v13  ;;  %6183 = vmatprep.subr.bf16.mxu1 %v7053_v14  ;;  %v7127_v12 = vld [vmem:[%s8583_s4 + $0x154] ss:$12 sps:$4 sm:$0xff]   ;;  %v7128_v13 = vld [vmem:[%s8583_s4 + $0x158] ss:$12 sps:$4 sm:$0xff]   ;;  %v7125_v14 = vld [vmem:[%s8583_s4 + $0x150] ss:$12 sps:$4 sm:$0xff]  }
 0x270   : > { %6162 = vmatpush3.bf16.msra.mxu0 %v7052_v15  ;;  %6184 = vmatpush3.bf16.msra.mxu1 %v7054_v16  ;;  %v7129_v15 = vld [vmem:[%s8583_s4 + $0x98] ss:$12 sps:$4 sm:$0xff]  }
 0x271   : > { %6191 = vmatprep.subr.bf16.mxu0 %v7055_v17  ;;  %4724 = vmatprep.subr.bf16.mxu1 %v7073_v18  ;;  %v7132_v16 = vld [vmem:[%s8583_s4 + $0x16c] ss:$12 sps:$4 sm:$0xff]   ;;  %v7133_v17 = vld [vmem:[%s8583_s4 + $0x170] ss:$12 sps:$4 sm:$0xff]   ;;  %v7130_v18 = vld [vmem:[%s8583_s4 + $0x168] ss:$12 sps:$4 sm:$0xff]  }
 0x273   : > { %3609 = vmatmul.mubr.bf16.vlgmr.msra.gmra.mrb[8].mxu0 %v7273_v23  ;;  %3650 = vmatmul.mubr.bf16.vlgmr.msra.gmra.mrb[8].mxu1 %v7274_v24 }
 0x274   : > { %6192 = vmatpush3.bf16.msra.mxu0 %v7056_v19  ;;  %3690 = vmatprep.mubr.bf16.mxu0 %v7275_v26  ;;  %v7134_v19 = vld [vmem:[%s8583_s4 + $0xb0] ss:$12 sps:$4 sm:$0xff]  }
 0x275   : > { %6193 = vmatprep.subr.bf16.mxu0 %v7057_v20  ;;  %4725 = vmatpush1.bf16.msra.mxu1 %v7071_v21  ;;  %v7137_v20 = vld [vmem:[%s8583_s4 + $0x184] ss:$12 sps:$4 sm:$0xff]   ;;  %v7138_v21 = vld [vmem:[%s8583_s4 + $0x248] ss:$12 sps:$4 sm:$0xff]  }
 0x276   : > { %4726 = vmatprep.subr.bf16.mxu1 %v7076_v22 }
 0x278   : > { %6194 = vmatpush3.bf16.msra.mxu0 %v7058_v25 }
 0x279   : > { %6195 = vmatprep.subr.bf16.mxu0 %v7059_v27  ;;  %4727 = vmatpush1.bf16.msra.mxu1 %v7074_v28 }
 0x27a   : > { %4728 = vmatprep.subr.bf16.mxu1 %v7079_v29 }
 0x27c   : > { %6196 = vmatpush3.bf16.msra.mxu0 %v7060_v30 }
 0x27d   : > { %6197 = vmatprep.subr.bf16.mxu0 %v7061_v31  ;;  %4729 = vmatpush1.bf16.msra.mxu1 %v7077_v32 }
 0x27e   : > { %4730 = vmatprep.subr.bf16.mxu1 %v7082_v33 }
 0x280   : > { %6198 = vmatpush3.bf16.msra.mxu0 %v7062_v34 }
 0x281   : > { %6199 = vmatprep.subr.bf16.mxu0 %v7063_v35  ;;  %4731 = vmatpush1.bf16.msra.mxu1 %v7080_v36 }
 0x282   : > { %4732 = vmatprep.subr.bf16.mxu1 %v7085_v41 }
 0x284   : > { %6200 = vmatpush3.bf16.msra.mxu0 %v7064_v37 }
 0x285   : > { %6201 = vmatprep.subr.bf16.mxu0 %v7065_v38  ;;  %4733 = vmatpush1.bf16.msra.mxu1 %v7083_v42 }
 0x286   : > { %4734 = vmatprep.subr.bf16.mxu1 %v7088_v45 }
 0x288   : > { %6202 = vmatpush3.bf16.msra.mxu0 %v7066_v39 }
 0x289   : > { %6203 = vmatprep.subr.bf16.mxu0 %v7067_v40  ;;  %4735 = vmatpush1.bf16.msra.mxu1 %v7086_v47 }
 0x28a   : > { %4736 = vmatprep.subr.bf16.mxu1 %v7091_v48 }
 0x28c   : > { %6204 = vmatpush3.bf16.msra.mxu0 %v7068_v43 }
 0x28d   : > { %6205 = vmatprep.subr.bf16.mxu0 %v7069_v44  ;;  %4737 = vmatpush1.bf16.msra.mxu1 %v7089_v49 }
 0x28e   : > { %4738 = vmatprep.subr.bf16.mxu1 %v7094_v50 }
 0x290   : > { %6206 = vmatpush3.bf16.msra.mxu0 %v7070_v46 }
 0x291   : > { %4739 = vmatpush1.bf16.msra.mxu1 %v7092_v51  ;;  %6213 = vmatprep.subr.bf16.mxu0 %v7098_v53 }
 0x292   : > { %4740 = vmatprep.subr.bf16.mxu1 %v7097_v52 }
 0x293   : > { %3691 = vmatmul.mubr.bf16.vlgmr.msra.gmra.mrb[12].mxu0 %v7961_v11  ;;  %v7095_v11 = vld [vmem:[%s8583_s4 + $0xc0] ss:$12 sps:$4 sm:$0xff]  }
 0x294   : > { %6214 = vmatpush3.bf16.msra.mxu0 %v7099_v54 }
 0x295   : > { %4741 = vmatpush1.bf16.msra.mxu1 %v7095_v11  ;;  %6215 = vmatprep.subr.bf16.mxu0 %v7103_v56 }
 0x296   : > { %4742 = vmatprep.subr.bf16.mxu1 %v7102_v55 }
 0x298   : > { %6216 = vmatpush3.bf16.msra.mxu0 %v7104_v58 }
 0x299   : > { %4743 = vmatpush1.bf16.msra.mxu1 %v7100_v57  ;;  %6217 = vmatprep.subr.bf16.mxu0 %v7108_v60 }
 0x29a   : > { %4744 = vmatprep.subr.bf16.mxu1 %v7107_v59 }
 0x29c   : > { %6218 = vmatpush3.bf16.msra.mxu0 %v7109_v62 }
 0x29d   : > { %4745 = vmatpush1.bf16.msra.mxu1 %v7105_v61  ;;  %6219 = vmatprep.subr.bf16.mxu0 %v7113_v0 }
 0x29e   : > { %4746 = vmatprep.subr.bf16.mxu1 %v7112_v63 }
 0x2a0   : > { %6220 = vmatpush3.bf16.msra.mxu0 %v7114_v2 }
 0x2a1   : > { %4747 = vmatpush1.bf16.msra.mxu1 %v7110_v1  ;;  %6221 = vmatprep.subr.bf16.mxu0 %v7118_v4 }
 0x2a2   : > { %4748 = vmatprep.subr.bf16.mxu1 %v7117_v3 }
 0x2a4   : > { %6222 = vmatpush3.bf16.msra.mxu0 %v7119_v6 }
 0x2a5   : > { %4749 = vmatpush1.bf16.msra.mxu1 %v7115_v5  ;;  %6223 = vmatprep.subr.bf16.mxu0 %v7123_v8 }
 0x2a6   : > { %4750 = vmatprep.subr.bf16.mxu1 %v7122_v7 }
 0x2a8   : > { %6224 = vmatpush3.bf16.msra.mxu0 %v7124_v10 }
 0x2a9   : > { %4751 = vmatpush1.bf16.msra.mxu1 %v7120_v9  ;;  %6225 = vmatprep.subr.bf16.mxu0 %v7128_v13 }
 0x2aa   : > { %4752 = vmatprep.subr.bf16.mxu1 %v7127_v12 }
 0x2ac   : > { %6226 = vmatpush3.bf16.msra.mxu0 %v7129_v15 }
 0x2ad   : > { %4753 = vmatpush1.bf16.msra.mxu1 %v7125_v14  ;;  %6227 = vmatprep.subr.bf16.mxu0 %v7133_v17 }
 0x2ae   : > { %4754 = vmatprep.subr.bf16.mxu1 %v7132_v16 }
 0x2b0   : > { %6228 = vmatpush3.bf16.msra.mxu0 %v7134_v19 }
 0x2b1   : > { %4755 = vmatpush1.bf16.msra.mxu1 %v7130_v18  ;;  %6235 = vmatprep.subr.bf16.mxu0 %v7138_v21 }
 0x2b2   : > { %4767 = vmatprep.subr.bf16.mxu1 %v7137_v20 }
 0x306   : > { %v8125_v22 = vpop.f32.mrb[0].mxu0  ;;  %v8127_v23 = vpop.f32.mrb[0].mxu1 }
 0x307   : > { %v8129_v24 = vpop.f32.mrb[1].mxu0  ;;  %v8131_v25 = vpop.f32.mrb[1].mxu1  ;;  %v3742_v26 = vmul.f32 %v8125_v22, %v8125_v22  ;;  %v3744_v27 = vmul.f32 %v8127_v23, %v8127_v23 }
 0x308   : > { %v3743_v28 = vmul.f32 %v8129_v24, %v8129_v24  ;;  %v3745_v29 = vmul.f32 %v8131_v25, %v8131_v25  ;;  %v8141_v30 = vpop.f32.mrb[2].mxu0  ;;  %v8143_v31 = vpop.f32.mrb[2].mxu1 }
 0x309   : > { %v3701_v32 = vadd.f32 %v8141_v30, %v8125_v22  ;;  %v3747_v33 = vmul.f32 %v8141_v30, %v8141_v30  ;;  %v3715_v34 = vadd.f32 %v8143_v31, %v8127_v23  ;;  %v3749_v35 = vmul.f32 %v8143_v31, %v8143_v31  ;;  %v8153_v36 = vpop.f32.mrb[3].mxu0  ;;  %v8155_v37 = vpop.f32.mrb[3].mxu1 }
 0x30a   : > { %v3708_v38 = vadd.f32 %v8153_v36, %v8129_v24  ;;  %v3748_v39 = vmul.f32 %v8153_v36, %v8153_v36  ;;  %v3722_v40 = vadd.f32 %v8155_v37, %v8131_v25  ;;  %v3750_v41 = vmul.f32 %v8155_v37, %v8155_v37 }
 0x30b   : > { %v3702_v42 = vrot.slane %v3701_v32, 4  ;;  %v3752_v43 = vadd.f32 %v3747_v33, %v3742_v26  ;;  %v3716_v44 = vrot.slane %v3715_v34, 4  ;;  %v3766_v45 = vadd.f32 %v3749_v35, %v3744_v27 }
 0x30c   : > { %v3709_v46 = vrot.slane %v3708_v38, 4  ;;  %v3759_v47 = vadd.f32 %v3748_v39, %v3743_v28  ;;  %v3723_v48 = vrot.slane %v3722_v40, 4  ;;  %v3773_v49 = vadd.f32 %v3750_v41, %v3745_v29 }
 0x30d   : > { %v3703_v50 = vadd.f32 %v3702_v42, %v3701_v32  ;;  %v3753_v51 = vrot.slane %v3752_v43, 4  ;;  %v3717_v52 = vadd.f32 %v3716_v44, %v3715_v34  ;;  %v3767_v53 = vrot.slane %v3766_v45, 4 }
 0x30e   : > { %v3710_v11 = vadd.f32 %v3709_v46, %v3708_v38  ;;  %v3760_v54 = vrot.slane %v3759_v47, 4  ;;  %v3724_v55 = vadd.f32 %v3723_v48, %v3722_v40  ;;  %v3774_v56 = vrot.slane %v3773_v49, 4 }
 0x30f   : > { %v3704_v57 = vrot.slane %v3703_v50, 2  ;;  %v3754_v58 = vadd.f32 %v3753_v51, %v3752_v43  ;;  %v3718_v59 = vrot.slane %v3717_v52, 2  ;;  %v3768_v60 = vadd.f32 %v3767_v53, %v3766_v45 }
 0x310   : > { %v3711_v61 = vrot.slane %v3710_v11, 2  ;;  %v3761_v62 = vadd.f32 %v3760_v54, %v3759_v47  ;;  %v3725_v63 = vrot.slane %v3724_v55, 2  ;;  %v3775_v0 = vadd.f32 %v3774_v56, %v3773_v49 }
 0x311   : > { %v3705_v1 = vadd.f32 %v3704_v57, %v3703_v50  ;;  %v3755_v2 = vrot.slane %v3754_v58, 2  ;;  %v3719_v3 = vadd.f32 %v3718_v59, %v3717_v52  ;;  %v3769_v4 = vrot.slane %v3768_v60, 2 }
 0x312   : > { %v3712_v5 = vadd.f32 %v3711_v61, %v3710_v11  ;;  %v3762_v6 = vrot.slane %v3761_v62, 2  ;;  %v3726_v7 = vadd.f32 %v3725_v63, %v3724_v55  ;;  %v3776_v8 = vrot.slane %v3775_v0, 2 }
 0x313   : > { %v3706_v9 = vrot.slane %v3705_v1, 1  ;;  %v3756_v10 = vadd.f32 %v3755_v2, %v3754_v58  ;;  %v3720_v12 = vrot.slane %v3719_v3, 1  ;;  %v3770_v13 = vadd.f32 %v3769_v4, %v3768_v60  ;;  %v8202_v2 = vld [vmem:[#allocation7] sm:$0x1f] }
 0x314   : > { %v3713_v14 = vrot.slane %v3712_v5, 1  ;;  %v3763_v15 = vadd.f32 %v3762_v6, %v3761_v62  ;;  %v3727_v16 = vrot.slane %v3726_v7, 1  ;;  %v3777_v17 = vadd.f32 %v3776_v8, %v3775_v0 }
 0x315   : > { %v3707_v18 = vadd.f32 %v3706_v9, %v3705_v1  ;;  %v3757_v19 = vrot.slane %v3756_v10, 1  ;;  %v3721_v20 = vadd.f32 %v3720_v12, %v3719_v3  ;;  %v3771_v21 = vrot.slane %v3770_v13, 1 }
 0x316   : > { %v3714_v26 = vadd.f32 %v3713_v14, %v3712_v5  ;;  %v3764_v27 = vrot.slane %v3763_v15, 1  ;;  %v3728_v28 = vadd.f32 %v3727_v16, %v3726_v7  ;;  %v3778_v29 = vrot.slane %v3777_v17, 1  ;;  %v8210_v7 = vld [vmem:[#allocation8] sm:$0x1f] }
 0x317   : > { %v8165_v32 = vmul.f32 0.0625, %v3707_v18  ;;  %v3758_v33 = vadd.f32 %v3757_v19, %v3756_v10  ;;  %v8167_v34 = vmul.f32 0.0625, %v3721_v20  ;;  %v3772_v35 = vadd.f32 %v3771_v21, %v3770_v13 }
 0x318   : > { %v8169_v38 = vmul.f32 0.0625, %v3714_v26  ;;  %v3765_v39 = vadd.f32 %v3764_v27, %v3763_v15  ;;  %v8171_v40 = vmul.f32 0.0625, %v3728_v28  ;;  %v3779_v41 = vadd.f32 %v3778_v29, %v3777_v17 }
 0x319   : > { %v3787_v42 = vmul.f32 0.0625, %v3758_v33  ;;  %v3792_v43 = vmul.f32 %v8165_v32, %v8165_v32  ;;  %v3807_v44 = vsub.f32 %v8125_v22, %v8165_v32  ;;  %v3812_v45 = vsub.f32 %v8141_v30, %v8165_v32 }
 0x31a   : > { %v3789_v46 = vmul.f32 0.0625, %v3772_v35  ;;  %v3794_v47 = vmul.f32 %v8167_v34, %v8167_v34  ;;  %v3809_v48 = vsub.f32 %v8127_v23, %v8167_v34  ;;  %v3814_v49 = vsub.f32 %v8143_v31, %v8167_v34 }
 0x31b   : > { %v3797_v50 = vsub.f32 %v3787_v42, %v3792_v43  ;;  %v3788_v51 = vmul.f32 0.0625, %v3765_v39  ;;  %v3793_v52 = vmul.f32 %v8169_v38, %v8169_v38  ;;  %v3813_v22 = vsub.f32 %v8153_v36, %v8169_v38 }
 0x31c   : > { %v3799_v53 = vsub.f32 %v3789_v46, %v3794_v47  ;;  %v3790_v30 = vmul.f32 0.0625, %v3779_v41  ;;  %v3795_v11 = vmul.f32 %v8171_v40, %v8171_v40  ;;  %v3815_v54 = vsub.f32 %v8155_v37, %v8171_v40 }
 0x31d   : > { %v3802_v23 = vmax.f32 %v3797_v50, 0.0  ;;  %v3798_v55 = vsub.f32 %v3788_v51, %v3793_v52  ;;  %v3808_v31 = vsub.f32 %v8129_v24, %v8169_v38  ;;  %v3810_v56 = vsub.f32 %v8131_v25, %v8171_v40 }
 0x31e   : > { %v3838_v57 = vlaneseq  ;;  %v3804_v58 = vmax.f32 %v3799_v53, 0.0  ;;  %v3800_v59 = vsub.f32 %v3790_v30, %v3795_v11 }
 0x31f   : > { %v3817_v36 = vadd.f32 1e-05, %v3802_v23  ;;  %v3803_v60 = vmax.f32 %v3798_v55, 0.0 }
 0x320   : > { %v3819_v61 = vadd.f32 1e-05, %v3804_v58  ;;  %v3805_v62 = vmax.f32 %v3800_v59, 0.0  ;;  %v8197_v0 = vshrl.u32 %v3838_v57, 7 }
 0x321   : > { %7251 = vrsqrt.f32 %v3817_v36  ;;  %v3818_v63 = vadd.f32 1e-05, %v3803_v60 }
 0x322   : > { %7253 = vrsqrt.f32 %v3819_v61  ;;  %v3820_v37 = vadd.f32 1e-05, %v3805_v62  ;;  %v8200_v24 = vsub.s32 0, %v8197_v0  ;;  %v8205_v3 = vsub.s32 2, %v8197_v0 }
 0x323   : > { %7255 = vrsqrt.f32 %v3818_v63  ;;  %v8208_v4 = vsub.s32 1, %v8197_v0  ;;  %v3852_v8 = vsub.s32 3, %v8197_v0 }
 0x324   : > { %7257 = vrsqrt.f32 %v3820_v37  ;;  %v3841_v16 = vrot.slane %v8202_v2, %v8200_v24  ;;  %v3877_v21 = vrot.slane %v8210_v7, %v8200_v24  ;;  %v3849_v26 = vrot.slane %v8202_v2, %v8205_v3 }
 0x325   : > { %v3885_v27 = vrot.slane %v8210_v7, %v8205_v3  ;;  %v3845_v28 = vrot.slane %v8202_v2, %v8208_v4  ;;  %v3853_v34 = vrot.slane %v8202_v2, %v3852_v8  ;;  %v3881_v41 = vrot.slane %v8210_v7, %v8208_v4 }
 0x326   : > { %v6119_v1 = vpop.f32.mrb[4].mxu0  ;;  %v6141_v25 = vpop.f32.mrb[4].mxu1  ;;  %v3889_v42 = vrot.slane %v8210_v7, %v3852_v8  ;;  %v7135_v8 = vld [vmem:[%s8583_s4 + $0x180] ss:$12 sps:$4 sm:$0xff]  }
 0x327   : > { %v6120_v5 = vpop.f32.mrb[5].mxu0  ;;  %v6142_v6 = vpop.f32.mrb[5].mxu1 }
 0x328   : > { %v6121_v9 = vadd.f32 %v6120_v5, %v6119_v1  ;;  %v6143_v10 = vadd.f32 %v6142_v6, %v6141_v25  ;;  %v6122_v12 = vpop.f32.mrb[6].mxu0  ;;  %v6144_v13 = vpop.f32.mrb[6].mxu1 }
 0x329   : > { %v6123_v14 = vpop.f32.mrb[7].mxu0  ;;  %v6145_v15 = vpop.f32.mrb[7].mxu1 }
 0x32a   : > { %v8215_v17 = vadd.f32 %v6143_v10, %v6121_v9  ;;  %v6124_v18 = vadd.f32 %v6123_v14, %v6122_v12  ;;  %v6146_v19 = vadd.f32 %v6145_v15, %v6144_v13  ;;  %v7139_v9 = vld [vmem:[%s8583_s4 + $0x188] ss:$12 sps:$4 sm:$0xff]   ;;  %v7143_v13 = vld [vmem:[%s8583_s4 + $0x260] ss:$12 sps:$4 sm:$0xff]   ;;  %v7140_v14 = vld [vmem:[%s8583_s4 + $0x198] ss:$12 sps:$4 sm:$0xff]  }
 0x32b   : > { %v7252_v20 = vpop.eup %7251  ;;  %v7142_v12 = vld [vmem:[%s8583_s4 + $0x19c] ss:$12 sps:$4 sm:$0xff]   ;;  %v7144_v15 = vld [vmem:[%s8583_s4 + $0x1a0] ss:$12 sps:$4 sm:$0xff]  }
 0x32c   : > { %v7254_v29 = vpop.eup %7253  ;;  %v3827_v32 = vmul.f32 %v7252_v20, %v3807_v44  ;;  %v3832_v33 = vmul.f32 %v7252_v20, %v3812_v45  ;;  %v8226_v35 = vadd.f32 %v6146_v19, %v6124_v18  ;;  %v7148_v18 = vld [vmem:[%s8583_s4 + $0x278] ss:$12 sps:$4 sm:$0xff]   ;;  %v7145_v19 = vld [vmem:[%s8583_s4 + $0x1b0] ss:$12 sps:$4 sm:$0xff]  }
 0x32d   : > { %v7256_v38 = vpop.eup %7255  ;;  %v3829_v39 = vmul.f32 %v7254_v29, %v3809_v48  ;;  %v3834_v40 = vmul.f32 %v7254_v29, %v3814_v49  ;;  %v7149_v20 = vld [vmem:[%s8583_s4 + $0x1b8] ss:$12 sps:$4 sm:$0xff]  }
 0x32e   : > { %v7258_v43 = vpop.eup %7257  ;;  %v3863_v46 = vmul.f32 %v3841_v16, %v3827_v32  ;;  %v3868_v47 = vmul.f32 %v3841_v16, %v3832_v33  ;;  %v3833_v50 = vmul.f32 %v7256_v38, %v3813_v22  ;;  %v3828_v51 = vmul.f32 %v7256_v38, %v3808_v31  ;;  %v7147_v16 = vld [vmem:[%s8583_s4 + $0x1b4] ss:$12 sps:$4 sm:$0xff]   ;;  %v7157_v29 = vld [vmem:[%s8583_s4 + $0x1e4] ss:$12 sps:$4 sm:$0xff]  }
 0x32f   : > { %v3865_v52 = vmul.f32 %v3849_v26, %v3829_v39  ;;  %v3870_v44 = vmul.f32 %v3849_v26, %v3834_v40  ;;  %v3835_v45 = vmul.f32 %v7258_v43, %v3815_v54  ;;  %v3830_v53 = vmul.f32 %v7258_v43, %v3810_v56  ;;  %v7153_v26 = vld [vmem:[%s8583_s4 + $0x290] ss:$12 sps:$4 sm:$0xff]   ;;  %v7158_v32 = vld [vmem:[%s8583_s4 + $0x2a8] ss:$12 sps:$4 sm:$0xff]   ;;  %v7163_v43 = vld [vmem:[%s8583_s4 + $0x2c0] ss:$12 sps:$4 sm:$0xff]  }
 0x330   : > { %v3904_v30 = vadd.f32 %v3877_v21, %v3868_v47  ;;  %v3869_v11 = vmul.f32 %v3845_v28, %v3833_v50  ;;  %v3864_v23 = vmul.f32 %v3845_v28, %v3828_v51  ;;  %v3899_v55 = vadd.f32 %v3877_v21, %v3863_v46  ;;  %v7152_v21 = vld [vmem:[%s8583_s4 + $0x1cc] ss:$12 sps:$4 sm:$0xff]   ;;  %v7154_v28 = vld [vmem:[%s8583_s4 + $0x1d0] ss:$12 sps:$4 sm:$0xff]   ;;  %v7159_v39 = vld [vmem:[%s8583_s4 + $0x1e8] ss:$12 sps:$4 sm:$0xff]  }
 0x331   : > { %v3906_v48 = vadd.f32 %v3885_v27, %v3870_v44  ;;  %v3871_v49 = vmul.f32 %v3853_v34, %v3835_v45  ;;  %v3866_v57 = vmul.f32 %v3853_v34, %v3830_v53  ;;  %v3901_v58 = vadd.f32 %v3885_v27, %v3865_v52  ;;  %v7150_v27 = vld [vmem:[%s8583_s4 + $0x1c8] ss:$12 sps:$4 sm:$0xff]   ;;  %v7155_v34 = vld [vmem:[%s8583_s4 + $0x1e0] ss:$12 sps:$4 sm:$0xff]  }
 0x332   : > { %v3900_v59 = vadd.f32 %v3881_v41, %v3864_v23  ;;  %v3905_v36 = vadd.f32 %v3881_v41, %v3869_v11  ;;  %v3909_v60 = vmax.f32 %v3899_v55, 0.0  ;;  %v3914_v61 = vmax.f32 %v3904_v30, 0.0  ;;  %v7160_v11 = vld [vmem:[%s8583_s4 + $0x1f8] ss:$12 sps:$4 sm:$0xff]   ;;  %v7164_v23 = vld [vmem:[%s8583_s4 + $0x200] ss:$12 sps:$4 sm:$0xff]  }
 0x333   : > { %v3902_v62 = vadd.f32 %v3889_v42, %v3866_v57  ;;  %v3907_v63 = vadd.f32 %v3889_v42, %v3871_v49  ;;  %v3911_v22 = vmax.f32 %v3901_v58, 0.0  ;;  %v3916_v31 = vmax.f32 %v3906_v48, 0.0  ;;  %v7162_v42 = vld [vmem:[%s8583_s4 + $0x1fc] ss:$12 sps:$4 sm:$0xff]   ;;  %v7167_v55 = vld [vmem:[%s8583_s4 + $0x214] ss:$12 sps:$4 sm:$0xff]  }
 0x334   : > { %v3910_v37 = vmax.f32 %v3900_v59, 0.0  ;;  %v3915_v1 = vmax.f32 %v3905_v36, 0.0  ;;  %v3919_v54 = vpack.c.bf16 %v3914_v61, %v3909_v60  ;;  %v7165_v58 = vld [vmem:[%s8583_s4 + $0x210] ss:$12 sps:$4 sm:$0xff]   ;;  %v7169_v59 = vld [vmem:[%s8583_s4 + $0x218] ss:$12 sps:$4 sm:$0xff]  }
 0x335   : > { %v3912_v56 = vmax.f32 %v3902_v62, 0.0  ;;  %v3917_v25 = vmax.f32 %v3907_v63, 0.0  ;;  %v8231_v5 = vpack.c.bf16 %v3916_v31, %v3911_v22  ;;  %v7172_v36 = vld [vmem:[%s8583_s4 + $0x22c] ss:$12 sps:$4 sm:$0xff]   ;;  %v7170_v60 = vld [vmem:[%s8583_s4 + $0x228] ss:$12 sps:$4 sm:$0xff]  }
 0x336   : > { %v3920_v6 = vpack.c.bf16 %v3915_v1, %v3910_v37  ;;  %v7174_v61 = vld [vmem:[%s8583_s4 + $0x230] ss:$12 sps:$4 sm:$0xff]   ;;  %v7175_v63 = vld [vmem:[%s8583_s4 + $0x240] ss:$12 sps:$4 sm:$0xff]   ;;  %v7202_v22 = vld [vmem:[%s8583_s4 + $0x308] ss:$12 sps:$4 sm:$0xff]  }
 0x337   : > { %v3922_v10 = vpack.c.bf16 %v3917_v25, %v3912_v56  ;;  %v7177_v62 = vld [vmem:[%s8583_s4 + $0x244] ss:$12 sps:$4 sm:$0xff]   ;;  %v7180_v31 = vld [vmem:[%s8583_s4 + $0x25c] ss:$12 sps:$4 sm:$0xff]   ;;  %v7600_v37 = vmov 0.0  }
 0x338   : > { %4756 = vmatprep.mubr.bf16.mxu1 %v3920_v6  ;;  %4885 = vmatprep.mubr.bf16.mxu0 %v3920_v6  ;;  %v7178_v1 = vld [vmem:[%s8583_s4 + $0x258] ss:$12 sps:$4 sm:$0xff]   ;;  %v7183_v56 = vld [vmem:[%s8583_s4 + $0x274] ss:$12 sps:$4 sm:$0xff]   ;;  %v7181_v25 = vld [vmem:[%s8583_s4 + $0x270] ss:$12 sps:$4 sm:$0xff]  }
 0x339   : > { %4757 = vmatmul.mubr.bf16.vlgmr.msra.gmra.mrb[12].mxu1 %v3919_v54  ;;  %4886 = vmatmul.mubr.bf16.vlgmr.msra.gmra.mrb[16].mxu0 %v3919_v54  ;;  %v7206_v54 = vld [vmem:[%s8583_s4 + $0x320] ss:$12 sps:$4 sm:$0xff]   ;;  %v7210_v6 = vld [vmem:[%s8583_s4 + $0x338] ss:$12 sps:$4 sm:$0xff]  }
 0x33a   : > { %4768 = vmatpush1.bf16.msra.mxu1 %v7135_v8  ;;  %6236 = vmatpush3.bf16.msra.mxu0 %v7139_v9  ;;  %v7186_v8 = vld [vmem:[%s8583_s4 + $0x28c] ss:$12 sps:$4 sm:$0xff]   ;;  %v7184_v9 = vld [vmem:[%s8583_s4 + $0x288] ss:$12 sps:$4 sm:$0xff]  }
 0x33b   : > { %4799 = vmatprep.mubr.bf16.mxu1 %v3922_v10  ;;  %4926 = vmatprep.mubr.bf16.mxu0 %v3922_v10  ;;  %v7214_v10 = vld [vmem:[%s8583_s4 + $0x350] ss:$12 sps:$4 sm:$0xff]  }
 0x33c   : > { %4769 = vmatprep.subr.bf16.mxu1 %v7142_v12  ;;  %6237 = vmatprep.subr.bf16.mxu0 %v7143_v13  ;;  %v7189_v12 = vld [vmem:[%s8583_s4 + $0x2a4] ss:$12 sps:$4 sm:$0xff]  }
 0x33e   : > { %4770 = vmatpush1.bf16.msra.mxu1 %v7140_v14  ;;  %6238 = vmatpush3.bf16.msra.mxu0 %v7144_v15  ;;  %v7187_v14 = vld [vmem:[%s8583_s4 + $0x2a0] ss:$12 sps:$4 sm:$0xff]   ;;  %v7218_v15 = vld [vmem:[%s8583_s4 + $0x368] ss:$12 sps:$4 sm:$0xff]  }
 0x33f   : > { %4771 = vmatprep.subr.bf16.mxu1 %v7147_v16  ;;  %6239 = vmatprep.subr.bf16.mxu0 %v7148_v18  ;;  %v7192_v18 = vld [vmem:[%s8583_s4 + $0x2bc] ss:$12 sps:$4 sm:$0xff]  }
 0x342   : > { %4772 = vmatpush1.bf16.msra.mxu1 %v7145_v19  ;;  %6240 = vmatpush3.bf16.msra.mxu0 %v7149_v20 }
 0x343   : > { %4773 = vmatprep.subr.bf16.mxu1 %v7152_v21  ;;  %6241 = vmatprep.subr.bf16.mxu0 %v7153_v26 }
 0x346   : > { %4774 = vmatpush1.bf16.msra.mxu1 %v7150_v27  ;;  %6242 = vmatpush3.bf16.msra.mxu0 %v7154_v28  ;;  %v6163_v33 = vpop.f32.mrb[8].mxu0  ;;  %v6185_v38 = vpop.f32.mrb[8].mxu1  ;;  %v7190_v28 = vld [vmem:[%s8583_s4 + $0x2b8] ss:$12 sps:$4 sm:$0xff]  }
 0x347   : > { %v6164_v40 = vpop.f32.mrb[9].mxu0  ;;  %4775 = vmatprep.subr.bf16.mxu1 %v7157_v29  ;;  %6243 = vmatprep.subr.bf16.mxu0 %v7158_v32  ;;  %v6186_v41 = vpop.f32.mrb[9].mxu1  ;;  %v7222_v29 = vld [vmem:[%s8583_s4 + $0x380] ss:$12 sps:$4 sm:$0xff]  }
 0x348   : > { %v6165_v46 = vadd.f32 %v6164_v40, %v6163_v33  ;;  %v6166_v47 = vpop.f32.mrb[10].mxu0  ;;  %v6187_v50 = vadd.f32 %v6186_v41, %v6185_v38  ;;  %v6188_v51 = vpop.f32.mrb[10].mxu1  ;;  %v7195_v32 = vld [vmem:[%s8583_s4 + $0x2d4] ss:$12 sps:$4 sm:$0xff]   ;;  %v7193_v40 = vld [vmem:[%s8583_s4 + $0x2d0] ss:$12 sps:$4 sm:$0xff]  }
 0x349   : > { %v6167_v52 = vpop.f32.mrb[11].mxu0  ;;  %v6189_v44 = vpop.f32.mrb[11].mxu1  ;;  %v7226_v41 = vld [vmem:[%s8583_s4 + $0x398] ss:$12 sps:$4 sm:$0xff]  }
 0x34a   : > { %v3611_v45 = vadd.f32 %v6165_v46, %v8215_v17  ;;  %4776 = vmatpush1.bf16.msra.mxu1 %v7155_v34  ;;  %6244 = vmatpush3.bf16.msra.mxu0 %v7159_v39  ;;  %v6168_v53 = vadd.f32 %v6167_v52, %v6166_v47  ;;  %v6190_v30 = vadd.f32 %v6189_v44, %v6188_v51  ;;  %v7168_v17 = vld [vmem:[%s8583_s4 + $0x2d8] ss:$12 sps:$4 sm:$0xff]   ;;  %v7196_v51 = vld [vmem:[%s8583_s4 + $0x2e8] ss:$12 sps:$4 sm:$0xff]   ;;  %v7230_v52 = vld [vmem:[%s8583_s4 + $0x3b0] ss:$12 sps:$4 sm:$0xff]  }
 0x34b   : > { %4777 = vmatprep.subr.bf16.mxu1 %v7162_v42  ;;  %6245 = vmatprep.subr.bf16.mxu0 %v7163_v43  ;;  %v7198_v42 = vld [vmem:[%s8583_s4 + $0x2ec] ss:$12 sps:$4 sm:$0xff]   ;;  %v7201_v44 = vld [vmem:[%s8583_s4 + $0x304] ss:$12 sps:$4 sm:$0xff]  }
 0x34c   : > { %v3614_v48 = vadd.f32 %v6168_v53, %v8226_v35  ;;  %v3652_v49 = vadd.f32 %v6187_v50, %v3611_v45  ;;  %v7173_v35 = vld [vmem:[%s8583_s4 + $0x2f0] ss:$12 sps:$4 sm:$0xff]  }
 0x34e   : > { %v8307_v57 = vadd.f32 %v6190_v30, %v3614_v48  ;;  %4778 = vmatpush1.bf16.msra.mxu1 %v7160_v11  ;;  %6246 = vmatpush3.bf16.msra.mxu0 %v7164_v23  ;;  %v7199_v23 = vld [vmem:[%s8583_s4 + $0x300] ss:$12 sps:$4 sm:$0xff]  }
 0x34f   : > { %4779 = vmatprep.subr.bf16.mxu1 %v7167_v55  ;;  %6247 = vmatprep.subr.bf16.mxu0 %v7168_v17  ;;  %v7205_v55 = vld [vmem:[%s8583_s4 + $0x31c] ss:$12 sps:$4 sm:$0xff]  }
 0x352   : > { %4780 = vmatpush1.bf16.msra.mxu1 %v7165_v58  ;;  %6248 = vmatpush3.bf16.msra.mxu0 %v7169_v59  ;;  %v7203_v58 = vld [vmem:[%s8583_s4 + $0x318] ss:$12 sps:$4 sm:$0xff]   ;;  %v7602_v59 = vmov 0  }
 0x353   : > { %4781 = vmatprep.subr.bf16.mxu1 %v7172_v36  ;;  %6249 = vmatprep.subr.bf16.mxu0 %v7173_v35  ;;  %v7209_v36 = vld [vmem:[%s8583_s4 + $0x334] ss:$12 sps:$4 sm:$0xff]  }
 0x356   : > { %4782 = vmatpush1.bf16.msra.mxu1 %v7170_v60  ;;  %6250 = vmatpush3.bf16.msra.mxu0 %v7174_v61 }
 0x357   : > { %4783 = vmatprep.subr.bf16.mxu1 %v7177_v62  ;;  %6293 = vmatprep.subr.bf16.mxu0 %v7600_v37 }
 0x359   : > { %4927 = vmatmul.mubr.bf16.vlgmr.msra.gmra.mrb[20].mxu0 %v8231_v5 }
 0x35a   : > { %4784 = vmatpush1.bf16.msra.mxu1 %v7175_v63  ;;  %6294 = vmatpush3.bf16.msra.mxu0 %v7202_v22  ;;  %v7207_v63 = vld [vmem:[%s8583_s4 + $0x330] ss:$12 sps:$4 sm:$0xff]  }
 0x35b   : > { %4785 = vmatprep.subr.bf16.mxu1 %v7180_v31  ;;  %6295 = vmatprep.subr.bf16.mxu0 %v7600_v37  ;;  %v7213_v31 = vld [vmem:[%s8583_s4 + $0x34c] ss:$12 sps:$4 sm:$0xff]  }
 0x35c   : > { %6309 = vmatprep.mubr.msk.bf16.mxu0 %vm7601_vm0, %v7600_v37 }
 0x35e   : > { %4786 = vmatpush1.bf16.msra.mxu1 %v7178_v1  ;;  %6296 = vmatpush3.bf16.msra.mxu0 %v7206_v54 }
 0x35f   : > { %4787 = vmatprep.subr.bf16.mxu1 %v7183_v56  ;;  %6297 = vmatprep.subr.bf16.mxu0 %v7600_v37  ;;  %v7211_v56 = vld [vmem:[%s8583_s4 + $0x348] ss:$12 sps:$4 sm:$0xff]  }
 0x362   : > { %4788 = vmatpush1.bf16.msra.mxu1 %v7181_v25  ;;  %6298 = vmatpush3.bf16.msra.mxu0 %v7210_v6  ;;  %v7217_v25 = vld [vmem:[%s8583_s4 + $0x364] ss:$12 sps:$4 sm:$0xff]  }
 0x363   : > { %4789 = vmatprep.subr.bf16.mxu1 %v7186_v8  ;;  %6299 = vmatprep.subr.bf16.mxu0 %v7600_v37  ;;  %v7215_v8 = vld [vmem:[%s8583_s4 + $0x360] ss:$12 sps:$4 sm:$0xff]  }
 0x366   : > { %4790 = vmatpush1.bf16.msra.mxu1 %v7184_v9  ;;  %v6207_v13 = vpop.f32.mrb[12].mxu0  ;;  %6300 = vmatpush3.bf16.msra.mxu0 %v7214_v10  ;;  %v7221_v9 = vld [vmem:[%s8583_s4 + $0x37c] ss:$12 sps:$4 sm:$0xff]   ;;  %v7219_v10 = vld [vmem:[%s8583_s4 + $0x378] ss:$12 sps:$4 sm:$0xff]  }
 0x367   : > { %v6208_v16 = vpop.f32.mrb[13].mxu0  ;;  %4791 = vmatprep.subr.bf16.mxu1 %v7189_v12  ;;  %6301 = vmatprep.subr.bf16.mxu0 %v7600_v37  ;;  %v3856_v12 = vsub.s32 4, %v8197_v0 }
 0x368   : > { %v6209_v19 = vadd.f32 %v6208_v16, %v6207_v13  ;;  %v6210_v20 = vpop.f32.mrb[14].mxu0  ;;  %v7225_v13 = vld [vmem:[%s8583_s4 + $0x394] ss:$12 sps:$4 sm:$0xff]   ;;  %v7229_v16 = vld [vmem:[%s8583_s4 + $0x3ac] ss:$12 sps:$4 sm:$0xff]  }
 0x369   : > { %v6211_v21 = vpop.f32.mrb[15].mxu0 }
 0x36a   : > { %v8383_v26 = vadd.f32 %v6209_v19, %v3652_v49  ;;  %4792 = vmatpush1.bf16.msra.mxu1 %v7187_v14  ;;  %v6212_v27 = vadd.f32 %v6211_v21, %v6210_v20  ;;  %6302 = vmatpush3.bf16.msra.mxu0 %v7218_v15  ;;  %v7223_v14 = vld [vmem:[%s8583_s4 + $0x390] ss:$12 sps:$4 sm:$0xff]   ;;  %v3857_v15 = vrot.slane %v8202_v2, %v3856_v12  ;;  %v7227_v21 = vld [vmem:[%s8583_s4 + $0x3a8] ss:$12 sps:$4 sm:$0xff]  }
 0x36b   : > { %4793 = vmatprep.subr.bf16.mxu1 %v7192_v18  ;;  %6303 = vmatprep.subr.bf16.mxu0 %v7600_v37  ;;  %v3893_v20 = vrot.slane %v8210_v7, %v3856_v12  ;;  %v7233_v7 = vld [vmem:[#allocation13 + $0x48] sm:$0xff]  }
 0x36c   : > { %v8396_v33 = vadd.f32 %v6212_v27, %v8307_v57  ;;  %v3746_v34 = vmul.f32 %v8383_v26, %v8383_v26 }
 0x36e   : > { %v3729_v38 = vadd.f32 %v8396_v33, %v8383_v26  ;;  %v3751_v39 = vmul.f32 %v8396_v33, %v8396_v33  ;;  %4794 = vmatpush1.bf16.msra.mxu1 %v7190_v28  ;;  %6304 = vmatpush3.bf16.msra.mxu0 %v7222_v29 }
 0x36f   : > { %4795 = vmatprep.subr.bf16.mxu1 %v7195_v32  ;;  %6305 = vmatprep.subr.bf16.mxu0 %v7600_v37 }
 0x370   : > { %v3730_v43 = vrot.slane %v3729_v38, 4  ;;  %v3780_v46 = vadd.f32 %v3751_v39, %v3746_v34  ;;  %v7231_v34 = vld [vmem:[#allocation13 + $0x40] sm:$0xff]   ;;  %v7234_v39 = vld [vmem:[#allocation13 + $0x8] sm:$0xff]  }
 0x372   : > { %v3731_v47 = vadd.f32 %v3730_v43, %v3729_v38  ;;  %v3781_v50 = vrot.slane %v3780_v46, 4  ;;  %4796 = vmatpush1.bf16.msra.mxu1 %v7193_v40  ;;  %6306 = vmatpush3.bf16.msra.mxu0 %v7226_v41  ;;  %v7232_v38 = vld [vmem:[#allocation13] sm:$0xff]   ;;  %v7235_v40 = vld [vmem:[#allocation13 + $0x50] sm:$0xff]   ;;  %v7237_v43 = vld [vmem:[#allocation13 + $0x58] sm:$0xff]  }
 0x373   : > { %4797 = vmatprep.subr.bf16.mxu1 %v7198_v42  ;;  %6307 = vmatprep.subr.bf16.mxu0 %v7600_v37  ;;  %v7236_v41 = vld [vmem:[#allocation13 + $0x10] sm:$0xff]  }
 0x374   : > { %v3732_v45 = vrot.slane %v3731_v47, 2  ;;  %v3782_v53 = vadd.f32 %v3781_v50, %v3780_v46 }
 0x376   : > { %v3733_v30 = vadd.f32 %v3732_v45, %v3731_v47  ;;  %v3783_v11 = vrot.slane %v3782_v53, 2  ;;  %4798 = vmatpush1.bf16.msra.mxu1 %v7196_v51  ;;  %6308 = vmatpush3.bf16.msra.mxu0 %v7230_v52  ;;  %v7238_v47 = vld [vmem:[#allocation13 + $0x18] sm:$0xff]   ;;  %v7239_v45 = vld [vmem:[#allocation13 + $0x60] sm:$0xff]  }
 0x377   : > { %4810 = vmatprep.subr.bf16.mxu1 %v7201_v44  ;;  %6266 = vmatprep.subr.bf16.mxu0 %v7231_v34 }
 0x378   : > { %v3734_v17 = vrot.slane %v3733_v30, 1  ;;  %v3784_v48 = vadd.f32 %v3783_v11, %v3782_v53  ;;  %v7240_v53 = vld [vmem:[#allocation13 + $0x20] sm:$0xff]   ;;  %v7242_v11 = vld [vmem:[#allocation13 + $0x28] sm:$0xff]  }
 0x379   : > { %4800 = vmatmul.mubr.bf16.vlgmr.msra.gmra.mrb[12].mxu1 %v8231_v5 }
 0x37a   : > { %v3735_v49 = vadd.f32 %v3734_v17, %v3733_v30  ;;  %v3785_v57 = vrot.slane %v3784_v48, 1  ;;  %4811 = vmatpush1.bf16.msra.mxu1 %v7199_v23  ;;  %4842 = vmatprep.mubr.bf16.mxu1 %v7602_v59  ;;  %v7241_v30 = vld [vmem:[#allocation13 + $0x68] sm:$0xff]   ;;  %v7243_v23 = vld [vmem:[#allocation13 + $0x70] sm:$0xff]   ;;  %v7245_v17 = vld [vmem:[#allocation13 + $0x78] sm:$0xff]  }
 0x37b   : > { %4812 = vmatprep.subr.bf16.mxu1 %v7205_v55  ;;  %v7244_v55 = vld [vmem:[#allocation13 + $0x30] sm:$0xff]  }
 0x37c   : > { %v3741_v35 = vmul.f32 0.0625, %v3735_v49  ;;  %v3786_v60 = vadd.f32 %v3785_v57, %v3784_v48  ;;  %v7246_v48 = vld [vmem:[#allocation13 + $0x38] sm:$0xff]  }
 0x37e   : > { %v3791_v61 = vmul.f32 0.0625, %v3786_v60  ;;  %v3796_v62 = vmul.f32 %v3741_v35, %v3741_v35  ;;  %v3816_v5 = vsub.f32 %v8396_v33, %v3741_v35  ;;  %4813 = vmatpush1.bf16.msra.mxu1 %v7203_v58  ;;  %v3811_v22 = vsub.f32 %v8383_v26, %v3741_v35 }
 0x37f   : > { %4814 = vmatprep.subr.bf16.mxu1 %v7209_v36 }
 0x380   : > { %v3801_v1 = vsub.f32 %v3791_v61, %v3796_v62 }
 0x382   : > { %v3806_v54 = vmax.f32 %v3801_v1, 0.0  ;;  %4815 = vmatpush1.bf16.msra.mxu1 %v7207_v63 }
 0x383   : > { %4816 = vmatprep.subr.bf16.mxu1 %v7213_v31 }
 0x384   : > { %v3821_v6 = vadd.f32 1e-05, %v3806_v54 }
 0x386   : > { %7259 = vrsqrt.f32 %v3821_v6  ;;  %4817 = vmatpush1.bf16.msra.mxu1 %v7211_v56 }
 0x387   : > { %4818 = vmatprep.subr.bf16.mxu1 %v7217_v25 }
 0x38a   : > { %4819 = vmatpush1.bf16.msra.mxu1 %v7215_v8 }
 0x38b   : > { %4820 = vmatprep.subr.bf16.mxu1 %v7221_v9 }
 0x38e   : > { %4821 = vmatpush1.bf16.msra.mxu1 %v7219_v10 }
 0x38f   : > { %4822 = vmatprep.subr.bf16.mxu1 %v7225_v13 }
 0x390   : > { %v7260_v18 = vpop.eup %7259 }
 0x391   : > { %v3836_v19 = vmul.f32 %v7260_v18, %v3816_v5  ;;  %v3831_v0 = vmul.f32 %v7260_v18, %v3811_v22 }
 0x392   : > { %4823 = vmatpush1.bf16.msra.mxu1 %v7223_v14 }
 0x393   : > { %v3872_v26 = vmul.f32 %v3857_v15, %v3836_v19  ;;  %4824 = vmatprep.subr.bf16.mxu1 %v7229_v16  ;;  %v3867_v27 = vmul.f32 %v3857_v15, %v3831_v0 }
 0x395   : > { %v3903_v28 = vadd.f32 %v3893_v20, %v3867_v27  ;;  %v3908_v2 = vadd.f32 %v3893_v20, %v3872_v26 }
 0x396   : > { %4825 = vmatpush1.bf16.msra.mxu1 %v7227_v21 }
 0x397   : > { %v3913_v29 = vmax.f32 %v3903_v28, 0.0  ;;  %v3918_v32 = vmax.f32 %v3908_v2, 0.0 }
 0x399   : > { %v3923_v33 = vpack.c.bf16 %v3918_v32, %v3913_v29 }
 0x39b   : > { %4843 = vmatmul.mubr.bf16.vlgmr.msra.gmra.mrb[12].mxu1 %v3923_v33  ;;  %6310 = vmatmul.mubr.bf16.vlgmr.msra.gmra.mrb[24].mxu0 %v3923_v33 }
 0x39c   : > { %6267 = vmatpush3.bf16.msra.mxu0 %v7232_v38 }
 0x39d   : > { %6268 = vmatprep.subr.bf16.mxu0 %v7233_v7 }
 0x3a0   : > { %6269 = vmatpush3.bf16.msra.mxu0 %v7234_v39 }
 0x3a1   : > { %6270 = vmatprep.subr.bf16.mxu0 %v7235_v40 }
 0x3a4   : > { %6271 = vmatpush3.bf16.msra.mxu0 %v7236_v41 }
 0x3a5   : > { %6272 = vmatprep.subr.bf16.mxu0 %v7237_v43 }
 0x3a8   : > { %6273 = vmatpush3.bf16.msra.mxu0 %v7238_v47 }
 0x3a9   : > { %6274 = vmatprep.subr.bf16.mxu0 %v7239_v45 }
 0x3ac   : > { %6275 = vmatpush3.bf16.msra.mxu0 %v7240_v53 }
 0x3ad   : > { %6276 = vmatprep.subr.bf16.mxu0 %v7241_v30 }
 0x3b0   : > { %6277 = vmatpush3.bf16.msra.mxu0 %v7242_v11 }
 0x3b1   : > { %6278 = vmatprep.subr.bf16.mxu0 %v7243_v23 }
 0x3b4   : > { %6279 = vmatpush3.bf16.msra.mxu0 %v7244_v55 }
 0x3b5   : > { %6280 = vmatprep.subr.bf16.mxu0 %v7245_v17 }
 0x3b8   : > { %6281 = vmatpush3.bf16.msra.mxu0 %v7246_v48 }
 0x3b9   : > { %6313 = vmatprep.subr.bf16.mxu0 %v7600_v37 }
 0x40c   : > { %v6229_v42 = vpop.f32.mrb[16].mxu0 }
 0x40d   : > { %v6230_v46 = vpop.f32.mrb[17].mxu0 }
 0x40e   : > { %v6231_v50 = vadd.f32 %v6230_v46, %v6229_v42  ;;  %v6232_v51 = vpop.f32.mrb[18].mxu0 }
 0x40f   : > { %v6233_v52 = vpop.f32.mrb[19].mxu0 }
 0x410   : > { %v6234_v44 = vadd.f32 %v6233_v52, %v6232_v51 }
 0x42c   : > { %v6251_v49 = vpop.f32.mrb[20].mxu0 }
 0x42d   : > { %v6252_v57 = vpop.f32.mrb[21].mxu0 }
 0x42e   : > { %v6253_v58 = vadd.f32 %v6252_v57, %v6251_v49  ;;  %v6254_v59 = vpop.f32.mrb[22].mxu0 }
 0x42f   : > { %v6255_v36 = vpop.f32.mrb[23].mxu0 }
 0x430   : > { %v6256_v35 = vadd.f32 %v6255_v36, %v6254_v59  ;;  %v4929_v60 = vadd.f32 %v6253_v58, %v6231_v50 }
 0x432   : > { %v4932_v61 = vadd.f32 %v6256_v35, %v6234_v44 }
 0x46e   : > { %v8476_v62 = vpop.f32.mrb[12].mxu1  ;;  %v4969_v5 = vpop.f32.mrb[24].mxu0 }
 0x46f   : > { %v8478_v63 = vadd.f32 %v4969_v5, %v4929_v60  ;;  %v8480_v22 = vpop.f32.mrb[13].mxu1  ;;  %v6311_v31 = vpop.f32.mrb[25].mxu0  ;;  %v5005_v56 = vmul.f32 %v8476_v62, %v8476_v62 }
 0x470   : > { %v8482_v1 = vpop.f32.mrb[14].mxu1  ;;  %v4972_v54 = vpop.f32.mrb[26].mxu0  ;;  %v5006_v25 = vmul.f32 %v8480_v22, %v8480_v22 }
 0x471   : > { %v4978_v6 = vadd.f32 %v8482_v1, %v8476_v62  ;;  %v5008_v8 = vmul.f32 %v8482_v1, %v8482_v1  ;;  %v8492_v9 = vpop.f32.mrb[15].mxu1  ;;  %v6312_v10 = vpop.f32.mrb[27].mxu0  ;;  %v5007_v12 = vmul.f32 %v8478_v63, %v8478_v63  ;;  %v8496_v13 = vadd.f32 %v4972_v54, %v4932_v61 }
 0x472   : > { %v4985_v14 = vadd.f32 %v8492_v9, %v8480_v22  ;;  %v5009_v15 = vmul.f32 %v8492_v9, %v8492_v9  ;;  %v4993_v16 = vsel %vm4992_vm1, %v8478_v63, 0.0 }
 0x473   : > { %v4979_v18 = vrot.slane %v4978_v6, 4  ;;  %v5011_v19 = vadd.f32 %v5008_v8, %v5005_v56  ;;  %v4994_v0 = vsel %vm4992_vm1, %v8496_v13, 0.0  ;;  %v5010_v20 = vmul.f32 %v8496_v13, %v8496_v13 }
 0x474   : > { %v4986_v21 = vrot.slane %v4985_v14, 4  ;;  %v5018_v26 = vadd.f32 %v5009_v15, %v5006_v25  ;;  %v4995_v2 = vadd.f32 %v4994_v0, %v4993_v16  ;;  %v5025_v29 = vsel %vm4992_vm1, %v5007_v12, 0.0 }
 0x475   : > { %v4980_v27 = vadd.f32 %v4979_v18, %v4978_v6  ;;  %v5012_v28 = vrot.slane %v5011_v19, 4  ;;  %v5026_v32 = vsel %vm4992_vm1, %v5010_v20, 0.0 }
 0x476   : > { %v4987_v33 = vadd.f32 %v4986_v21, %v4985_v14  ;;  %v5019_v34 = vrot.slane %v5018_v26, 4  ;;  %v4996_v39 = vrot.slane %v4995_v2, 4  ;;  %v5027_v40 = vadd.f32 %v5026_v32, %v5025_v29 }
 0x477   : > { %v4981_v38 = vrot.slane %v4980_v27, 2  ;;  %v5013_v7 = vadd.f32 %v5012_v28, %v5011_v19 }
 0x478   : > { %v4988_v41 = vrot.slane %v4987_v33, 2  ;;  %v5020_v42 = vadd.f32 %v5019_v34, %v5018_v26  ;;  %v4997_v47 = vadd.f32 %v4996_v39, %v4995_v2  ;;  %v5028_v50 = vrot.slane %v5027_v40, 4 }
 0x479   : > { %v4982_v43 = vadd.f32 %v4981_v38, %v4980_v27  ;;  %v5014_v46 = vrot.slane %v5013_v7, 2 }
 0x47a   : > { %v4989_v51 = vadd.f32 %v4988_v41, %v4987_v33  ;;  %v5021_v52 = vrot.slane %v5020_v42, 2  ;;  %v4998_v53 = vrot.slane %v4997_v47, 2  ;;  %v5029_v30 = vadd.f32 %v5028_v50, %v5027_v40  ;;  %v4977_v33 = vld [vmem:[#allocation11] sm:$0x7] }
 0x47b   : > { %v4983_v44 = vrot.slane %v4982_v43, 1  ;;  %v5015_v45 = vadd.f32 %v5014_v46, %v5013_v7  ;;  %v5094_v41 = vrot.slane %v4977_v33, %v8208_v4 }
 0x47c   : > { %v4990_v11 = vrot.slane %v4989_v51, 1  ;;  %v5022_v23 = vadd.f32 %v5021_v52, %v5020_v42  ;;  %v4999_v48 = vadd.f32 %v4998_v53, %v4997_v47  ;;  %v5030_v49 = vrot.slane %v5029_v30, 2 }
 0x47d   : > { %v4984_v55 = vadd.f32 %v4983_v44, %v4982_v43  ;;  %v5016_v17 = vrot.slane %v5015_v45, 1 }
 0x47e   : > { %v4991_v57 = vadd.f32 %v4990_v11, %v4989_v51  ;;  %v5023_v58 = vrot.slane %v5022_v23, 1  ;;  %v5000_v35 = vrot.slane %v4999_v48, 1  ;;  %v5031_v60 = vadd.f32 %v5030_v49, %v5029_v30 }
 0x47f   : > { %v5002_v59 = vmul.f32 0.0625, %v4984_v55  ;;  %v5017_v36 = vadd.f32 %v5016_v17, %v5015_v45 }
 0x480   : > { %v5003_v61 = vmul.f32 0.0625, %v4991_v57  ;;  %v5024_v5 = vadd.f32 %v5023_v58, %v5022_v23  ;;  %v5001_v6 = vadd.f32 %v5000_v35, %v4999_v48  ;;  %v5032_v8 = vrot.slane %v5031_v60, 1 }
 0x481   : > { %v5034_v31 = vmul.f32 0.0625, %v5017_v36  ;;  %v5037_v54 = vmul.f32 %v5002_v59, %v5002_v59  ;;  %v5046_v56 = vsub.f32 %v8476_v62, %v5002_v59  ;;  %v5049_v25 = vsub.f32 %v8482_v1, %v5002_v59 }
 0x482   : > { %v5035_v10 = vmul.f32 0.0625, %v5024_v5  ;;  %v5038_v12 = vmul.f32 %v5003_v61, %v5003_v61  ;;  %v5047_v15 = vsub.f32 %v8480_v22, %v5003_v61  ;;  %v5050_v16 = vsub.f32 %v8492_v9, %v5003_v61  ;;  %v4976_v9 = vld [vmem:[#allocation10] sm:$0x7]  ;;  %v7247_v61 = vld [vmem:[#allocation13 + $0x80] sm:$0xff]  }
 0x483   : > { %v5040_v14 = vsub.f32 %v5034_v31, %v5037_v54  ;;  %v5004_v18 = vmul.f32 0.0625, %v5001_v6  ;;  %v5033_v19 = vadd.f32 %v5032_v8, %v5031_v60  ;;  %v5068_v34 = vrot.slane %v4976_v9, %v8200_v24 }
 0x484   : > { %v5041_v0 = vsub.f32 %v5035_v10, %v5038_v12  ;;  %v5076_v50 = vrot.slane %v4976_v9, %v8205_v3 }
 0x485   : > { %v5043_v20 = vmax.f32 %v5040_v14, 0.0  ;;  %v5036_v21 = vmul.f32 0.0625, %v5033_v19  ;;  %v5039_v26 = vmul.f32 %v5004_v18, %v5004_v18  ;;  %v5048_v27 = vsub.f32 %v8478_v63, %v5004_v18 }
 0x486   : > { %v5051_v62 = vsub.f32 %v8496_v13, %v5004_v18  ;;  %v5044_v28 = vmax.f32 %v5041_v0, 0.0  ;;  %v5090_v63 = vrot.slane %v4977_v33, %v8200_v24  ;;  %v5072_v13 = vrot.slane %v4976_v9, %v8208_v4 }
 0x487   : > { %v5052_v1 = vadd.f32 1e-05, %v5043_v20  ;;  %v5042_v2 = vsub.f32 %v5036_v21, %v5039_v26  ;;  %v5098_v24 = vrot.slane %v4977_v33, %v8205_v3  ;;  %v7248_v3 = vld [vmem:[#allocation13 + $0x88] sm:$0xff]  }
 0x488   : > { %v5053_v29 = vadd.f32 1e-05, %v5044_v28 }
 0x489   : > { %7261 = vrsqrt.f32 %v5052_v1  ;;  %v5045_v32 = vmax.f32 %v5042_v2, 0.0 }
 0x48a   : > { %7263 = vrsqrt.f32 %v5053_v29 }
 0x48b   : > { %v5054_v22 = vadd.f32 1e-05, %v5045_v32 }
 0x48d   : > { %7265 = vrsqrt.f32 %v5054_v22 }
 0x493   : > { %v7262_v38 = vpop.eup %7261 }
 0x494   : > { %v5058_v7 = vmul.f32 %v7262_v38, %v5046_v56  ;;  %v5061_v39 = vmul.f32 %v7262_v38, %v5049_v25  ;;  %v7264_v40 = vpop.eup %7263  ;;  %v7249_v56 = vld [vmem:[#allocation13 + $0x90] sm:$0xff]   ;;  %v7250_v25 = vld [vmem:[#allocation13 + $0x98] sm:$0xff]  }
 0x495   : > { %v5062_v46 = vmul.f32 %v7264_v40, %v5050_v16  ;;  %v5059_v47 = vmul.f32 %v7264_v40, %v5047_v15  ;;  %v6075_v16 = vld [vmem:[#allocation14] ss:$0 sm:$0xff] }
 0x496   : > { %v5080_v42 = vmul.f32 %v5068_v34, %v5058_v7  ;;  %v5083_v43 = vmul.f32 %v5068_v34, %v5061_v39 }
 0x497   : > { %v7266_v51 = vpop.eup %7265  ;;  %v5084_v44 = vmul.f32 %v5072_v13, %v5062_v46  ;;  %v5081_v45 = vmul.f32 %v5072_v13, %v5059_v47 }
 0x498   : > { %v5105_v52 = vadd.f32 %v5090_v63, %v5083_v43  ;;  %v5102_v53 = vadd.f32 %v5090_v63, %v5080_v42  ;;  %v5060_v30 = vmul.f32 %v7266_v51, %v5048_v27  ;;  %v5063_v11 = vmul.f32 %v7266_v51, %v5051_v62 }
 0x499   : > { %v5103_v23 = vadd.f32 %v5094_v41, %v5081_v45  ;;  %v5106_v55 = vadd.f32 %v5094_v41, %v5084_v44 }
 0x49a   : > { %v5108_v17 = vmax.f32 %v5102_v53, 0.0  ;;  %v5111_v48 = vmax.f32 %v5105_v52, 0.0  ;;  %v5082_v4 = vmul.f32 %v5076_v50, %v5060_v30  ;;  %v5085_v49 = vmul.f32 %v5076_v50, %v5063_v11 }
 0x49b   : > { %v5109_v57 = vmax.f32 %v5103_v23, 0.0  ;;  %v5112_v58 = vmax.f32 %v5106_v55, 0.0 }
 0x49c   : > { %v5114_v59 = vpack.c.bf16 %v5111_v48, %v5108_v17  ;;  %v5107_v36 = vadd.f32 %v5098_v24, %v5085_v49  ;;  %v5104_v35 = vadd.f32 %v5098_v24, %v5082_v4 }
 0x49d   : > { %v5115_v60 = vpack.c.bf16 %v5112_v58, %v5109_v57 }
 0x49e   : > { %v5113_v5 = vmax.f32 %v5107_v36, 0.0  ;;  %v5110_v31 = vmax.f32 %v5104_v35, 0.0 }
 0x49f   : > { %5319 = vmatprep.mubr.bf16.mxu0 %v5115_v60 }
 0x4a0   : > { %5320 = vmatmul.mubr.bf16.vlgmr.msra.gmra.mrb[28].mxu0 %v5114_v59  ;;  %v5116_v54 = vpack.c.bf16 %v5113_v5, %v5110_v31 }
 0x4a1   : > { %6314 = vmatpush3.bf16.msra.mxu0 %v7247_v61  ;;  %6321 = vmatprep.mubr.msk.bf16.mxu0 %vm7601_vm0, %v7600_v37 }
 0x4a2   : > { %6315 = vmatprep.subr.bf16.mxu0 %v7600_v37 }
 0x4a5   : > { %6316 = vmatpush3.bf16.msra.mxu0 %v7248_v3 }
 0x4a6   : > { %6317 = vmatprep.subr.bf16.mxu0 %v7600_v37 }
 0x4a9   : > { %6318 = vmatpush3.bf16.msra.mxu0 %v7249_v56 }
 0x4aa   : > { %6319 = vmatprep.subr.bf16.mxu0 %v7600_v37 }
 0x4ad   : > { %6320 = vmatpush3.bf16.msra.mxu0 %v7250_v25 }
 0x4b0   : > { %6322 = vmatmul.mubr.msk.bf16.vlgmr.msra.gmra.mrb[32].mxu0 %vm4992_vm1, %v5116_v54 }
 0x573   : > { %v6282_v6 = vpop.f32.mrb[28].mxu0 }
 0x574   : > { %v6283_v8 = vpop.f32.mrb[29].mxu0 }
 0x575   : > { %v6284_v10 = vadd.f32 %v6283_v8, %v6282_v6  ;;  %v6285_v12 = vpop.f32.mrb[30].mxu0 }
 0x576   : > { %v6286_v14 = vpop.f32.mrb[31].mxu0 }
 0x577   : > { %v6287_v15 = vadd.f32 %v6286_v14, %v6285_v12  ;;  %v5322_v18 = vadd.f32 %v6284_v10, %v6075_v16 }
 0x579   : > { %v5325_v20 = vadd.f32 %v6287_v15, %v6075_v16 }
 0x583   : > { %v5362_v19 = vpop.f32.mrb[32].mxu0 }
 0x584   : > { %v5363_v0 = vadd.f32 %v5362_v19, %v5322_v18  ;;  %v6323_v37 = vpop.f32.mrb[33].mxu0 }
 0x585   : > { %v5365_v21 = vpop.f32.mrb[34].mxu0 }
 0x586   : > { %5369 = vst [vmem:[%s442_s20] sm:$0xff] %v5363_v0  ;;  %v5366_v26 = vadd.f32 %v5365_v21, %v5325_v20  ;;  %v6324_v27 = vpop.f32.mrb[35].mxu0 }
 0x588   : > { %5370 = vst [vmem:[%s442_s20 + $0x8] sm:$0xff] %v5366_v26 }
 0x589   : > { %7515 = shalt.err (!%p7512_p10)
}
 0x58a   : > { %s7516_s16 = scalar_lea.hbm %s8535_s2, 256  ;;  %s7520_s20 = scalar_lea.hbm %s8615_s1, 512 }
 0x58b   : > { %p7517_p11 = scmp.ne.s32.totalorder %s8535_s2, %s7516_s16  ;;  %p7521_p9 = scmp.lt.u32.totalorder %s8535_s2, %s8615_s1 }
 0x58c   : > { %p7522_p7 = scmp.lt.u32.totalorder %s7520_s20, %s7516_s16  ;;  %p7524_p12 = scmp.lt.u32.totalorder %s7516_s16, %s8535_s2 }
 0x58d   : > { %p7518_p0 = pnand %p7517_p11, %p8616_p13 }
 0x58e   : > { %p7523_p4 = por %p7522_p7, %p7521_p9 }
 0x58f   : > { %p7519_p5 = pneg %p7518_p0 }
 0x590   : > { %p7525_p1 = por %p7524_p12, %p7523_p4 }
 0x592   : > { %p7526_p3 = pnand %p7525_p1, %p7519_p5 }
 0x594   : > { %7529 = shalt.err (!%p7526_p3)
}
 0x595   : > { %s7604_s21 = smov 128   ;;  %s7605_s17 = smov 8  }
 0x596   : > { %6398 = dma.vmem_to_hbm [thread:$0]  (%p8616_p13), %s8530_s27, 256, %s8535_s2, %s5372_s15, %s7604_s21, %s7604_s21, %s7605_s17  }
 0x597 PF: > { %s5400_s9 = sand.u32 1, %s7572_s30   ;;  %p8617_p2 = scmp.ne.s32.totalorder %s8604_s28, 0 }
 0x598   : > { %p8618_p8 = scmp.ge.s32.totalorder %s7584_s12, 2  ;;  %s5401_s13 = scalar_lea.sflag [#allocation4], %s5400_s9 }
 0x59a   : > { %p6427_p6 = pnand %p8618_p8, %p8617_p2 }
 0x59c   : > { %7567 = dma.done.wait (!%p6427_p6), %s5401_s13, 256  }
 0x59d   : > { %7569 = vsyncadd (!%p6427_p6), %s5401_s13, 4294967040  ;;  %p26_p10 = scmp.ge.s32.totalorder %s7852_s19, 4   ;;  %s8619_s30 = smov %s7576_s10 }
 0x59e   : > { %s8620_s10 = smov %s7580_s11  ;;  %s8621_s11 = smov %s7864_s24 }
 0x59f   : > { %s8622_s12 = smov %s7852_s19  ;;  %28 = sbr.rel (!%p26_p10) target bundleno = 13 (0xd), region = 129 }
 0x5a6   :  { %5406 = vsyncpa [#allocation3], 1 }
 0x5a7   :  { %5408 = vsyncpa [#allocation3 + $0x1], 1 }
 0x5a8   :  { %5409 = vsyncpa [#allocation6], 1 }
 0x5a9   :  { %5410 = vsyncpa [#allocation9], 1 }
 0x5aa   :  { %5411 = vsyncpa [#allocation12], 1 }
 0x5ab   :  { %5412 = vsyncpa [#allocation15], 1 }
 0x5ac   :  { %5413 = vsyncpa [#allocation4], 1 }
 0x5ad   :  { %5415 = vsyncpa [#allocation4 + $0x1], 1 }

</bundles_post_ra>
